<compile_context>
chip_gen: v6e
topology: v6e:2x2x1
jax: 0.10.0
libtpu: 0.0.40
codegen_flags: <defaults>
</compile_context>

<pallas_src>
import jax
import jax.numpy as jnp
from jax.experimental import pallas as pl
from jax.experimental.pallas import tpu as pltpu

BN_EPS = 1e-5


def _generator_kernel(x_ref, w1, w2, w3, w4, w5, bn_ref, b5_ref, o_ref):
    """Fused forward pass of the whole Generator.

    bn_ref packs the BatchNorm parameters interleaved per layer: rows (2*li, 2*li+1)
    hold (gamma_li, beta_li), each zero-padded to F_max lanes.
    """

    def gen_block(h_bf, mean_h, w_r, li, need_next_mean):
        d_out = w_r.shape[1]
        # Linear, no bias (a pre-BN bias cancels exactly under batch-stat BatchNorm).
        # bf16 operands on the MXU, f32 accumulation.
        y = jnp.dot(h_bf, w_r[...], preferred_element_type=jnp.float32)        # (B, F)
        # Batch mean on the MXU: mean(y) == mean(h) @ W, a (1,K)@(K,F) matmul, replacing
        # the (B,F) VPU reduction (K < F for every layer).
        mean = jnp.dot(mean_h.astype(jnp.bfloat16), w_r[...],
                       preferred_element_type=jnp.float32)                     # (1, F)
        # One-pass biased variance (eps=1e-5) in f32, clamped against cancellation.
        msq = jnp.mean(y * y, axis=0, keepdims=True)
        var = jnp.maximum(msq - mean * mean, 0.0)
        gb = bn_ref[2 * li:2 * li + 2, 0:d_out]        # (2, F): row0 gamma, row1 beta
        s = gb[0:1, :] * jax.lax.rsqrt(var + BN_EPS)
        t = gb[1:2, :] - mean * s
        out = jnp.maximum(y * s + t, 0.0)              # folded BN + ReLU, f32
        # Batch mean of this layer's activations for the *next* layer's BN, computed
        # while `out` is still f32 (the last block skips it).
        next_mean = jnp.mean(out, axis=0, keepdims=True) if need_next_mean else None
        return out.astype(jnp.bfloat16), next_mean     # bf16 inter-layer activations

    # TODO(synk): BatchNorm1d running_mean/running_var buffers are not updated (forward
    # output only; PyTorch training-state side effect omitted).
    h_f32 = x_ref[...].astype(jnp.float32)
    mean_h = jnp.mean(h_f32, axis=0, keepdims=True)
    h = h_f32.astype(jnp.bfloat16)       # cast once; all later activations stay bf16
    h, mean_h = gen_block(h, mean_h, w1, 0, True)
    h, mean_h = gen_block(h, mean_h, w2, 1, True)
    h, mean_h = gen_block(h, mean_h, w3, 2, True)
    h, _ = gen_block(h, mean_h, w4, 3, False)
    # Final Linear -> Sigmoid. exp goes to the EUP; the divide uses the approximate EUP
    # reciprocal so the epilogue stays off the VALU.
    logits = jnp.dot(h, w5[...], preferred_element_type=jnp.float32) + b5_ref[...]
    o_ref[...] = pl.reciprocal(1.0 + jnp.exp(-logits), approx=True).astype(o_ref.dtype)


def init_generator_params(key, z_dim=10, im_dim=784, hidden_dim=128,
                          dtype=jnp.float32):
    """Deterministic parameter init matching the PyTorch module's layer shapes.

    b[0..3] (pre-BN biases) are created for the exact f32 reference only; the kernel
    does not consume them because they cancel under batch-stat BatchNorm.
    """
    dims = [z_dim, hidden_dim, hidden_dim * 2, hidden_dim * 4, hidden_dim * 8, im_dim]
    params = {"w": [], "b": [], "gamma": [], "beta": []}
    for li in range(5):
        d_in, d_out = dims[li], dims[li + 1]
        key, kw, kb = jax.random.split(key, 3)
        bound = 1.0 / float(d_in) ** 0.5
        params["w"].append(jax.random.uniform(kw, (d_in, d_out), dtype, -bound, bound))
        params["b"].append(jax.random.uniform(kb, (1, d_out), dtype, -bound, bound))
        if li < 4:
            params["gamma"].append(jnp.ones((1, d_out), dtype))
            params["beta"].append(jnp.zeros((1, d_out), dtype))
    return params, dims


def _vmem_limit_bytes(batch, dims, out_itemsize):
    """Explicit VMEM footprint: bf16 weights + packed BN params + the widest per-layer
    live activation set (bf16 input + f32 pre-act + f32 post-act + bf16 output) + I/O
    buffers, with headroom; capped per generation (<=100 MiB on v5e/v6e's 128 MiB,
    ~85% of physical on v7x's 64 MiB)."""
    f_max = max(dims[1:5])
    w_bytes = sum(dims[i] * dims[i + 1] for i in range(5)) * 2            # bf16 weights
    const_bytes = 8 * f_max * 4 + dims[5] * 4                             # bn pack + b5
    in_bytes = batch * dims[0] * 4
    out_bytes = batch * dims[5] * out_itemsize
    live = 0
    for li in range(4):
        live = max(live, batch * (dims[li] * 2 + dims[li + 1] * (4 + 4 + 2)))
    live = max(live, batch * (dims[4] * 2 + dims[5] * (4 + out_itemsize)))
    need = int((w_bytes + const_bytes + in_bytes + out_bytes + live) * 1.5) + (4 << 20)
    try:
        phys = pltpu.get_tpu_info().vmem_capacity_bytes
    except Exception:
        phys = 64 << 20                      # be conservative if the query is unavailable
    cap = min(100 << 20, int(phys * 0.85))
    return max(8 << 20, min(cap, need))


def generator_forward(noise, params, dims, out_dtype=jnp.float32):
    # out_dtype=jnp.bfloat16 halves output DMA / VMEM bytes and is safe for [0,1] pixels.
    b = noise.shape[0]
    im_dim = dims[-1]
    f_max = max(dims[1:5])                     # widest BN layer = 8 * hidden_dim

    # bf16 weights for the MXU (halves weight DMA/VMEM bytes).
    w_bf = [w.astype(jnp.bfloat16) for w in params["w"]]
    b5 = params["b"][4].astype(jnp.float32)

    # Pack BN gammas/betas into one (8, f_max) f32 array, interleaved per layer
    # (rows 2*li, 2*li+1) so each layer loads a single contiguous (2, d_out) slice.
    rows = []
    for li in range(4):
        for v in (params["gamma"][li], params["beta"][li]):
            rows.append(jnp.pad(v[0].astype(jnp.float32), (0, f_max - v.shape[1])))
    bn_pack = jnp.stack(rows)

    inputs = (noise, w_bf[0], w_bf[1], w_bf[2], w_bf[3], w_bf[4], bn_pack, b5)

    # TODO(synk): v7x dual-TensorCore split (batch-halved "parallel" grid) is omitted on
    # purpose: per-core half-batch statistics would change BatchNorm numerics vs the
    # module's full-batch stats, and an exact cross-core stat exchange needs core_map +
    # a shared-VMEM reduction.
    vmem = pl.BlockSpec(memory_space=pltpu.MemorySpace.VMEM)
    return pl.pallas_call(
        _generator_kernel,
        out_shape=jax.ShapeDtypeStruct((b, im_dim), out_dtype),
        in_specs=[vmem] * len(inputs),
        out_specs=vmem,
        compiler_params=pltpu.CompilerParams(
            vmem_limit_bytes=_vmem_limit_bytes(b, dims, jnp.dtype(out_dtype).itemsize)),
    )(*inputs)


def generator_ref_exact_f32(noise, params):
    """Exact PyTorch-semantics forward in f32 (includes the pre-BN biases)."""
    h = noise.astype(jnp.float32)
    for li in range(4):
        y = h @ params["w"][li] + params["b"][li]
        mean = jnp.mean(y, axis=0, keepdims=True)
        var = jnp.mean((y - mean) ** 2, axis=0, keepdims=True)
        h = jnp.maximum((y - mean) / jnp.sqrt(var + BN_EPS)
                        * params["gamma"][li] + params["beta"][li], 0.0)
    return jax.nn.sigmoid(h @ params["w"][4] + params["b"][4])


def generator_ref_mirror(noise, params):
    """Mirrors the kernel arithmetic: bf16 matmuls + f32 accumulate, bf16 inter-layer
    activations, mean-via-(1,K)@(K,F) matmul, folded one-pass BN, no pre-BN biases.
    The only unmirrored piece is the kernel's approximate EUP reciprocal (exact here)."""
    h_f32 = noise.astype(jnp.float32)
    mean_h = jnp.mean(h_f32, axis=0, keepdims=True)
    h = h_f32.astype(jnp.bfloat16)
    for li in range(4):
        w = params["w"][li].astype(jnp.bfloat16)
        y = jnp.dot(h, w, preferred_element_type=jnp.float32)
        mean = jnp.dot(mean_h.astype(jnp.bfloat16), w,
                       preferred_element_type=jnp.float32)
        var = jnp.maximum(jnp.mean(y * y, axis=0, keepdims=True) - mean * mean, 0.0)
        s = params["gamma"][li] * jax.lax.rsqrt(var + BN_EPS)
        t = params["beta"][li] - mean * s
        out = jnp.maximum(y * s + t, 0.0)
        mean_h = jnp.mean(out, axis=0, keepdims=True)
        h = out.astype(jnp.bfloat16)
    w5 = params["w"][4].astype(jnp.bfloat16)
    logits = jnp.dot(h, w5, preferred_element_type=jnp.float32) + params["b"][4]
    return jax.nn.sigmoid(logits)


if __name__ == "__main__":
    # Small demo shapes: module-default z_dim / im_dim, reduced hidden_dim, B=128.
    # NOTE: these widths (16..128) are at/below one 128-lane vreg, so they are NOT
    # representative for profiling; benchmark at hidden_dim=128, im_dim=784, large B.
    Z_DIM, IM_DIM, HIDDEN_DIM, BATCH = 10, 784, 16, 128

    key = jax.random.PRNGKey(0)
    key, k_noise = jax.random.split(key)
    params, dims = init_generator_params(key, z_dim=Z_DIM, im_dim=IM_DIM,
                                         hidden_dim=HIDDEN_DIM)
    noise = jax.random.normal(k_noise, (BATCH, Z_DIM), jnp.float32)

    # f32 output here so the numeric checks stay tight; pass out_dtype=jnp.bfloat16 to
    # additionally halve output-side HBM traffic in production.
    out = jax.block_until_ready(
        generator_forward(noise, params, dims, out_dtype=jnp.float32))

    assert out.shape == (BATCH, IM_DIM), out.shape
    # The approximate EUP reciprocal can overshoot 1.0 by O(1e-3); allow that slack.
    assert bool(jnp.all(out >= -1e-6)) and bool(jnp.all(out <= 1.0 + 5e-3))

    # Tight check against a reference that mirrors the kernel's arithmetic
    # (difference is only the approximate reciprocal in the sigmoid).
    mirror = generator_ref_mirror(noise, params)
    err_mirror = float(jnp.max(jnp.abs(out - mirror)))
    assert err_mirror < 5e-3, err_mirror

    # Looser check against exact f32 PyTorch semantics (pre-BN biases included);
    # difference is bf16 matmul/activation rounding + mean-via-matmul rounding.
    exact = generator_ref_exact_f32(noise, params)
    err_exact = float(jnp.max(jnp.abs(out - exact)))
    assert err_exact < 5e-2, err_exact

    print("KERNEL_OK")
</pallas_src>

<mosaic_0001>
module attributes {stable_mosaic.version = 11 : i64} {
  func.func @_generator_kernel(%arg0: memref<128x10xf32, #tpu.memory_space<vmem>>, %arg1: memref<10x16xbf16, #tpu.memory_space<vmem>>, %arg2: memref<16x32xbf16, #tpu.memory_space<vmem>>, %arg3: memref<32x64xbf16, #tpu.memory_space<vmem>>, %arg4: memref<64x128xbf16, #tpu.memory_space<vmem>>, %arg5: memref<128x784xbf16, #tpu.memory_space<vmem>>, %arg6: memref<8x128xf32, #tpu.memory_space<vmem>>, %arg7: memref<1x784xf32, #tpu.memory_space<vmem>>, %arg8: memref<128x784xf32, #tpu.memory_space<vmem>>) attributes {dimension_semantics = [], scalar_prefetch = 0 : i64, scratch_operands = 0 : i64, tpu.core_type = #tpu.core_type<tc>} {
    %c0 = arith.constant 0 : index
    %c0_0 = arith.constant 0 : index
    %0 = vector.load %arg0[%c0, %c0_0] : memref<128x10xf32, #tpu.memory_space<vmem>>, vector<128x10xf32>
    %cst = arith.constant dense<0.000000e+00> : vector<10xf32>
    %1 = vector.multi_reduction <add>, %0, %cst [0] : vector<128x10xf32> to vector<10xf32>
    %2 = vector.shape_cast %1 : vector<10xf32> to vector<1x10xf32>
    %cst_1 = arith.constant 1.280000e+02 : f32
    %3 = vector.broadcast %cst_1 : f32 to vector<1x10xf32>
    %4 = arith.divf %2, %3 : vector<1x10xf32>
    %5 = arith.truncf %0 : vector<128x10xf32> to vector<128x10xbf16>
    %c0_2 = arith.constant 0 : index
    %c0_3 = arith.constant 0 : index
    %6 = vector.load %arg1[%c0_2, %c0_3] : memref<10x16xbf16, #tpu.memory_space<vmem>>, vector<10x16xbf16>
    %cst_4 = arith.constant dense<0.000000e+00> : vector<128x16xf32>
    %7 = tpu.matmul %5, %6, %cst_4 {dimension_numbers = #tpu.dot_dimension_numbers<[1], [0], [0], [1], [0, 0, 1, 1], [], []>} : vector<128x10xbf16>, vector<10x16xbf16>, vector<128x16xf32> -> vector<128x16xf32>
    %8 = arith.truncf %4 : vector<1x10xf32> to vector<1x10xbf16>
    %c0_5 = arith.constant 0 : index
    %c0_6 = arith.constant 0 : index
    %9 = vector.load %arg1[%c0_5, %c0_6] : memref<10x16xbf16, #tpu.memory_space<vmem>>, vector<10x16xbf16>
    %cst_7 = arith.constant dense<0.000000e+00> : vector<1x16xf32>
    %10 = tpu.matmul %8, %9, %cst_7 {dimension_numbers = #tpu.dot_dimension_numbers<[1], [0], [0], [1], [0, 0, 1, 1], [], []>} : vector<1x10xbf16>, vector<10x16xbf16>, vector<1x16xf32> -> vector<1x16xf32>
    %11 = arith.mulf %7, %7 : vector<128x16xf32>
    %cst_8 = arith.constant dense<0.000000e+00> : vector<16xf32>
    %12 = vector.multi_reduction <add>, %11, %cst_8 [0] : vector<128x16xf32> to vector<16xf32>
    %13 = vector.shape_cast %12 : vector<16xf32> to vector<1x16xf32>
    %cst_9 = arith.constant 1.280000e+02 : f32
    %14 = vector.broadcast %cst_9 : f32 to vector<1x16xf32>
    %15 = arith.divf %13, %14 : vector<1x16xf32>
    %16 = arith.mulf %10, %10 : vector<1x16xf32>
    %17 = arith.subf %15, %16 : vector<1x16xf32>
    %cst_10 = arith.constant 0.000000e+00 : f32
    %18 = vector.broadcast %cst_10 : f32 to vector<1x16xf32>
    %19 = arith.maximumf %17, %18 : vector<1x16xf32>
    %c0_11 = arith.constant 0 : index
    %c0_12 = arith.constant 0 : index
    %20 = vector.load %arg6[%c0_11, %c0_12] : memref<8x128xf32, #tpu.memory_space<vmem>>, vector<2x16xf32>
    %21 = vector.extract_strided_slice %20 {offsets = [0, 0], sizes = [1, 16], strides = [1, 1]} : vector<2x16xf32> to vector<1x16xf32>
    %cst_13 = arith.constant 9.99999974E-6 : f32
    %22 = vector.broadcast %cst_13 : f32 to vector<1x16xf32>
    %23 = arith.addf %19, %22 : vector<1x16xf32>
    %24 = math.rsqrt %23 : vector<1x16xf32>
    %25 = arith.mulf %21, %24 : vector<1x16xf32>
    %26 = vector.extract_strided_slice %20 {offsets = [1, 0], sizes = [1, 16], strides = [1, 1]} : vector<2x16xf32> to vector<1x16xf32>
    %27 = arith.mulf %10, %25 : vector<1x16xf32>
    %28 = arith.subf %26, %27 : vector<1x16xf32>
    %29 = vector.broadcast %25 : vector<1x16xf32> to vector<128x16xf32>
    %30 = arith.mulf %7, %29 : vector<128x16xf32>
    %31 = vector.broadcast %28 : vector<1x16xf32> to vector<128x16xf32>
    %32 = arith.addf %30, %31 : vector<128x16xf32>
    %cst_14 = arith.constant 0.000000e+00 : f32
    %33 = vector.broadcast %cst_14 : f32 to vector<128x16xf32>
    %34 = arith.maximumf %32, %33 : vector<128x16xf32>
    %cst_15 = arith.constant dense<0.000000e+00> : vector<16xf32>
    %35 = vector.multi_reduction <add>, %34, %cst_15 [0] : vector<128x16xf32> to vector<16xf32>
    %36 = vector.shape_cast %35 : vector<16xf32> to vector<1x16xf32>
    %cst_16 = arith.constant 1.280000e+02 : f32
    %37 = vector.broadcast %cst_16 : f32 to vector<1x16xf32>
    %38 = arith.divf %36, %37 : vector<1x16xf32>
    %39 = arith.truncf %34 : vector<128x16xf32> to vector<128x16xbf16>
    %c0_17 = arith.constant 0 : index
    %c0_18 = arith.constant 0 : index
    %40 = vector.load %arg2[%c0_17, %c0_18] : memref<16x32xbf16, #tpu.memory_space<vmem>>, vector<16x32xbf16>
    %cst_19 = arith.constant dense<0.000000e+00> : vector<128x32xf32>
    %41 = tpu.matmul %39, %40, %cst_19 {dimension_numbers = #tpu.dot_dimension_numbers<[1], [0], [0], [1], [0, 0, 1, 1], [], []>} : vector<128x16xbf16>, vector<16x32xbf16>, vector<128x32xf32> -> vector<128x32xf32>
    %42 = arith.truncf %38 : vector<1x16xf32> to vector<1x16xbf16>
    %c0_20 = arith.constant 0 : index
    %c0_21 = arith.constant 0 : index
    %43 = vector.load %arg2[%c0_20, %c0_21] : memref<16x32xbf16, #tpu.memory_space<vmem>>, vector<16x32xbf16>
    %cst_22 = arith.constant dense<0.000000e+00> : vector<1x32xf32>
    %44 = tpu.matmul %42, %43, %cst_22 {dimension_numbers = #tpu.dot_dimension_numbers<[1], [0], [0], [1], [0, 0, 1, 1], [], []>} : vector<1x16xbf16>, vector<16x32xbf16>, vector<1x32xf32> -> vector<1x32xf32>
    %45 = arith.mulf %41, %41 : vector<128x32xf32>
    %cst_23 = arith.constant dense<0.000000e+00> : vector<32xf32>
    %46 = vector.multi_reduction <add>, %45, %cst_23 [0] : vector<128x32xf32> to vector<32xf32>
    %47 = vector.shape_cast %46 : vector<32xf32> to vector<1x32xf32>
    %cst_24 = arith.constant 1.280000e+02 : f32
    %48 = vector.broadcast %cst_24 : f32 to vector<1x32xf32>
    %49 = arith.divf %47, %48 : vector<1x32xf32>
    %50 = arith.mulf %44, %44 : vector<1x32xf32>
    %51 = arith.subf %49, %50 : vector<1x32xf32>
    %cst_25 = arith.constant 0.000000e+00 : f32
    %52 = vector.broadcast %cst_25 : f32 to vector<1x32xf32>
    %53 = arith.maximumf %51, %52 : vector<1x32xf32>
    %c2 = arith.constant 2 : index
    %c0_26 = arith.constant 0 : index
    %54 = vector.load %arg6[%c2, %c0_26] : memref<8x128xf32, #tpu.memory_space<vmem>>, vector<2x32xf32>
    %55 = vector.extract_strided_slice %54 {offsets = [0, 0], sizes = [1, 32], strides = [1, 1]} : vector<2x32xf32> to vector<1x32xf32>
    %cst_27 = arith.constant 9.99999974E-6 : f32
    %56 = vector.broadcast %cst_27 : f32 to vector<1x32xf32>
    %57 = arith.addf %53, %56 : vector<1x32xf32>
    %58 = math.rsqrt %57 : vector<1x32xf32>
    %59 = arith.mulf %55, %58 : vector<1x32xf32>
    %60 = vector.extract_strided_slice %54 {offsets = [1, 0], sizes = [1, 32], strides = [1, 1]} : vector<2x32xf32> to vector<1x32xf32>
    %61 = arith.mulf %44, %59 : vector<1x32xf32>
    %62 = arith.subf %60, %61 : vector<1x32xf32>
    %63 = vector.broadcast %59 : vector<1x32xf32> to vector<128x32xf32>
    %64 = arith.mulf %41, %63 : vector<128x32xf32>
    %65 = vector.broadcast %62 : vector<1x32xf32> to vector<128x32xf32>
    %66 = arith.addf %64, %65 : vector<128x32xf32>
    %cst_28 = arith.constant 0.000000e+00 : f32
    %67 = vector.broadcast %cst_28 : f32 to vector<128x32xf32>
    %68 = arith.maximumf %66, %67 : vector<128x32xf32>
    %cst_29 = arith.constant dense<0.000000e+00> : vector<32xf32>
    %69 = vector.multi_reduction <add>, %68, %cst_29 [0] : vector<128x32xf32> to vector<32xf32>
    %70 = vector.shape_cast %69 : vector<32xf32> to vector<1x32xf32>
    %cst_30 = arith.constant 1.280000e+02 : f32
    %71 = vector.broadcast %cst_30 : f32 to vector<1x32xf32>
    %72 = arith.divf %70, %71 : vector<1x32xf32>
    %73 = arith.truncf %68 : vector<128x32xf32> to vector<128x32xbf16>
    %c0_31 = arith.constant 0 : index
    %c0_32 = arith.constant 0 : index
    %74 = vector.load %arg3[%c0_31, %c0_32] : memref<32x64xbf16, #tpu.memory_space<vmem>>, vector<32x64xbf16>
    %cst_33 = arith.constant dense<0.000000e+00> : vector<128x64xf32>
    %75 = tpu.matmul %73, %74, %cst_33 {dimension_numbers = #tpu.dot_dimension_numbers<[1], [0], [0], [1], [0, 0, 1, 1], [], []>} : vector<128x32xbf16>, vector<32x64xbf16>, vector<128x64xf32> -> vector<128x64xf32>
    %76 = arith.truncf %72 : vector<1x32xf32> to vector<1x32xbf16>
    %c0_34 = arith.constant 0 : index
    %c0_35 = arith.constant 0 : index
    %77 = vector.load %arg3[%c0_34, %c0_35] : memref<32x64xbf16, #tpu.memory_space<vmem>>, vector<32x64xbf16>
    %cst_36 = arith.constant dense<0.000000e+00> : vector<1x64xf32>
    %78 = tpu.matmul %76, %77, %cst_36 {dimension_numbers = #tpu.dot_dimension_numbers<[1], [0], [0], [1], [0, 0, 1, 1], [], []>} : vector<1x32xbf16>, vector<32x64xbf16>, vector<1x64xf32> -> vector<1x64xf32>
    %79 = arith.mulf %75, %75 : vector<128x64xf32>
    %cst_37 = arith.constant dense<0.000000e+00> : vector<64xf32>
    %80 = vector.multi_reduction <add>, %79, %cst_37 [0] : vector<128x64xf32> to vector<64xf32>
    %81 = vector.shape_cast %80 : vector<64xf32> to vector<1x64xf32>
    %cst_38 = arith.constant 1.280000e+02 : f32
    %82 = vector.broadcast %cst_38 : f32 to vector<1x64xf32>
    %83 = arith.divf %81, %82 : vector<1x64xf32>
    %84 = arith.mulf %78, %78 : vector<1x64xf32>
    %85 = arith.subf %83, %84 : vector<1x64xf32>
    %cst_39 = arith.constant 0.000000e+00 : f32
    %86 = vector.broadcast %cst_39 : f32 to vector<1x64xf32>
    %87 = arith.maximumf %85, %86 : vector<1x64xf32>
    %c4 = arith.constant 4 : index
    %c0_40 = arith.constant 0 : index
    %88 = vector.load %arg6[%c4, %c0_40] : memref<8x128xf32, #tpu.memory_space<vmem>>, vector<2x64xf32>
    %89 = vector.extract_strided_slice %88 {offsets = [0, 0], sizes = [1, 64], strides = [1, 1]} : vector<2x64xf32> to vector<1x64xf32>
    %cst_41 = arith.constant 9.99999974E-6 : f32
    %90 = vector.broadcast %cst_41 : f32 to vector<1x64xf32>
    %91 = arith.addf %87, %90 : vector<1x64xf32>
    %92 = math.rsqrt %91 : vector<1x64xf32>
    %93 = arith.mulf %89, %92 : vector<1x64xf32>
    %94 = vector.extract_strided_slice %88 {offsets = [1, 0], sizes = [1, 64], strides = [1, 1]} : vector<2x64xf32> to vector<1x64xf32>
    %95 = arith.mulf %78, %93 : vector<1x64xf32>
    %96 = arith.subf %94, %95 : vector<1x64xf32>
    %97 = vector.broadcast %93 : vector<1x64xf32> to vector<128x64xf32>
    %98 = arith.mulf %75, %97 : vector<128x64xf32>
    %99 = vector.broadcast %96 : vector<1x64xf32> to vector<128x64xf32>
    %100 = arith.addf %98, %99 : vector<128x64xf32>
    %cst_42 = arith.constant 0.000000e+00 : f32
    %101 = vector.broadcast %cst_42 : f32 to vector<128x64xf32>
    %102 = arith.maximumf %100, %101 : vector<128x64xf32>
    %cst_43 = arith.constant dense<0.000000e+00> : vector<64xf32>
    %103 = vector.multi_reduction <add>, %102, %cst_43 [0] : vector<128x64xf32> to vector<64xf32>
    %104 = vector.shape_cast %103 : vector<64xf32> to vector<1x64xf32>
    %cst_44 = arith.constant 1.280000e+02 : f32
    %105 = vector.broadcast %cst_44 : f32 to vector<1x64xf32>
    %106 = arith.divf %104, %105 : vector<1x64xf32>
    %107 = arith.truncf %102 : vector<128x64xf32> to vector<128x64xbf16>
    %c0_45 = arith.constant 0 : index
    %c0_46 = arith.constant 0 : index
    %108 = vector.load %arg4[%c0_45, %c0_46] : memref<64x128xbf16, #tpu.memory_space<vmem>>, vector<64x128xbf16>
    %cst_47 = arith.constant dense<0.000000e+00> : vector<128x128xf32>
    %109 = tpu.matmul %107, %108, %cst_47 {dimension_numbers = #tpu.dot_dimension_numbers<[1], [0], [0], [1], [0, 0, 1, 1], [], []>} : vector<128x64xbf16>, vector<64x128xbf16>, vector<128x128xf32> -> vector<128x128xf32>
    %110 = arith.truncf %106 : vector<1x64xf32> to vector<1x64xbf16>
    %c0_48 = arith.constant 0 : index
    %c0_49 = arith.constant 0 : index
    %111 = vector.load %arg4[%c0_48, %c0_49] : memref<64x128xbf16, #tpu.memory_space<vmem>>, vector<64x128xbf16>
    %cst_50 = arith.constant dense<0.000000e+00> : vector<1x128xf32>
    %112 = tpu.matmul %110, %111, %cst_50 {dimension_numbers = #tpu.dot_dimension_numbers<[1], [0], [0], [1], [0, 0, 1, 1], [], []>} : vector<1x64xbf16>, vector<64x128xbf16>, vector<1x128xf32> -> vector<1x128xf32>
    %113 = arith.mulf %109, %109 : vector<128x128xf32>
    %cst_51 = arith.constant dense<0.000000e+00> : vector<128xf32>
    %114 = vector.multi_reduction <add>, %113, %cst_51 [0] : vector<128x128xf32> to vector<128xf32>
    %115 = vector.shape_cast %114 : vector<128xf32> to vector<1x128xf32>
    %cst_52 = arith.constant 1.280000e+02 : f32
    %116 = vector.broadcast %cst_52 : f32 to vector<1x128xf32>
    %117 = arith.divf %115, %116 : vector<1x128xf32>
    %118 = arith.mulf %112, %112 : vector<1x128xf32>
    %119 = arith.subf %117, %118 : vector<1x128xf32>
    %cst_53 = arith.constant 0.000000e+00 : f32
    %120 = vector.broadcast %cst_53 : f32 to vector<1x128xf32>
    %121 = arith.maximumf %119, %120 : vector<1x128xf32>
    %c6 = arith.constant 6 : index
    %c0_54 = arith.constant 0 : index
    %122 = vector.load %arg6[%c6, %c0_54] : memref<8x128xf32, #tpu.memory_space<vmem>>, vector<2x128xf32>
    %123 = vector.extract_strided_slice %122 {offsets = [0, 0], sizes = [1, 128], strides = [1, 1]} : vector<2x128xf32> to vector<1x128xf32>
    %cst_55 = arith.constant 9.99999974E-6 : f32
    %124 = vector.broadcast %cst_55 : f32 to vector<1x128xf32>
    %125 = arith.addf %121, %124 : vector<1x128xf32>
    %126 = math.rsqrt %125 : vector<1x128xf32>
    %127 = arith.mulf %123, %126 : vector<1x128xf32>
    %128 = vector.extract_strided_slice %122 {offsets = [1, 0], sizes = [1, 128], strides = [1, 1]} : vector<2x128xf32> to vector<1x128xf32>
    %129 = arith.mulf %112, %127 : vector<1x128xf32>
    %130 = arith.subf %128, %129 : vector<1x128xf32>
    %131 = vector.broadcast %127 : vector<1x128xf32> to vector<128x128xf32>
    %132 = arith.mulf %109, %131 : vector<128x128xf32>
    %133 = vector.broadcast %130 : vector<1x128xf32> to vector<128x128xf32>
    %134 = arith.addf %132, %133 : vector<128x128xf32>
    %cst_56 = arith.constant 0.000000e+00 : f32
    %135 = vector.broadcast %cst_56 : f32 to vector<128x128xf32>
    %136 = arith.maximumf %134, %135 : vector<128x128xf32>
    %137 = arith.truncf %136 : vector<128x128xf32> to vector<128x128xbf16>
    %c0_57 = arith.constant 0 : index
    %c0_58 = arith.constant 0 : index
    %138 = vector.load %arg5[%c0_57, %c0_58] : memref<128x784xbf16, #tpu.memory_space<vmem>>, vector<128x784xbf16>
    %cst_59 = arith.constant dense<0.000000e+00> : vector<128x784xf32>
    %139 = tpu.matmul %137, %138, %cst_59 {dimension_numbers = #tpu.dot_dimension_numbers<[1], [0], [0], [1], [0, 0, 1, 1], [], []>} : vector<128x128xbf16>, vector<128x784xbf16>, vector<128x784xf32> -> vector<128x784xf32>
    %c0_60 = arith.constant 0 : index
    %c0_61 = arith.constant 0 : index
    %140 = vector.load %arg7[%c0_60, %c0_61] : memref<1x784xf32, #tpu.memory_space<vmem>>, vector<1x784xf32>
    %141 = vector.broadcast %140 : vector<1x784xf32> to vector<128x784xf32>
    %142 = arith.addf %139, %141 : vector<128x784xf32>
    %cst_62 = arith.constant 0.000000e+00 : f32
    %143 = vector.broadcast %cst_62 : f32 to vector<128x784xf32>
    %144 = arith.subf %143, %142 : vector<128x784xf32>
    %145 = math.exp %144 : vector<128x784xf32>
    %cst_63 = arith.constant 1.000000e+00 : f32
    %146 = vector.broadcast %cst_63 : f32 to vector<128x784xf32>
    %147 = arith.addf %146, %145 : vector<128x784xf32>
    %148 = tpu.reciprocal %147 {approx = true} : vector<128x784xf32> -> vector<128x784xf32>
    %c0_64 = arith.constant 0 : index
    %c0_65 = arith.constant 0 : index
    %149 = vector.load %arg8[%c0_64, %c0_65] : memref<128x784xf32, #tpu.memory_space<vmem>>, vector<128x784xf32>
    tpu.vector_store %arg8[%c0_64, %c0_65], %148 {strides = array<i32>} : memref<128x784xf32, #tpu.memory_space<vmem>>, vector<128x784xf32>,
    return
  }
}

</mosaic_0001>

<bundles_post_ra>
// kernel: tpu_custom_call.1
= control target key start
LH: loop header
LB: loop body
LE: loop exit
PB: predicated region body
PF: predicated region fallthrough
CT: control target
= control target key end

     0   :  { %vm125_vm0 = vcmask 1044480   ;;  %vm46_vm1 = vcmask 80896   ;;  %v3804_v16 = vmov 0.0   ;;  %vm3805_vm2 = vmmov 0   ;;  %s5380_s1 = inlined_call_operand.vmem [shape: bf16[10,16], index: 1, kind: input, shape index: {}]   ;;  %s5381_s0 = inlined_call_operand.vmem [shape: f32[128,10], index: 0, kind: input, shape index: {}]   ;;  %s5382_s2 = inlined_call_operand.vmem [shape: bf16[16,32], index: 2, kind: input, shape index: {}]   ;;  %s5383_s6 = inlined_call_operand.vmem [shape: f32[8,128], index: 6, kind: input, shape index: {}]   ;;  %s5384_s3 = inlined_call_operand.vmem [shape: bf16[32,64], index: 3, kind: input, shape index: {}]   ;;  %s5385_s4 = inlined_call_operand.vmem [shape: bf16[64,128], index: 4, kind: input, shape index: {}]   ;;  %s5386_s5 = inlined_call_operand.vmem [shape: bf16[128,784], index: 5, kind: input, shape index: {}]   ;;  %s5387_s7 = inlined_call_operand.vmem [shape: f32[1,784], index: 7, kind: input, shape index: {}]   ;;  %s5388_s8 = inlined_call_operand.vmem [shape: f32[128,784], index: 8, kind: output, shape index: {}]  }
   0x1   :  { %v3259_v0 = vld [vmem:[%s5380_s1] sm:$0x1f]   ;;  %v31_v2 = vld [vmem:[%s5381_s0 + $0x8] sm:$0xff]  ;;  %v32_v3 = vld [vmem:[%s5381_s0 + $0x10] sm:$0xff]  ;;  %vm286_vm3 = vcmask 130048   ;;  %vm628_vm4 = vcmask 261120  }
   0x2   :  { %v30_v1 = vld [vmem:[%s5381_s0] sm:$0xff]  ;;  %3255 = vmatprep.subr.msk.bf16.mxu0 %vm125_vm0, %v3259_v0  ;;  %v127_v4 = vsel %vm125_vm0, %v3259_v0, 0  ;;  %v33_v5 = vld [vmem:[%s5381_s0 + $0x18] sm:$0xff]  ;;  %v48_v7 = vsel %vm46_vm1, %v31_v2, 0.0  ;;  %v50_v8 = vsel %vm46_vm1, %v32_v3, 0.0  ;;  %v35_v13 = vld [vmem:[%s5381_s0 + $0x28] sm:$0xff] }
   0x3   :  { %v47_v6 = vsel %vm46_vm1, %v30_v1, 0.0  ;;  %v34_v9 = vld [vmem:[%s5381_s0 + $0x20] sm:$0xff]  ;;  %3112 = vmatpush3.bf16.msra.mxu0 %v127_v4  ;;  %v86_v11 = vpack.c.bf16 %v31_v2, %v30_v1  ;;  %v87_v12 = vpack.c.bf16 %v33_v5, %v32_v3  ;;  %v52_v14 = vsel %vm46_vm1, %v33_v5, 0.0  ;;  %v36_v20 = vld [vmem:[%s5381_s0 + $0x30] sm:$0xff]  ;;  %v37_v21 = vld [vmem:[%s5381_s0 + $0x38] sm:$0xff] }
   0x4   :  { %v49_v10 = vadd.f32 %v48_v7, %v47_v6  ;;  %v88_v15 = vpack.c.bf16 %v35_v13, %v34_v9  ;;  %3129 = vmatprep.subr.bf16.mxu0 %v3804_v16  ;;  %v54_v18 = vsel %vm46_vm1, %v34_v9, 0.0  ;;  %v56_v22 = vsel %vm46_vm1, %v35_v13, 0.0  ;;  %v38_v23 = vld [vmem:[%s5381_s0 + $0x40] sm:$0xff]  ;;  %v39_v24 = vld [vmem:[%s5381_s0 + $0x48] sm:$0xff]  ;;  %v40_v34 = vld [vmem:[%s5381_s0 + $0x50] sm:$0xff] }
   0x5   :  { %3113 = vmatprep.mubr.msk.bf16.mxu0 %vm46_vm1, %v86_v11  ;;  %v58_v26 = vsel %vm46_vm1, %v36_v20, 0.0  ;;  %v89_v27 = vpack.c.bf16 %v37_v21, %v36_v20  ;;  %v90_v29 = vpack.c.bf16 %v39_v24, %v38_v23  ;;  %v60_v30 = vsel %vm46_vm1, %v37_v21, 0.0  ;;  %v41_v35 = vld [vmem:[%s5381_s0 + $0x58] sm:$0xff]  ;;  %v42_v37 = vld [vmem:[%s5381_s0 + $0x60] sm:$0xff]  ;;  %v43_v38 = vld [vmem:[%s5381_s0 + $0x68] sm:$0xff] }
   0x6   :  { %v51_v17 = vadd.f32 %v50_v8, %v49_v10  ;;  %3114 = vmatmul.mubr.msk.bf16.vlgmr.msra.gmra.mxu0 %vm46_vm1, %v87_v12  ;;  %v62_v32 = vsel %vm46_vm1, %v38_v23, 0.0  ;;  %v64_v36 = vsel %vm46_vm1, %v39_v24, 0.0  ;;  %v66_v40 = vsel %vm46_vm1, %v40_v34, 0.0  ;;  %v44_v48 = vld [vmem:[%s5381_s0 + $0x70] sm:$0xff]  ;;  %v45_v49 = vld [vmem:[%s5381_s0 + $0x78] sm:$0xff]  ;;  %v3260_v2 = vld [vmem:[%s5382_s2] sm:$0xff]  }
   0x7   :  { %3117 = vmatprep.mubr.msk.bf16.mxu0 %vm46_vm1, %v88_v15  ;;  %3130 = vmatpush3.bf16.msra.mxu0 %v127_v4  ;;  %v91_v41 = vpack.c.bf16 %v41_v35, %v40_v34  ;;  %v92_v43 = vpack.c.bf16 %v43_v38, %v42_v37  ;;  %v68_v44 = vsel %vm46_vm1, %v41_v35, 0.0  ;;  %v70_v46 = vsel %vm46_vm1, %v42_v37, 0.0 }
   0x8   :  { %v53_v19 = vadd.f32 %v52_v14, %v51_v17  ;;  %3153 = vmatprep.subr.bf16.mxu0 %v3804_v16  ;;  %v72_v50 = vsel %vm46_vm1, %v43_v38, 0.0  ;;  %v74_v52 = vsel %vm46_vm1, %v44_v48, 0.0  ;;  %v93_v53 = vpack.c.bf16 %v45_v49, %v44_v48  ;;  %3135 = vmatprep.subr.bf16.mxu1 %v3260_v2 }
   0x9   :  { %v76_v55 = vsel %vm46_vm1, %v45_v49, 0.0  ;;  %3136 = vmatpush3.bf16.msra.mxu1 %v3260_v2  ;;  %vm978_vm5 = vcmask 523264  }
   0xa   :  { %v55_v25 = vadd.f32 %v54_v18, %v53_v19  ;;  %3179 = vmatprep.subr.bf16.mxu1 %v3804_v16 }
   0xc   :  { %v57_v28 = vadd.f32 %v56_v22, %v55_v25 }
   0xe   :  { %v59_v31 = vadd.f32 %v58_v26, %v57_v28  ;;  %3118 = vmatmul.mubr.msk.bf16.gmra.mxu0 %vm46_vm1, %v89_v27 }
   0xf   :  { %3121 = vmatprep.mubr.msk.bf16.mxu0 %vm46_vm1, %v90_v29 }
  0x10   :  { %v61_v33 = vadd.f32 %v60_v30, %v59_v31 }
  0x12   :  { %v63_v39 = vadd.f32 %v62_v32, %v61_v33 }
  0x14   :  { %v65_v42 = vadd.f32 %v64_v36, %v63_v39 }
  0x16   :  { %v67_v45 = vadd.f32 %v66_v40, %v65_v42  ;;  %3122 = vmatmul.mubr.msk.bf16.gmra.mxu0 %vm46_vm1, %v91_v41 }
  0x17   :  { %3125 = vmatprep.mubr.msk.bf16.mxu0 %vm46_vm1, %v92_v43 }
  0x18   :  { %v69_v47 = vadd.f32 %v68_v44, %v67_v45 }
  0x1a   :  { %v71_v51 = vadd.f32 %v70_v46, %v69_v47 }
  0x1c   :  { %v73_v54 = vadd.f32 %v72_v50, %v71_v51 }
  0x1e   :  { %v75_v56 = vadd.f32 %v74_v52, %v73_v54  ;;  %3126 = vmatmul.mubr.msk.bf16.gmra.mxu0 %vm46_vm1, %v93_v53 }
  0x1f   :  { %3131 = vmatprep.mubr.msk.bf16.mxu0 %vm3805_vm2, %v3804_v16 }
  0x20   :  { %v77_v57 = vadd.f32 %v76_v55, %v75_v56 }
  0x22   :  { %v78_v58 = vrot.slane %v77_v57, 4 }
  0x24   :  { %v79_v59 = vadd.f32 %v78_v58, %v77_v57 }
  0x26   :  { %v80_v60 = vrot.slane %v79_v59, 2 }
  0x28   :  { %v81_v61 = vadd.f32 %v80_v60, %v79_v59 }
  0x2a   :  { %v82_v62 = vrot.slane %v81_v61, 1 }
  0x2c   :  { %v83_v63 = vadd.f32 %v82_v62, %v81_v61 }
  0x2e   :  { %v85_v0 = vmul.f32 0.0078125, %v83_v63 }
  0x30   :  { %v226_v1 = vpack.c.bf16 %v85_v0, %v85_v0 }
  0x32   :  { %3132 = vmatmul.mubr.msk.bf16.vlgmr.msra.gmra.mxu0 %vm46_vm1, %v226_v1 }
  0x33   :  { %3155 = vmatprep.mubr.msk.bf16.mxu0 %vm3805_vm2, %v3804_v16  ;;  %3154 = vmatpush3.bf16.msra.mxu0 %v3260_v2 }
  0xc6   :  { %v3938_v3 = vpop.f32.mrf.mxu0 }
  0xc7   :  { %v272_v8 = vmul.f32 %v3938_v3, %v3938_v3 }
  0xc8   :  { %v3940_v4 = vpop.f32.mrf.mxu0 }
  0xc9   :  { %v270_v6 = vmul.f32 %v3940_v4, %v3940_v4  ;;  %v290_v17 = vsel %vm286_vm3, %v272_v8, 0.0 }
  0xca   :  { %v3942_v5 = vpop.f32.mrf.mxu0 }
  0xcb   :  { %v287_v11 = vsel %vm286_vm3, %v270_v6, 0.0  ;;  %v273_v12 = vmul.f32 %v3942_v5, %v3942_v5 }
  0xcc   :  { %v3946_v7 = vpop.f32.mrf.mxu0 }
  0xcd   :  { %v271_v9 = vmul.f32 %v3946_v7, %v3946_v7  ;;  %v292_v21 = vsel %vm286_vm3, %v273_v12, 0.0 }
  0xce   :  { %v3952_v10 = vpop.f32.mrf.mxu0 }
  0xcf   :  { %v288_v13 = vsel %vm286_vm3, %v271_v9, 0.0  ;;  %v276_v24 = vmul.f32 %v3952_v10, %v3952_v10 }
  0xd0   :  { %v289_v14 = vadd.f32 %v288_v13, %v287_v11  ;;  %v3958_v15 = vpop.f32.mrf.mxu0 }
  0xd1   :  { %v274_v18 = vmul.f32 %v3958_v15, %v3958_v15  ;;  %v298_v33 = vsel %vm286_vm3, %v276_v24, 0.0 }
  0xd2   :  { %v291_v19 = vadd.f32 %v290_v17, %v289_v14  ;;  %v3963_v20 = vpop.f32.mrf.mxu0 }
  0xd3   :  { %v294_v25 = vsel %vm286_vm3, %v274_v18, 0.0  ;;  %v277_v29 = vmul.f32 %v3963_v20, %v3963_v20 }
  0xd4   :  { %v293_v22 = vadd.f32 %v292_v21, %v291_v19  ;;  %v3966_v23 = vpop.f32.mrf.mxu0 }
  0xd5   :  { %v275_v26 = vmul.f32 %v3966_v23, %v3966_v23  ;;  %v300_v37 = vsel %vm286_vm3, %v277_v29, 0.0 }
  0xd6   :  { %v295_v27 = vadd.f32 %v294_v25, %v293_v22  ;;  %v3973_v28 = vpop.f32.mrf.mxu0 }
  0xd7   :  { %v296_v30 = vsel %vm286_vm3, %v275_v26, 0.0  ;;  %v280_v40 = vmul.f32 %v3973_v28, %v3973_v28 }
  0xd8   :  { %v297_v31 = vadd.f32 %v296_v30, %v295_v27  ;;  %v3978_v32 = vpop.f32.mrf.mxu0  ;;  %v337_v27 = vlaneseq  ;;  %v328_v30 = vld [vmem:[%s5383_s6] sm:$0x3] }
  0xd9   :  { %v278_v34 = vmul.f32 %v3978_v32, %v3978_v32  ;;  %v306_v49 = vsel %vm286_vm3, %v280_v40, 0.0 }
  0xda   :  { %v299_v35 = vadd.f32 %v298_v33, %v297_v31  ;;  %v3983_v36 = vpop.f32.mrf.mxu0  ;;  %v4018_v29 = vshrl.u32 %v337_v27, 7 }
  0xdb   :  { %v302_v41 = vsel %vm286_vm3, %v278_v34, 0.0  ;;  %v281_v45 = vmul.f32 %v3983_v36, %v3983_v36 }
  0xdc   :  { %v301_v38 = vadd.f32 %v300_v37, %v299_v35  ;;  %v3986_v39 = vpop.f32.mrf.mxu0  ;;  %v4024_v33 = vsub.s32 0, %v4018_v29  ;;  %v4030_v40 = vsub.s32 1, %v4018_v29 }
  0xdd   :  { %v279_v42 = vmul.f32 %v3986_v39, %v3986_v39  ;;  %v308_v53 = vsel %vm286_vm3, %v281_v45, 0.0 }
  0xde   :  { %v303_v43 = vadd.f32 %v302_v41, %v301_v38  ;;  %v3993_v44 = vpop.f32.mrf.mxu0 }
  0xdf   :  { %v304_v46 = vsel %vm286_vm3, %v279_v42, 0.0  ;;  %v284_v56 = vmul.f32 %v3993_v44, %v3993_v44 }
  0xe0   :  { %v305_v47 = vadd.f32 %v304_v46, %v303_v43  ;;  %v3998_v48 = vpop.f32.mrf.mxu0 }
  0xe1   :  { %v282_v50 = vmul.f32 %v3998_v48, %v3998_v48  ;;  %v314_v63 = vsel %vm286_vm3, %v284_v56, 0.0 }
  0xe2   :  { %v307_v51 = vadd.f32 %v306_v49, %v305_v47  ;;  %v4003_v52 = vpop.f32.mrf.mxu0 }
  0xe3   :  { %v310_v57 = vsel %vm286_vm3, %v282_v50, 0.0  ;;  %v285_v60 = vmul.f32 %v4003_v52, %v4003_v52 }
  0xe4   :  { %v309_v54 = vadd.f32 %v308_v53, %v307_v51  ;;  %v4006_v55 = vpop.f32.mrf.mxu0 }
  0xe5   :  { %v283_v58 = vmul.f32 %v4006_v55, %v4006_v55  ;;  %v316_v1 = vsel %vm286_vm3, %v285_v60, 0.0 }
  0xe6   :  { %v311_v59 = vadd.f32 %v310_v57, %v309_v54 }
  0xe7   :  { %v312_v61 = vsel %vm286_vm3, %v283_v58, 0.0 }
  0xe8   :  { %v313_v62 = vadd.f32 %v312_v61, %v311_v59 }
  0xea   :  { %v315_v0 = vadd.f32 %v314_v63, %v313_v62 }
  0xec   :  { %v317_v2 = vadd.f32 %v316_v1, %v315_v0 }
  0xee   :  { %v318_v6 = vrot.slane %v317_v2, 4 }
  0xf0   :  { %v319_v8 = vadd.f32 %v318_v6, %v317_v2 }
  0xf2   :  { %v264_v9 = vpop.f32.mrf.mxu0  ;;  %v320_v11 = vrot.slane %v319_v8, 2 }
  0xf3   :  { %v325_v21 = vmul.f32 %v264_v9, %v264_v9 }
  0xf4   :  { %v3133_v12 = vpop.f32.mrf.mxu0  ;;  %v321_v13 = vadd.f32 %v320_v11, %v319_v8 }
  0xf6   :  { %v267_v14 = vpop.f32.mrf.mxu0  ;;  %v322_v17 = vrot.slane %v321_v13, 1 }
  0xf8   :  { %v3134_v18 = vpop.f32.mrf.mxu0  ;;  %v323_v19 = vadd.f32 %v322_v17, %v321_v13 }
  0xfa   :  { %v324_v22 = vmul.f32 0.0078125, %v323_v19 }
  0xfc   :  { %v326_v24 = vsub.f32 %v324_v22, %v325_v21 }
  0xfe   :  { %v327_v25 = vmax.f32 %v326_v24, 0.0 }
 0x100   :  { %v329_v26 = vadd.f32 1e-05, %v327_v25 }
 0x102   :  { %3347 = vrsqrt.f32 %v329_v26 }
 0x10f   :  { %v3348_v31 = vpop.eup %3347 }
 0x110   :  { %v331_v34 = vmul.f32 %v3348_v31, %v328_v30 }
 0x112   :  { %v332_v35 = vmul.f32 %v331_v34, %v264_v9  ;;  %v4027_v37 = vrot.slane %v331_v34, %v4024_v33 }
 0x114   :  { %v334_v38 = vrot.slane %v332_v35, 7  ;;  %v341_v42 = vmul.f32 %v4027_v37, %v3940_v4  ;;  %v342_v43 = vmul.f32 %v4027_v37, %v3946_v7  ;;  %v343_v45 = vmul.f32 %v3938_v3, %v4027_v37 }
 0x115   :  { %v344_v46 = vmul.f32 %v3942_v5, %v4027_v37  ;;  %v345_v49 = vmul.f32 %v4027_v37, %v3958_v15  ;;  %v346_v50 = vmul.f32 %v4027_v37, %v3966_v23  ;;  %v347_v4 = vmul.f32 %v3952_v10, %v4027_v37 }
 0x116   :  { %v336_v41 = vsub.f32 %v328_v30, %v334_v38  ;;  %v348_v7 = vmul.f32 %v3963_v20, %v4027_v37  ;;  %v349_v3 = vmul.f32 %v4027_v37, %v3978_v32  ;;  %v350_v5 = vmul.f32 %v4027_v37, %v3986_v39 }
 0x117   :  { %v351_v51 = vmul.f32 %v3973_v28, %v4027_v37  ;;  %v352_v61 = vmul.f32 %v3983_v36, %v4027_v37  ;;  %v353_v62 = vmul.f32 %v4027_v37, %v3998_v48  ;;  %v354_v2 = vmul.f32 %v4027_v37, %v4006_v55 }
 0x118   :  { %v4041_v47 = vrot.slane %v336_v41, %v4030_v40  ;;  %v355_v11 = vmul.f32 %v3993_v44, %v4027_v37 }
 0x11a   :  { %v361_v15 = vadd.f32 %v4041_v47, %v341_v42  ;;  %v362_v53 = vadd.f32 %v4041_v47, %v342_v43  ;;  %v363_v23 = vadd.f32 %v4041_v47, %v343_v45  ;;  %v364_v10 = vadd.f32 %v4041_v47, %v344_v46 }
 0x11b   :  { %v365_v54 = vadd.f32 %v4041_v47, %v345_v49  ;;  %v366_v20 = vadd.f32 %v4041_v47, %v346_v50  ;;  %v367_v32 = vadd.f32 %v4041_v47, %v347_v4  ;;  %v368_v56 = vadd.f32 %v4041_v47, %v348_v7 }
 0x11c   :  { %v377_v39 = vmax.f32 %v361_v15, 0.0  ;;  %v378_v57 = vmax.f32 %v362_v53, 0.0  ;;  %v379_v58 = vmax.f32 %v363_v23, 0.0  ;;  %v380_v28 = vmax.f32 %v364_v10, 0.0 }
 0x11d   :  { %v381_v59 = vmax.f32 %v365_v54, 0.0  ;;  %v382_v60 = vmax.f32 %v366_v20, 0.0  ;;  %v383_v9 = vmax.f32 %v367_v32, 0.0  ;;  %v384_v13 = vmax.f32 %v368_v56, 0.0 }
 0x11e   :  { %v393_v63 = vsel %vm286_vm3, %v377_v39, 0.0  ;;  %v394_v0 = vsel %vm286_vm3, %v378_v57, 0.0  ;;  %v431_v1 = vpack.c.bf16 %v378_v57, %v377_v39  ;;  %v432_v8 = vpack.c.bf16 %v380_v28, %v379_v58 }
 0x11f   :  { %v395_v6 = vadd.f32 %v394_v0, %v393_v63  ;;  %v396_v12 = vsel %vm286_vm3, %v379_v58, 0.0  ;;  %v398_v36 = vsel %vm286_vm3, %v380_v28, 0.0  ;;  %v433_v48 = vpack.c.bf16 %v382_v60, %v381_v59 }
 0x120   :  { %3137 = vmatprep.mubr.msk.bf16.mxu1 %vm286_vm3, %v431_v1  ;;  %v400_v17 = vsel %vm286_vm3, %v381_v59, 0.0  ;;  %v369_v55 = vadd.f32 %v4041_v47, %v349_v3  ;;  %v370_v18 = vadd.f32 %v4041_v47, %v350_v5  ;;  %v371_v44 = vadd.f32 %v4041_v47, %v351_v51 }
 0x121   :  { %v397_v14 = vadd.f32 %v396_v12, %v395_v6  ;;  %3138 = vmatmul.mubr.msk.bf16.vlgmr.msra.gmra.mxu1 %vm286_vm3, %v432_v8  ;;  %v372_v19 = vadd.f32 %v4041_v47, %v352_v61  ;;  %v373_v21 = vadd.f32 %v4041_v47, %v353_v62  ;;  %v374_v22 = vadd.f32 %v4041_v47, %v354_v2  ;;  %v3261_v12 = vld [vmem:[%s5384_s3 + $0x8] sm:$0xff]  }
 0x122   :  { %3141 = vmatprep.mubr.msk.bf16.mxu1 %vm286_vm3, %v433_v48  ;;  %v385_v25 = vmax.f32 %v369_v55, 0.0  ;;  %v386_v26 = vmax.f32 %v370_v18, 0.0  ;;  %v375_v27 = vadd.f32 %v4041_v47, %v355_v11  ;;  %v387_v30 = vmax.f32 %v371_v44, 0.0  ;;  %3159 = vmatprep.subr.bf16.mxu0 %v3261_v12 }
 0x123   :  { %v399_v24 = vadd.f32 %v398_v36, %v397_v14  ;;  %v388_v31 = vmax.f32 %v372_v19, 0.0  ;;  %v389_v34 = vmax.f32 %v373_v21, 0.0  ;;  %v390_v35 = vmax.f32 %v374_v22, 0.0  ;;  %v3262_v36 = vld [vmem:[%s5384_s3] sm:$0xff]   ;;  %3180 = vmatpush3.bf16.msra.mxu1 %v3261_v12 }
 0x124   :  { %v435_v41 = vpack.c.bf16 %v386_v26, %v385_v25  ;;  %v356_v42 = vmul.f32 %v4003_v52, %v4027_v37  ;;  %v402_v43 = vsel %vm286_vm3, %v382_v60, 0.0  ;;  %v434_v49 = vpack.c.bf16 %v384_v13, %v383_v9  ;;  %3181 = vmatprep.subr.bf16.mxu1 %v3804_v16 }
 0x125   :  { %v401_v38 = vadd.f32 %v400_v17, %v399_v24  ;;  %v436_v45 = vpack.c.bf16 %v388_v31, %v387_v30  ;;  %v437_v50 = vpack.c.bf16 %v390_v35, %v389_v34  ;;  %v404_v7 = vsel %vm286_vm3, %v383_v9, 0.0 }
 0x126   :  { %v376_v4 = vadd.f32 %v4041_v47, %v356_v42  ;;  %v391_v3 = vmax.f32 %v375_v27, 0.0  ;;  %v406_v15 = vsel %vm286_vm3, %v384_v13, 0.0  ;;  %v408_v53 = vsel %vm286_vm3, %v385_v25, 0.0 }
 0x127   :  { %v403_v46 = vadd.f32 %v402_v43, %v401_v38  ;;  %v410_v10 = vsel %vm286_vm3, %v386_v26, 0.0  ;;  %v412_v47 = vsel %vm286_vm3, %v387_v30, 0.0  ;;  %v414_v32 = vsel %vm286_vm3, %v388_v31, 0.0  ;;  %3182 = vmatpush3.bf16.msra.mxu1 %v3262_v36 }
 0x128   :  { %v392_v51 = vmax.f32 %v376_v4, 0.0  ;;  %v416_v39 = vsel %vm286_vm3, %v389_v34, 0.0  ;;  %v418_v58 = vsel %vm286_vm3, %v390_v35, 0.0  ;;  %v420_v59 = vsel %vm286_vm3, %v391_v3, 0.0 }
 0x129   :  { %v405_v5 = vadd.f32 %v404_v7, %v403_v46  ;;  %3142 = vmatmul.mubr.msk.bf16.gmra.mxu1 %vm286_vm3, %v434_v49 }
 0x12a   :  { %3145 = vmatprep.mubr.msk.bf16.mxu1 %vm286_vm3, %v435_v41  ;;  %v438_v37 = vpack.c.bf16 %v392_v51, %v391_v3  ;;  %v422_v61 = vsel %vm286_vm3, %v392_v51, 0.0 }
 0x12b   :  { %v407_v52 = vadd.f32 %v406_v15, %v405_v5 }
 0x12d   :  { %v409_v23 = vadd.f32 %v408_v53, %v407_v52 }
 0x12f   :  { %v411_v54 = vadd.f32 %v410_v10, %v409_v23 }
 0x131   :  { %v413_v20 = vadd.f32 %v412_v47, %v411_v54  ;;  %3146 = vmatmul.mubr.msk.bf16.gmra.mxu1 %vm286_vm3, %v436_v45 }
 0x132   :  { %3149 = vmatprep.mubr.msk.bf16.mxu1 %vm286_vm3, %v437_v50 }
 0x133   :  { %v415_v56 = vadd.f32 %v414_v32, %v413_v20 }
 0x135   :  { %v417_v57 = vadd.f32 %v416_v39, %v415_v56 }
 0x137   :  { %v419_v28 = vadd.f32 %v418_v58, %v417_v57 }
 0x139   :  { %v421_v60 = vadd.f32 %v420_v59, %v419_v28  ;;  %3150 = vmatmul.mubr.msk.bf16.gmra.mxu1 %vm286_vm3, %v438_v37 }
 0x13a   :  { %3183 = vmatprep.mubr.msk.bf16.mxu1 %vm3805_vm2, %v3804_v16 }
 0x13b   :  { %v423_v62 = vadd.f32 %v422_v61, %v421_v60 }
 0x13d   :  { %v424_v63 = vrot.slane %v423_v62, 4 }
 0x13f   :  { %v425_v0 = vadd.f32 %v424_v63, %v423_v62 }
 0x141   :  { %v426_v1 = vrot.slane %v425_v0, 2 }
 0x143   :  { %v427_v2 = vadd.f32 %v426_v1, %v425_v0 }
 0x145   :  { %v428_v6 = vrot.slane %v427_v2, 1 }
 0x147   :  { %v429_v8 = vadd.f32 %v428_v6, %v427_v2 }
 0x149   :  { %v430_v9 = vmul.f32 0.0078125, %v429_v8 }
 0x14b   :  { %v568_v11 = vpack.c.bf16 %v430_v9, %v430_v9 }
 0x14d   :  { %3156 = vmatmul.mubr.msk.bf16.vlgmr.msra.gmra.mxu0 %vm286_vm3, %v568_v11 }
 0x14e   :  { %3160 = vmatpush3.bf16.msra.mxu0 %v3261_v12 }
 0x14f   :  { %3161 = vmatprep.subr.bf16.mxu0 %v3262_v36 }
 0x152   :  { %3162 = vmatpush3.bf16.msra.mxu0 %v3262_v36 }
 0x153   :  { %3211 = vmatprep.subr.bf16.mxu0 %v3804_v16 }
 0x1e1   :  { %v4118_v48 = vpop.f32.mrf.mxu1 }
 0x1e2   :  { %v614_v18 = vmul.f32 %v4118_v48, %v4118_v48 }
 0x1e3   :  { %v4120_v13 = vpop.f32.mrf.mxu1 }
 0x1e4   :  { %v612_v17 = vmul.f32 %v4120_v13, %v4120_v13  ;;  %v632_v27 = vsel %vm628_vm4, %v614_v18, 0.0 }
 0x1e5   :  { %v4122_v14 = vpop.f32.mrf.mxu1 }
 0x1e6   :  { %v629_v21 = vsel %vm628_vm4, %v612_v17, 0.0  ;;  %v615_v22 = vmul.f32 %v4122_v14, %v4122_v14 }
 0x1e7   :  { %v4126_v55 = vpop.f32.mrf.mxu1 }
 0x1e8   :  { %v613_v44 = vmul.f32 %v4126_v55, %v4126_v55  ;;  %v634_v35 = vsel %vm628_vm4, %v615_v22, 0.0 }
 0x1e9   :  { %v4132_v19 = vpop.f32.mrf.mxu1 }
 0x1ea   :  { %v630_v24 = vsel %vm628_vm4, %v613_v44, 0.0  ;;  %v618_v42 = vmul.f32 %v4132_v19, %v4132_v19 }
 0x1eb   :  { %v631_v25 = vadd.f32 %v630_v24, %v629_v21  ;;  %v4138_v26 = vpop.f32.mrf.mxu1 }
 0x1ec   :  { %v616_v30 = vmul.f32 %v4138_v26, %v4138_v26  ;;  %v640_v5 = vsel %vm628_vm4, %v618_v42, 0.0 }
 0x1ed   :  { %v633_v31 = vadd.f32 %v632_v27, %v631_v25  ;;  %v4143_v34 = vpop.f32.mrf.mxu1 }
 0x1ee   :  { %v636_v43 = vsel %vm628_vm4, %v616_v30, 0.0  ;;  %v619_v50 = vmul.f32 %v4143_v34, %v4143_v34 }
 0x1ef   :  { %v635_v38 = vadd.f32 %v634_v35, %v633_v31  ;;  %v4146_v41 = vpop.f32.mrf.mxu1 }
 0x1f0   :  { %v617_v45 = vmul.f32 %v4146_v41, %v4146_v41  ;;  %v642_v37 = vsel %vm628_vm4, %v619_v50, 0.0 }
 0x1f1   :  { %v637_v46 = vadd.f32 %v636_v43, %v635_v38  ;;  %v4153_v49 = vpop.f32.mrf.mxu1 }
 0x1f2   :  { %v638_v4 = vsel %vm628_vm4, %v617_v45, 0.0  ;;  %v622_v10 = vmul.f32 %v4153_v49, %v4153_v49 }
 0x1f3   :  { %v639_v7 = vadd.f32 %v638_v4, %v637_v46  ;;  %v4158_v3 = vpop.f32.mrf.mxu1 }
 0x1f4   :  { %v620_v51 = vmul.f32 %v4158_v3, %v4158_v3  ;;  %v648_v28 = vsel %vm628_vm4, %v622_v10, 0.0 }
 0x1f5   :  { %v641_v15 = vadd.f32 %v640_v5, %v639_v7  ;;  %v4163_v52 = vpop.f32.mrf.mxu1  ;;  %v670_v7 = vld [vmem:[%s5383_s6 + $0x2] sm:$0x3] }
 0x1f6   :  { %v644_v54 = vsel %vm628_vm4, %v620_v51, 0.0  ;;  %v623_v56 = vmul.f32 %v4163_v52, %v4163_v52 }
 0x1f7   :  { %v643_v53 = vadd.f32 %v642_v37, %v641_v15  ;;  %v4166_v23 = vpop.f32.mrf.mxu1 }
 0x1f8   :  { %v621_v47 = vmul.f32 %v4166_v23, %v4166_v23  ;;  %v650_v62 = vsel %vm628_vm4, %v623_v56, 0.0 }
 0x1f9   :  { %v645_v20 = vadd.f32 %v644_v54, %v643_v53  ;;  %v4173_v32 = vpop.f32.mrf.mxu1 }
 0x1fa   :  { %v646_v39 = vsel %vm628_vm4, %v621_v47, 0.0  ;;  %v626_v1 = vmul.f32 %v4173_v32, %v4173_v32 }
 0x1fb   :  { %v647_v57 = vadd.f32 %v646_v39, %v645_v20  ;;  %v4178_v58 = vpop.f32.mrf.mxu1 }
 0x1fc   :  { %v624_v59 = vmul.f32 %v4178_v58, %v4178_v58  ;;  %v656_v36 = vsel %vm628_vm4, %v626_v1, 0.0 }
 0x1fd   :  { %v649_v60 = vadd.f32 %v648_v28, %v647_v57  ;;  %v4183_v61 = vpop.f32.mrf.mxu1 }
 0x1fe   :  { %v652_v2 = vsel %vm628_vm4, %v624_v59, 0.0  ;;  %v627_v9 = vmul.f32 %v4183_v61, %v4183_v61 }
 0x1ff   :  { %v651_v63 = vadd.f32 %v650_v62, %v649_v60  ;;  %v4186_v0 = vpop.f32.mrf.mxu1 }
 0x200   :  { %v625_v6 = vmul.f32 %v4186_v0, %v4186_v0  ;;  %v658_v18 = vsel %vm628_vm4, %v627_v9, 0.0 }
 0x201   :  { %v653_v8 = vadd.f32 %v652_v2, %v651_v63 }
 0x202   :  { %v654_v11 = vsel %vm628_vm4, %v625_v6, 0.0 }
 0x203   :  { %v655_v12 = vadd.f32 %v654_v11, %v653_v8 }
 0x205   :  { %v657_v17 = vadd.f32 %v656_v36, %v655_v12 }
 0x207   :  { %v659_v44 = vadd.f32 %v658_v18, %v657_v17 }
 0x209   :  { %v660_v21 = vrot.slane %v659_v44, 4 }
 0x20b   :  { %v661_v22 = vadd.f32 %v660_v21, %v659_v44 }
 0x20d   :  { %v606_v24 = vpop.f32.mrf.mxu0  ;;  %v662_v25 = vrot.slane %v661_v22, 2 }
 0x20e   :  { %v667_v45 = vmul.f32 %v606_v24, %v606_v24 }
 0x20f   :  { %v663_v27 = vadd.f32 %v662_v25, %v661_v22  ;;  %v3157_v30 = vpop.f32.mrf.mxu0 }
 0x211   :  { %v664_v31 = vrot.slane %v663_v27, 1  ;;  %v609_v35 = vpop.f32.mrf.mxu0 }
 0x213   :  { %v665_v38 = vadd.f32 %v664_v31, %v663_v27  ;;  %v3158_v42 = vpop.f32.mrf.mxu0 }
 0x215   :  { %v666_v43 = vmul.f32 0.0078125, %v665_v38 }
 0x217   :  { %v668_v46 = vsub.f32 %v666_v43, %v667_v45 }
 0x219   :  { %v669_v50 = vmax.f32 %v668_v46, 0.0 }
 0x21b   :  { %v671_v4 = vadd.f32 1e-05, %v669_v50 }
 0x21d   :  { %3349 = vrsqrt.f32 %v671_v4 }
 0x22a   :  { %v3350_v5 = vpop.eup %3349 }
 0x22b   :  { %v673_v51 = vmul.f32 %v3350_v5, %v670_v7 }
 0x22d   :  { %v674_v15 = vmul.f32 %v673_v51, %v606_v24  ;;  %v682_v37 = vrot.slane %v673_v51, %v4024_v33 }
 0x22f   :  { %v676_v53 = vrot.slane %v674_v15, 7  ;;  %v683_v54 = vmul.f32 %v682_v37, %v4120_v13  ;;  %v684_v20 = vmul.f32 %v682_v37, %v4126_v55  ;;  %v685_v56 = vmul.f32 %v4118_v48, %v682_v37 }
 0x230   :  { %v686_v39 = vmul.f32 %v4122_v14, %v682_v37  ;;  %v687_v57 = vmul.f32 %v682_v37, %v4138_v26  ;;  %v688_v28 = vmul.f32 %v682_v37, %v4146_v41  ;;  %v689_v48 = vmul.f32 %v4132_v19, %v682_v37 }
 0x231   :  { %v678_v10 = vsub.f32 %v670_v7, %v676_v53  ;;  %v690_v8 = vmul.f32 %v4143_v34, %v682_v37  ;;  %v691_v9 = vmul.f32 %v682_v37, %v4158_v3  ;;  %v692_v21 = vmul.f32 %v682_v37, %v4166_v23 }
 0x232   :  { %v693_v3 = vmul.f32 %v4153_v49, %v682_v37  ;;  %v694_v24 = vmul.f32 %v4163_v52, %v682_v37  ;;  %v697_v31 = vmul.f32 %v4173_v32, %v682_v37  ;;  %v698_v51 = vmul.f32 %v4183_v61, %v682_v37 }
 0x233   :  { %v4204_v47 = vrot.slane %v678_v10, %v4030_v40  ;;  %v695_v10 = vmul.f32 %v682_v37, %v4178_v58 }
 0x235   :  { %v703_v59 = vadd.f32 %v4204_v47, %v683_v54  ;;  %v704_v60 = vadd.f32 %v4204_v47, %v684_v20  ;;  %v705_v62 = vadd.f32 %v4204_v47, %v685_v56  ;;  %v706_v13 = vadd.f32 %v4204_v47, %v686_v39 }
 0x236   :  { %v707_v63 = vadd.f32 %v4204_v47, %v687_v57  ;;  %v708_v55 = vadd.f32 %v4204_v47, %v688_v28  ;;  %v709_v17 = vadd.f32 %v4204_v47, %v689_v48  ;;  %v710_v19 = vadd.f32 %v4204_v47, %v690_v8 }
 0x237   :  { %v719_v1 = vmax.f32 %v703_v59, 0.0  ;;  %v720_v14 = vmax.f32 %v704_v60, 0.0  ;;  %v721_v2 = vmax.f32 %v705_v62, 0.0  ;;  %v722_v26 = vmax.f32 %v706_v13, 0.0 }
 0x238   :  { %v723_v6 = vmax.f32 %v707_v63, 0.0  ;;  %v724_v41 = vmax.f32 %v708_v55, 0.0  ;;  %v711_v27 = vadd.f32 %v4204_v47, %v691_v9  ;;  %v712_v30 = vadd.f32 %v4204_v47, %v692_v21 }
 0x239   :  { %v735_v11 = vsel %vm628_vm4, %v719_v1, 0.0  ;;  %v736_v12 = vsel %vm628_vm4, %v720_v14, 0.0  ;;  %v773_v36 = vpack.c.bf16 %v720_v14, %v719_v1  ;;  %v774_v44 = vpack.c.bf16 %v722_v26, %v721_v2 }
 0x23a   :  { %v737_v18 = vadd.f32 %v736_v12, %v735_v11  ;;  %v738_v22 = vsel %vm628_vm4, %v721_v2, 0.0  ;;  %v775_v34 = vpack.c.bf16 %v724_v41, %v723_v6  ;;  %v740_v23 = vsel %vm628_vm4, %v722_v26, 0.0 }
 0x23b   :  { %3163 = vmatprep.mubr.msk.bf16.mxu0 %vm628_vm4, %v773_v36  ;;  %v725_v35 = vmax.f32 %v709_v17, 0.0  ;;  %v713_v38 = vadd.f32 %v4204_v47, %v693_v3  ;;  %v714_v49 = vadd.f32 %v4204_v47, %v694_v24  ;;  %v726_v52 = vmax.f32 %v710_v19, 0.0 }
 0x23c   :  { %3164 = vmatmul.mubr.msk.bf16.vlgmr.msra.gmra.mxu0 %vm628_vm4, %v774_v44  ;;  %v739_v25 = vadd.f32 %v738_v22, %v737_v18  ;;  %v727_v43 = vmax.f32 %v711_v27, 0.0  ;;  %v728_v45 = vmax.f32 %v712_v30, 0.0  ;;  %v742_v46 = vsel %vm628_vm4, %v723_v6, 0.0  ;;  %v3263_v30 = vld [vmem:[%s5385_s4 + $0x18] sm:$0xff]  }
 0x23d   :  { %3167 = vmatprep.mubr.msk.bf16.mxu0 %vm628_vm4, %v775_v34  ;;  %v729_v50 = vmax.f32 %v713_v38, 0.0  ;;  %v730_v4 = vmax.f32 %v714_v49, 0.0  ;;  %v717_v7 = vadd.f32 %v4204_v47, %v697_v31  ;;  %v744_v15 = vsel %vm628_vm4, %v724_v41, 0.0  ;;  %v3264_v31 = vld [vmem:[%s5385_s4 + $0x10] sm:$0xff]   ;;  %3187 = vmatprep.subr.bf16.mxu1 %v3263_v30 }
 0x23e   :  { %v741_v42 = vadd.f32 %v740_v23, %v739_v25  ;;  %v777_v5 = vpack.c.bf16 %v728_v45, %v727_v43  ;;  %v696_v54 = vmul.f32 %v682_v37, %v4186_v0  ;;  %v776_v56 = vpack.c.bf16 %v726_v52, %v725_v35  ;;  %3212 = vmatpush3.bf16.msra.mxu0 %v3263_v30  ;;  %v3265_v23 = vld [vmem:[%s5385_s4 + $0x8] sm:$0xff]  }
 0x23f   :  { %v778_v53 = vpack.c.bf16 %v730_v4, %v729_v50  ;;  %v718_v39 = vadd.f32 %v4204_v47, %v698_v51  ;;  %v746_v57 = vsel %vm628_vm4, %v725_v35, 0.0  ;;  %v715_v28 = vadd.f32 %v4204_v47, %v695_v10  ;;  %3213 = vmatprep.subr.bf16.mxu0 %v3804_v16  ;;  %v3266_v35 = vld [vmem:[%s5385_s4] sm:$0xff]  }
 0x240   :  { %v743_v32 = vadd.f32 %v742_v46, %v741_v42  ;;  %v716_v59 = vadd.f32 %v4204_v47, %v696_v54  ;;  %v733_v60 = vmax.f32 %v717_v7, 0.0  ;;  %v748_v13 = vsel %vm628_vm4, %v726_v52, 0.0 }
 0x241   :  { %v734_v61 = vmax.f32 %v718_v39, 0.0  ;;  %v750_v37 = vsel %vm628_vm4, %v727_v43, 0.0  ;;  %v731_v63 = vmax.f32 %v715_v28, 0.0  ;;  %v752_v1 = vsel %vm628_vm4, %v728_v45, 0.0 }
 0x242   :  { %v745_v20 = vadd.f32 %v744_v15, %v743_v32  ;;  %v732_v55 = vmax.f32 %v716_v59, 0.0  ;;  %v754_v47 = vsel %vm628_vm4, %v729_v50, 0.0  ;;  %v756_v6 = vsel %vm628_vm4, %v730_v4, 0.0  ;;  %3214 = vmatpush3.bf16.msra.mxu0 %v3264_v31 }
 0x243   :  { %v780_v0 = vpack.c.bf16 %v734_v61, %v733_v60  ;;  %v758_v8 = vsel %vm628_vm4, %v731_v63, 0.0  ;;  %v762_v36 = vsel %vm628_vm4, %v733_v60, 0.0  ;;  %v764_v18 = vsel %vm628_vm4, %v734_v61, 0.0  ;;  %3215 = vmatprep.subr.bf16.mxu0 %v3804_v16 }
 0x244   :  { %v747_v62 = vadd.f32 %v746_v57, %v745_v20  ;;  %3168 = vmatmul.mubr.msk.bf16.gmra.mxu0 %vm628_vm4, %v776_v56  ;;  %v779_v2 = vpack.c.bf16 %v732_v55, %v731_v63  ;;  %v760_v11 = vsel %vm628_vm4, %v732_v55, 0.0 }
 0x245   :  { %3171 = vmatprep.mubr.msk.bf16.mxu0 %vm628_vm4, %v777_v5 }
 0x246   :  { %v749_v58 = vadd.f32 %v748_v13, %v747_v62  ;;  %3216 = vmatpush3.bf16.msra.mxu0 %v3265_v23 }
 0x247   :  { %3217 = vmatprep.subr.bf16.mxu0 %v3804_v16 }
 0x248   :  { %v751_v48 = vadd.f32 %v750_v37, %v749_v58 }
 0x24a   :  { %v753_v14 = vadd.f32 %v752_v1, %v751_v48  ;;  %3218 = vmatpush3.bf16.msra.mxu0 %v3266_v35 }
 0x24c   :  { %v755_v26 = vadd.f32 %v754_v47, %v753_v14  ;;  %3172 = vmatmul.mubr.msk.bf16.gmra.mxu0 %vm628_vm4, %v778_v53 }
 0x24d   :  { %3175 = vmatprep.mubr.msk.bf16.mxu0 %vm628_vm4, %v779_v2 }
 0x24e   :  { %v757_v41 = vadd.f32 %v756_v6, %v755_v26 }
 0x250   :  { %v759_v9 = vadd.f32 %v758_v8, %v757_v41 }
 0x252   :  { %v761_v12 = vadd.f32 %v760_v11, %v759_v9 }
 0x254   :  { %v763_v17 = vadd.f32 %v762_v36, %v761_v12  ;;  %3176 = vmatmul.mubr.msk.bf16.gmra.mxu0 %vm628_vm4, %v780_v0 }
 0x255   :  { %3219 = vmatprep.mubr.msk.bf16.mxu0 %vm3805_vm2, %v3804_v16 }
 0x256   :  { %v765_v44 = vadd.f32 %v764_v18, %v763_v17 }
 0x258   :  { %v766_v19 = vrot.slane %v765_v44, 4 }
 0x25a   :  { %v767_v21 = vadd.f32 %v766_v19, %v765_v44 }
 0x25c   :  { %v768_v22 = vrot.slane %v767_v21, 2 }
 0x25e   :  { %v769_v34 = vadd.f32 %v768_v22, %v767_v21 }
 0x260   :  { %v770_v3 = vrot.slane %v769_v34, 1 }
 0x262   :  { %v771_v24 = vadd.f32 %v770_v3, %v769_v34 }
 0x264   :  { %v772_v25 = vmul.f32 0.0078125, %v771_v24 }
 0x266   :  { %v918_v27 = vpack.c.bf16 %v772_v25, %v772_v25 }
 0x268   :  { %3184 = vmatmul.mubr.msk.bf16.vlgmr.msra.gmra.mxu1 %vm628_vm4, %v918_v27 }
 0x269   :  { %3188 = vmatpush3.bf16.msra.mxu1 %v3263_v30 }
 0x26a   :  { %3189 = vmatprep.subr.bf16.mxu1 %v3264_v31 }
 0x26d   :  { %3190 = vmatpush3.bf16.msra.mxu1 %v3264_v31 }
 0x26e   :  { %3191 = vmatprep.subr.bf16.mxu1 %v3265_v23 }
 0x271   :  { %3192 = vmatpush3.bf16.msra.mxu1 %v3265_v23 }
 0x272   :  { %3193 = vmatprep.subr.bf16.mxu1 %v3266_v35 }
 0x275   :  { %3194 = vmatpush3.bf16.msra.mxu1 %v3266_v35 }
 0x2fc   :  { %v4279_v38 = vpop.f32.mrf.mxu0 }
 0x2fd   :  { %v964_v45 = vmul.f32 %v4279_v38, %v4279_v38 }
 0x2fe   :  { %v4281_v49 = vpop.f32.mrf.mxu0 }
 0x2ff   :  { %v962_v52 = vmul.f32 %v4281_v49, %v4281_v49  ;;  %v982_v51 = vsel %vm978_vm5, %v964_v45, 0.0 }
 0x300   :  { %v4283_v42 = vpop.f32.mrf.mxu0 }
 0x301   :  { %v979_v50 = vsel %vm978_vm5, %v962_v52, 0.0  ;;  %v965_v4 = vmul.f32 %v4283_v42, %v4283_v42 }
 0x302   :  { %v4287_v43 = vpop.f32.mrf.mxu0 }
 0x303   :  { %v963_v16 = vmul.f32 %v4287_v43, %v4287_v43  ;;  %v984_v54 = vsel %vm978_vm5, %v965_v4, 0.0 }
 0x304   :  { %v4293_v46 = vpop.f32.mrf.mxu0 }
 0x305   :  { %v980_v7 = vsel %vm978_vm5, %v963_v16, 0.0  ;;  %v968_v39 = vmul.f32 %v4293_v46, %v4293_v46 }
 0x306   :  { %v981_v32 = vadd.f32 %v980_v7, %v979_v50  ;;  %v4299_v5 = vpop.f32.mrf.mxu0 }
 0x307   :  { %v966_v15 = vmul.f32 %v4299_v5, %v4299_v5  ;;  %v990_v0 = vsel %vm978_vm5, %v968_v39, 0.0 }
 0x308   :  { %v983_v53 = vadd.f32 %v982_v51, %v981_v32  ;;  %v4304_v10 = vpop.f32.mrf.mxu0 }
 0x309   :  { %v986_v57 = vsel %vm978_vm5, %v966_v15, 0.0  ;;  %v969_v62 = vmul.f32 %v4304_v10, %v4304_v10 }
 0x30a   :  { %v985_v20 = vadd.f32 %v984_v54, %v983_v53  ;;  %v4307_v56 = vpop.f32.mrf.mxu0 }
 0x30b   :  { %v967_v28 = vmul.f32 %v4307_v56, %v4307_v56  ;;  %v992_v48 = vsel %vm978_vm5, %v969_v62, 0.0 }
 0x30c   :  { %v987_v59 = vadd.f32 %v986_v57, %v985_v20  ;;  %v4314_v60 = vpop.f32.mrf.mxu0 }
 0x30d   :  { %v988_v61 = vsel %vm978_vm5, %v967_v28, 0.0  ;;  %v972_v47 = vmul.f32 %v4314_v60, %v4314_v60 }
 0x30e   :  { %v989_v13 = vadd.f32 %v988_v61, %v987_v59  ;;  %v4319_v58 = vpop.f32.mrf.mxu0  ;;  %v1020_v61 = vld [vmem:[%s5383_s6 + $0x4] sm:$0x3] }
 0x30f   :  { %v970_v37 = vmul.f32 %v4319_v58, %v4319_v58  ;;  %v998_v36 = vsel %vm978_vm5, %v972_v47, 0.0 }
 0x310   :  { %v991_v63 = vadd.f32 %v990_v0, %v989_v13  ;;  %v4324_v55 = vpop.f32.mrf.mxu0 }
 0x311   :  { %v994_v2 = vsel %vm978_vm5, %v970_v37, 0.0  ;;  %v973_v8 = vmul.f32 %v4324_v55, %v4324_v55 }
 0x312   :  { %v993_v1 = vadd.f32 %v992_v48, %v991_v63  ;;  %v4327_v14 = vpop.f32.mrf.mxu0 }
 0x313   :  { %v971_v26 = vmul.f32 %v4327_v14, %v4327_v14  ;;  %v1000_v19 = vsel %vm978_vm5, %v973_v8, 0.0 }
 0x314   :  { %v995_v6 = vadd.f32 %v994_v2, %v993_v1  ;;  %v4334_v41 = vpop.f32.mrf.mxu0 }
 0x315   :  { %v996_v9 = vsel %vm978_vm5, %v971_v26, 0.0  ;;  %v976_v34 = vmul.f32 %v4334_v41, %v4334_v41 }
 0x316   :  { %v997_v11 = vadd.f32 %v996_v9, %v995_v6  ;;  %v4339_v12 = vpop.f32.mrf.mxu0 }
 0x317   :  { %v974_v17 = vmul.f32 %v4339_v12, %v4339_v12  ;;  %v1006_v23 = vsel %vm978_vm5, %v976_v34, 0.0 }
 0x318   :  { %v999_v18 = vadd.f32 %v998_v36, %v997_v11  ;;  %v4344_v44 = vpop.f32.mrf.mxu0 }
 0x319   :  { %v1002_v3 = vsel %vm978_vm5, %v974_v17, 0.0  ;;  %v977_v27 = vmul.f32 %v4344_v44, %v4344_v44 }
 0x31a   :  { %v1001_v21 = vadd.f32 %v1000_v19, %v999_v18  ;;  %v4347_v22 = vpop.f32.mrf.mxu0 }
 0x31b   :  { %v975_v24 = vmul.f32 %v4347_v22, %v4347_v22  ;;  %v1008_v52 = vsel %vm978_vm5, %v977_v27, 0.0 }
 0x31c   :  { %v1003_v25 = vadd.f32 %v1002_v3, %v1001_v21 }
 0x31d   :  { %v1004_v30 = vsel %vm978_vm5, %v975_v24, 0.0 }
 0x31e   :  { %v1005_v31 = vadd.f32 %v1004_v30, %v1003_v25 }
 0x320   :  { %v1007_v35 = vadd.f32 %v1006_v23, %v1005_v31 }
 0x322   :  { %v1009_v45 = vadd.f32 %v1008_v52, %v1007_v35 }
 0x324   :  { %v1010_v16 = vrot.slane %v1009_v45, 4 }
 0x326   :  { %v1011_v50 = vadd.f32 %v1010_v16, %v1009_v45 }
 0x328   :  { %v956_v4 = vpop.f32.mrf.mxu1  ;;  %v1012_v7 = vrot.slane %v1011_v50, 2 }
 0x329   :  { %v1017_v57 = vmul.f32 %v956_v4, %v956_v4 }
 0x32a   :  { %v1013_v32 = vadd.f32 %v1012_v7, %v1011_v50  ;;  %v3185_v51 = vpop.f32.mrf.mxu1 }
 0x32c   :  { %v1014_v15 = vrot.slane %v1013_v32, 1  ;;  %v959_v53 = vpop.f32.mrf.mxu1 }
 0x32e   :  { %v1015_v54 = vadd.f32 %v1014_v15, %v1013_v32  ;;  %v3186_v20 = vpop.f32.mrf.mxu1 }
 0x330   :  { %v1016_v39 = vmul.f32 0.0078125, %v1015_v54 }
 0x332   :  { %v1018_v28 = vsub.f32 %v1016_v39, %v1017_v57 }
 0x334   :  { %v1019_v59 = vmax.f32 %v1018_v28, 0.0 }
 0x336   :  { %v1021_v62 = vadd.f32 1e-05, %v1019_v59 }
 0x338   :  { %3351 = vrsqrt.f32 %v1021_v62 }
 0x345   :  { %v3352_v13 = vpop.eup %3351 }
 0x346   :  { %v1023_v0 = vmul.f32 %v3352_v13, %v1020_v61 }
 0x348   :  { %v1024_v37 = vmul.f32 %v1023_v0, %v956_v4  ;;  %v1032_v63 = vrot.slane %v1023_v0, %v4024_v33 }
 0x34a   :  { %v1026_v48 = vrot.slane %v1024_v37, 7  ;;  %v1033_v47 = vmul.f32 %v1032_v63, %v4281_v49  ;;  %v1034_v26 = vmul.f32 %v1032_v63, %v4287_v43  ;;  %v1035_v6 = vmul.f32 %v4279_v38, %v1032_v63 }
 0x34b   :  { %v1036_v8 = vmul.f32 %v4283_v42, %v1032_v63  ;;  %v1037_v9 = vmul.f32 %v1032_v63, %v4299_v5  ;;  %v1038_v11 = vmul.f32 %v1032_v63, %v4307_v56  ;;  %v1039_v38 = vmul.f32 %v4293_v46, %v1032_v63 }
 0x34c   :  { %v1028_v1 = vsub.f32 %v1020_v61, %v1026_v48  ;;  %v1040_v24 = vmul.f32 %v4304_v10, %v1032_v63  ;;  %v1041_v25 = vmul.f32 %v1032_v63, %v4319_v58  ;;  %v1042_v45 = vmul.f32 %v1032_v63, %v4327_v14 }
 0x34d   :  { %v1043_v58 = vmul.f32 %v4314_v60, %v1032_v63  ;;  %v1044_v50 = vmul.f32 %v4324_v55, %v1032_v63  ;;  %v1047_v51 = vmul.f32 %v4334_v41, %v1032_v63  ;;  %v1048_v13 = vmul.f32 %v4344_v44, %v1032_v63 }
 0x34e   :  { %v4365_v2 = vrot.slane %v1028_v1, %v4030_v40  ;;  %v1045_v48 = vmul.f32 %v1032_v63, %v4339_v12  ;;  %v1046_v1 = vmul.f32 %v1032_v63, %v4347_v22 }
 0x350   :  { %v1053_v36 = vadd.f32 %v4365_v2, %v1033_v47  ;;  %v1054_v17 = vadd.f32 %v4365_v2, %v1034_v26  ;;  %v1055_v18 = vadd.f32 %v4365_v2, %v1035_v6  ;;  %v1056_v49 = vadd.f32 %v4365_v2, %v1036_v8 }
 0x351   :  { %v1057_v19 = vadd.f32 %v4365_v2, %v1037_v9  ;;  %v1058_v43 = vadd.f32 %v4365_v2, %v1038_v11  ;;  %v1059_v23 = vadd.f32 %v4365_v2, %v1039_v38  ;;  %v1060_v46 = vadd.f32 %v4365_v2, %v1040_v24 }
 0x352   :  { %v1069_v21 = vmax.f32 %v1053_v36, 0.0  ;;  %v1070_v42 = vmax.f32 %v1054_v17, 0.0  ;;  %v1071_v34 = vmax.f32 %v1055_v18, 0.0  ;;  %v1072_v5 = vmax.f32 %v1056_v49, 0.0 }
 0x353   :  { %v1073_v3 = vmax.f32 %v1057_v19, 0.0  ;;  %v1074_v56 = vmax.f32 %v1058_v43, 0.0  ;;  %v1061_v7 = vadd.f32 %v4365_v2, %v1041_v25  ;;  %v1062_v32 = vadd.f32 %v4365_v2, %v1042_v45 }
 0x354   :  { %v1085_v27 = vsel %vm978_vm5, %v1069_v21, 0.0  ;;  %v1086_v30 = vsel %vm978_vm5, %v1070_v42, 0.0  ;;  %v1123_v31 = vpack.c.bf16 %v1070_v42, %v1069_v21  ;;  %v1124_v52 = vpack.c.bf16 %v1072_v5, %v1071_v34 }
 0x355   :  { %v1087_v35 = vadd.f32 %v1086_v30, %v1085_v27  ;;  %v1088_v16 = vsel %vm978_vm5, %v1071_v34, 0.0  ;;  %v1125_v10 = vpack.c.bf16 %v1074_v56, %v1073_v3  ;;  %v1090_v14 = vsel %vm978_vm5, %v1072_v5, 0.0 }
 0x356   :  { %3195 = vmatprep.mubr.msk.bf16.mxu1 %vm978_vm5, %v1123_v31  ;;  %v1075_v15 = vmax.f32 %v1059_v23, 0.0  ;;  %v1063_v53 = vadd.f32 %v4365_v2, %v1043_v58  ;;  %v1064_v60 = vadd.f32 %v4365_v2, %v1044_v50  ;;  %v1076_v55 = vmax.f32 %v1060_v46, 0.0 }
 0x357   :  { %3196 = vmatmul.mubr.msk.bf16.vlgmr.msra.gmra.mxu1 %vm978_vm5, %v1124_v52  ;;  %v1089_v4 = vadd.f32 %v1088_v16, %v1087_v35  ;;  %v1077_v20 = vmax.f32 %v1061_v7, 0.0  ;;  %v1078_v39 = vmax.f32 %v1062_v32, 0.0  ;;  %v1092_v57 = vsel %vm978_vm5, %v1073_v3, 0.0  ;;  %v3269_v7 = vld [vmem:[%s5386_s5 + $0x18c] ss:$28 sps:$4 sm:$0xff]  }
 0x358   :  { %3199 = vmatprep.mubr.msk.bf16.mxu1 %vm978_vm5, %v1125_v10  ;;  %v1079_v28 = vmax.f32 %v1063_v53, 0.0  ;;  %v1080_v59 = vmax.f32 %v1064_v60, 0.0  ;;  %v1067_v62 = vadd.f32 %v4365_v2, %v1047_v51  ;;  %v1094_v0 = vsel %vm978_vm5, %v1074_v56, 0.0  ;;  %v3267_v32 = vld [vmem:[%s5386_s5 + $0x188] ss:$28 sps:$4 sm:$0xff]   ;;  %1831 = vmatprep.subr.bf16.mxu1 %v3269_v7 }
 0x359   :  { %v1091_v54 = vadd.f32 %v1090_v14, %v1089_v4  ;;  %v1127_v61 = vpack.c.bf16 %v1078_v39, %v1077_v20  ;;  %v1126_v26 = vpack.c.bf16 %v1076_v55, %v1075_v15  ;;  %v1068_v6 = vadd.f32 %v4365_v2, %v1048_v13  ;;  %v3270_v51 = vld [vmem:[%s5386_s5 + $0x190] ss:$28 sps:$4 sm:$0xff]   ;;  %1832 = vmatpush1.bf16.msra.mxu1 %v3267_v32  ;;  %v3278_v53 = vld [vmem:[%s5386_s5 + $0x15c] ss:$28 sps:$4 sm:$0xff]  }
 0x35a   :  { %v1128_v37 = vpack.c.bf16 %v1080_v59, %v1079_v28  ;;  %v1096_v8 = vsel %vm978_vm5, %v1075_v15, 0.0  ;;  %v1065_v9 = vadd.f32 %v4365_v2, %v1045_v48  ;;  %v1066_v11 = vadd.f32 %v4365_v2, %v1046_v1  ;;  %v3272_v14 = vld [vmem:[%s5386_s5 + $0x194] ss:$28 sps:$4 sm:$0xff]  }
 0x35b   :  { %v1093_v41 = vadd.f32 %v1092_v57, %v1091_v54  ;;  %v1083_v36 = vmax.f32 %v1067_v62, 0.0  ;;  %v1084_v44 = vmax.f32 %v1068_v6, 0.0  ;;  %v1098_v18 = vsel %vm978_vm5, %v1076_v55, 0.0  ;;  %1944 = vmatprep.subr.bf16.mxu0 %v3272_v14  ;;  %v3275_v15 = vld [vmem:[%s5386_s5 + $0x154] ss:$28 sps:$4 sm:$0xff]  }
 0x35c   :  { %v1100_v63 = vsel %vm978_vm5, %v1077_v20, 0.0  ;;  %v1081_v49 = vmax.f32 %v1065_v9, 0.0  ;;  %v1082_v19 = vmax.f32 %v1066_v11, 0.0  ;;  %v1102_v38 = vsel %vm978_vm5, %v1078_v39, 0.0  ;;  %v3273_v60 = vld [vmem:[%s5386_s5 + $0x150] ss:$28 sps:$4 sm:$0xff]   ;;  %1833 = vmatprep.subr.bf16.mxu1 %v3275_v15 }
 0x35d   :  { %v1095_v47 = vadd.f32 %v1094_v0, %v1093_v41  ;;  %v1130_v22 = vpack.c.bf16 %v1084_v44, %v1083_v36  ;;  %v1104_v2 = vsel %vm978_vm5, %v1079_v28, 0.0  ;;  %v1106_v5 = vsel %vm978_vm5, %v1080_v59, 0.0  ;;  %v3276_v54 = vld [vmem:[%s5386_s5 + $0x158] ss:$28 sps:$4 sm:$0xff]   ;;  %1834 = vmatpush1.bf16.msra.mxu1 %v3273_v60  ;;  %v3284_v20 = vld [vmem:[%s5386_s5 + $0x124] ss:$28 sps:$4 sm:$0xff]  }
 0x35e   :  { %v1129_v42 = vpack.c.bf16 %v1082_v19, %v1081_v49  ;;  %v1108_v56 = vsel %vm978_vm5, %v1081_v49, 0.0  ;;  %v1110_v25 = vsel %vm978_vm5, %v1082_v19, 0.0  ;;  %v1112_v30 = vsel %vm978_vm5, %v1083_v36, 0.0  ;;  %v3281_v55 = vld [vmem:[%s5386_s5 + $0x11c] ss:$28 sps:$4 sm:$0xff]  }
 0x35f   :  { %v1097_v17 = vadd.f32 %v1096_v8, %v1095_v47  ;;  %3200 = vmatmul.mubr.msk.bf16.gmra.mxu1 %vm978_vm5, %v1126_v26  ;;  %v1114_v23 = vsel %vm978_vm5, %v1084_v44, 0.0  ;;  %v3279_v39 = vld [vmem:[%s5386_s5 + $0x118] ss:$28 sps:$4 sm:$0xff]   ;;  %v3282_v57 = vld [vmem:[%s5386_s5 + $0x120] ss:$28 sps:$4 sm:$0xff]   ;;  %1835 = vmatprep.subr.bf16.mxu1 %v3281_v55  ;;  %v3806_v1 = vmov 0  }
 0x360   :  { %3203 = vmatprep.mubr.msk.bf16.mxu1 %vm978_vm5, %v1127_v61  ;;  %v3287_v28 = vld [vmem:[%s5386_s5 + $0xe4] ss:$28 sps:$4 sm:$0xff]   ;;  %v3290_v59 = vld [vmem:[%s5386_s5 + $0xec] ss:$28 sps:$4 sm:$0xff]   ;;  %v3296_v13 = vld [vmem:[%s5386_s5 + $0xb4] ss:$28 sps:$4 sm:$0xff]  }
 0x361   :  { %v1099_v12 = vadd.f32 %v1098_v18, %v1097_v17  ;;  %1836 = vmatpush1.bf16.msra.mxu1 %v3279_v39  ;;  %v3285_v62 = vld [vmem:[%s5386_s5 + $0xe0] ss:$28 sps:$4 sm:$0xff]   ;;  %v3288_v41 = vld [vmem:[%s5386_s5 + $0xe8] ss:$28 sps:$4 sm:$0xff]   ;;  %v3294_v48 = vld [vmem:[%s5386_s5 + $0xb0] ss:$28 sps:$4 sm:$0xff]  }
 0x362   :  { %1837 = vmatprep.subr.bf16.mxu1 %v3287_v28  ;;  %v3293_v61 = vld [vmem:[%s5386_s5 + $0xac] ss:$28 sps:$4 sm:$0xff]   ;;  %v3302_v47 = vld [vmem:[%s5386_s5 + $0x7c] ss:$28 sps:$4 sm:$0xff]   ;;  %v3308_v11 = vld [vmem:[%s5386_s5 + $0x44] ss:$28 sps:$4 sm:$0xff]  }
 0x363   :  { %v1101_v43 = vadd.f32 %v1100_v63, %v1099_v12  ;;  %v3291_v0 = vld [vmem:[%s5386_s5 + $0xa8] ss:$28 sps:$4 sm:$0xff]   ;;  %v3297_v26 = vld [vmem:[%s5386_s5 + $0x70] ss:$28 sps:$4 sm:$0xff]   ;;  %v3305_v6 = vld [vmem:[%s5386_s5 + $0x3c] ss:$28 sps:$4 sm:$0xff]  }
 0x364   :  { %v3300_v8 = vld [vmem:[%s5386_s5 + $0x78] ss:$28 sps:$4 sm:$0xff]   ;;  %v3306_v36 = vld [vmem:[%s5386_s5 + $0x40] ss:$28 sps:$4 sm:$0xff]   ;;  %v3314_v44 = vld [vmem:[%s5386_s5 + $0xc] ss:$28 sps:$4 sm:$0xff]  }
 0x365   :  { %v1103_v21 = vadd.f32 %v1102_v38, %v1101_v43  ;;  %1838 = vmatpush1.bf16.msra.mxu1 %v3285_v62  ;;  %v3303_v9 = vld [vmem:[%s5386_s5 + $0x38] ss:$28 sps:$4 sm:$0xff]   ;;  %v3311_v17 = vld [vmem:[%s5386_s5 + $0x4] ss:$28 sps:$4 sm:$0xff]  }
 0x366   :  { %1839 = vmatprep.subr.bf16.mxu1 %v3293_v61  ;;  %v3309_v18 = vld [vmem:[%s5386_s5] ss:$28 sps:$4 sm:$0xff]  }
 0x367   :  { %v1105_v34 = vadd.f32 %v1104_v2, %v1103_v21  ;;  %3204 = vmatmul.mubr.msk.bf16.gmra.mxu1 %vm978_vm5, %v1128_v37  ;;  %v3299_v37 = vld [vmem:[%s5386_s5 + $0x74] ss:$28 sps:$4 sm:$0xff]   ;;  %v3317_v12 = vld [vmem:[%s5386_s5 + $0x19c] ss:$28 sps:$4 sm:$0xff]  }
 0x368   :  { %3207 = vmatprep.mubr.msk.bf16.mxu1 %vm978_vm5, %v1129_v42  ;;  %v4527_v63 = vld [vmem:[%s5386_s5 + $0x1a0] ss:$28 sps:$4 sm:$0xff]  }
 0x369   :  { %v1107_v3 = vadd.f32 %v1106_v5, %v1105_v34  ;;  %1840 = vmatpush1.bf16.msra.mxu1 %v3291_v0 }
 0x36a   :  { %1841 = vmatprep.subr.bf16.mxu1 %v3299_v37 }
 0x36b   :  { %v1109_v24 = vadd.f32 %v1108_v56, %v1107_v3 }
 0x36d   :  { %v1111_v27 = vadd.f32 %v1110_v25, %v1109_v24  ;;  %1842 = vmatpush1.bf16.msra.mxu1 %v3297_v26 }
 0x36e   :  { %1843 = vmatprep.subr.bf16.mxu1 %v3305_v6 }
 0x36f   :  { %v1113_v31 = vadd.f32 %v1112_v30, %v1111_v27  ;;  %3208 = vmatmul.mubr.msk.bf16.gmra.mxu1 %vm978_vm5, %v1130_v22  ;;  %v3312_v22 = vld [vmem:[%s5386_s5 + $0x8] ss:$28 sps:$4 sm:$0xff]  }
 0x370   :  { %1863 = vmatprep.mubr.bf16.mxu1 %v3806_v1 }
 0x371   :  { %v1115_v35 = vadd.f32 %v1114_v23, %v1113_v31  ;;  %1844 = vmatpush1.bf16.msra.mxu1 %v3303_v9 }
 0x372   :  { %1845 = vmatprep.subr.bf16.mxu1 %v3311_v17 }
 0x373   :  { %v1116_v52 = vrot.slane %v1115_v35, 4 }
 0x375   :  { %v1117_v46 = vadd.f32 %v1116_v52, %v1115_v35  ;;  %1846 = vmatpush1.bf16.msra.mxu1 %v3309_v18 }
 0x376   :  { %2057 = vmatprep.subr.bf16.mxu1 %v3317_v12 }
 0x377   :  { %v1118_v45 = vrot.slane %v1117_v46, 2 }
 0x379   :  { %v1119_v16 = vadd.f32 %v1118_v45, %v1117_v46 }
 0x37b   :  { %v1120_v10 = vrot.slane %v1119_v16, 1 }
 0x37d   :  { %v1121_v58 = vadd.f32 %v1120_v10, %v1119_v16 }
 0x37f   :  { %v1122_v50 = vmul.f32 0.0078125, %v1121_v58 }
 0x381   :  { %v1284_v4 = vpack.c.bf16 %v1122_v50, %v1122_v50 }
 0x383   :  { %3220 = vmatmul.mubr.msk.bf16.vlgmr.msra.gmra.mxu0 %vm978_vm5, %v1284_v4 }
 0x384   :  { %1945 = vmatpush1.bf16.msra.mxu0 %v3270_v51  ;;  %1976 = vmatprep.mubr.bf16.mxu0 %v3806_v1 }
 0x385   :  { %1946 = vmatprep.subr.bf16.mxu0 %v3278_v53 }
 0x388   :  { %1947 = vmatpush1.bf16.msra.mxu0 %v3276_v54 }
 0x389   :  { %1948 = vmatprep.subr.bf16.mxu0 %v3284_v20 }
 0x38c   :  { %1949 = vmatpush1.bf16.msra.mxu0 %v3282_v57 }
 0x38d   :  { %1950 = vmatprep.subr.bf16.mxu0 %v3290_v59 }
 0x390   :  { %1951 = vmatpush1.bf16.msra.mxu0 %v3288_v41 }
 0x391   :  { %1952 = vmatprep.subr.bf16.mxu0 %v3296_v13 }
 0x394   :  { %1953 = vmatpush1.bf16.msra.mxu0 %v3294_v48 }
 0x395   :  { %1954 = vmatprep.subr.bf16.mxu0 %v3302_v47 }
 0x398   :  { %1955 = vmatpush1.bf16.msra.mxu0 %v3300_v8 }
 0x399   :  { %1956 = vmatprep.subr.bf16.mxu0 %v3308_v11 }
 0x39c   :  { %1957 = vmatpush1.bf16.msra.mxu0 %v3306_v36 }
 0x39d   :  { %1958 = vmatprep.subr.bf16.mxu0 %v3314_v44 }
 0x3a0   :  { %1959 = vmatpush1.bf16.msra.mxu0 %v3312_v22 }
 0x3a1   :  { %3223 = vmatprep.subr.bf16.mxu0 %v4527_v63 }
 0x417   :  { %v4530_v49 = vpop.f32.mrf.mxu1 }
 0x418   :  { %v1330_v34 = vmul.f32 %v4530_v49, %v4530_v49 }
 0x419   :  { %v4532_v19 = vpop.f32.mrf.mxu1 }
 0x41a   :  { %v1328_v21 = vmul.f32 %v4532_v19, %v4532_v19 }
 0x41b   :  { %v4534_v43 = vpop.f32.mrf.mxu1 }
 0x41c   :  { %v1331_v56 = vmul.f32 %v4534_v43, %v4534_v43 }
 0x41d   :  { %v4536_v38 = vpop.f32.mrf.mxu1 }
 0x41e   :  { %v1329_v2 = vmul.f32 %v4536_v38, %v4536_v38 }
 0x41f   :  { %v4542_v42 = vpop.f32.mrf.mxu1 }
 0x420   :  { %v1344_v5 = vadd.f32 %v1329_v2, %v1328_v21  ;;  %v1334_v46 = vmul.f32 %v4542_v42, %v4542_v42 }
 0x421   :  { %v4546_v3 = vpop.f32.mrf.mxu1 }
 0x422   :  { %v1345_v24 = vadd.f32 %v1344_v5, %v1330_v34  ;;  %v1332_v27 = vmul.f32 %v4546_v3, %v4546_v3  ;;  %v1369_v5 = vld [vmem:[%s5383_s6 + $0x6] sm:$0x3] }
 0x423   :  { %v4550_v25 = vpop.f32.mrf.mxu1 }
 0x424   :  { %v1346_v30 = vadd.f32 %v1345_v24, %v1331_v56  ;;  %v1335_v10 = vmul.f32 %v4550_v25, %v4550_v25 }
 0x425   :  { %v4554_v31 = vpop.f32.mrf.mxu1 }
 0x426   :  { %v1347_v23 = vadd.f32 %v1346_v30, %v1332_v27  ;;  %v1333_v35 = vmul.f32 %v4554_v31, %v4554_v31 }
 0x427   :  { %v4558_v52 = vpop.f32.mrf.mxu1 }
 0x428   :  { %v1348_v45 = vadd.f32 %v1347_v23, %v1333_v35  ;;  %v1338_v53 = vmul.f32 %v4558_v52, %v4558_v52 }
 0x429   :  { %v1253_v16 = vpop.f32.mrf.mxu1 }
 0x42a   :  { %v1349_v58 = vadd.f32 %v1348_v45, %v1334_v46  ;;  %v1336_v4 = vmul.f32 %v1253_v16, %v1253_v16 }
 0x42b   :  { %v3206_v50 = vpop.f32.mrf.mxu1 }
 0x42c   :  { %v1350_v7 = vadd.f32 %v1349_v58, %v1335_v10  ;;  %v1339_v55 = vmul.f32 %v3206_v50, %v3206_v50 }
 0x42d   :  { %v1256_v32 = vpop.f32.mrf.mxu1 }
 0x42e   :  { %v1351_v51 = vadd.f32 %v1350_v7, %v1336_v4  ;;  %v1337_v14 = vmul.f32 %v1256_v32, %v1256_v32 }
 0x42f   :  { %v3209_v15 = vpop.f32.mrf.mxu1 }
 0x430   :  { %v1352_v60 = vadd.f32 %v1351_v51, %v1337_v14  ;;  %v1342_v61 = vmul.f32 %v3209_v15, %v3209_v15 }
 0x431   :  { %v4566_v54 = vpop.f32.mrf.mxu1 }
 0x432   :  { %v1353_v20 = vadd.f32 %v1352_v60, %v1338_v53  ;;  %v1340_v57 = vmul.f32 %v4566_v54, %v4566_v54 }
 0x433   :  { %v3210_v39 = vpop.f32.mrf.mxu1 }
 0x434   :  { %v1354_v28 = vadd.f32 %v1353_v20, %v1339_v55  ;;  %v1343_v0 = vmul.f32 %v3210_v39, %v3210_v39 }
 0x435   :  { %v4570_v59 = vpop.f32.mrf.mxu1 }
 0x436   :  { %v1355_v62 = vadd.f32 %v1354_v28, %v1340_v57  ;;  %v1341_v41 = vmul.f32 %v4570_v59, %v4570_v59 }
 0x438   :  { %v1356_v13 = vadd.f32 %v1355_v62, %v1341_v41 }
 0x43a   :  { %v1357_v37 = vadd.f32 %v1356_v13, %v1342_v61 }
 0x43c   :  { %v1358_v48 = vadd.f32 %v1357_v37, %v1343_v0  ;;  %v3331_v0 = vld [vmem:[%s5386_s5 + $0x168] ss:$28 sps:$4 sm:$0xff]   ;;  %v3318_v37 = vld [vmem:[%s5386_s5 + $0x160] ss:$28 sps:$4 sm:$0xff]  }
 0x43e   :  { %v1359_v47 = vrot.slane %v1358_v48, 4 }
 0x440   :  { %v1360_v26 = vadd.f32 %v1359_v47, %v1358_v48 }
 0x442   :  { %v1361_v6 = vrot.slane %v1360_v26, 2 }
 0x443   :  { %v1322_v8 = vpop.f32.mrf.mxu0 }
 0x444   :  { %v1362_v9 = vadd.f32 %v1361_v6, %v1360_v26  ;;  %v1366_v22 = vmul.f32 %v1322_v8, %v1322_v8 }
 0x445   :  { %v3221_v11 = vpop.f32.mrf.mxu0 }
 0x446   :  { %v1363_v36 = vrot.slane %v1362_v9, 1 }
 0x447   :  { %v1325_v17 = vpop.f32.mrf.mxu0 }
 0x448   :  { %v1364_v44 = vadd.f32 %v1363_v36, %v1362_v9 }
 0x449   :  { %v3222_v18 = vpop.f32.mrf.mxu0 }
 0x44a   :  { %v1365_v12 = vmul.f32 0.0078125, %v1364_v44 }
 0x44c   :  { %v1367_v21 = vsub.f32 %v1365_v12, %v1366_v22 }
 0x44e   :  { %v1368_v2 = vmax.f32 %v1367_v21, 0.0 }
 0x450   :  { %v1370_v34 = vadd.f32 1e-05, %v1368_v2 }
 0x452   :  { %3353 = vrsqrt.f32 %v1370_v34  ;;  %v3336_v34 = vld [vmem:[%s5386_s5 + $0xf8] ss:$28 sps:$4 sm:$0xff]  }
 0x45f   :  { %v3354_v56 = vpop.eup %3353 }
 0x460   :  { %v1372_v24 = vmul.f32 %v3354_v56, %v1369_v5 }
 0x462   :  { %v1373_v27 = vmul.f32 %v1372_v24, %v1322_v8  ;;  %v4578_v23 = vrot.slane %v1372_v24, %v4024_v33  ;;  %v3323_v8 = vld [vmem:[%s5386_s5 + $0x12c] ss:$28 sps:$4 sm:$0xff]  }
 0x463   :  { %v3324_v24 = vld [vmem:[%s5386_s5 + $0xf0] ss:$28 sps:$4 sm:$0xff]  }
 0x464   :  { %v1375_v30 = vrot.slane %v1373_v27, 7  ;;  %v1382_v45 = vmul.f32 %v4578_v23, %v4532_v19  ;;  %v1383_v10 = vmul.f32 %v4578_v23, %v4536_v38  ;;  %v1384_v7 = vmul.f32 %v4530_v49, %v4578_v23  ;;  %v3315_v19 = vld [vmem:[%s5386_s5 + $0x198] ss:$28 sps:$4 sm:$0xff]  }
 0x465   :  { %v1385_v51 = vmul.f32 %v4534_v43, %v4578_v23  ;;  %v1390_v60 = vmul.f32 %v4578_v23, %v1253_v16  ;;  %v1391_v55 = vmul.f32 %v4578_v23, %v1256_v32  ;;  %v1392_v20 = vmul.f32 %v4558_v52, %v4578_v23  ;;  %v3320_v43 = vld [vmem:[%s5386_s5 + $0x164] ss:$28 sps:$4 sm:$0xff]   ;;  %v3329_v27 = vld [vmem:[%s5386_s5 + $0xbc] ss:$28 sps:$4 sm:$0xff]  }
 0x466   :  { %v1377_v35 = vsub.f32 %v1369_v5, %v1375_v30  ;;  %v1393_v49 = vmul.f32 %v3206_v50, %v4578_v23  ;;  %v1396_v52 = vmul.f32 %v3209_v15, %v4578_v23  ;;  %v1397_v50 = vmul.f32 %v3210_v39, %v4578_v23 }
 0x467   :  { %v1386_v44 = vmul.f32 %v4578_v23, %v4546_v3  ;;  %v1387_v18 = vmul.f32 %v4578_v23, %v4554_v31  ;;  %v3335_v3 = vld [vmem:[%s5386_s5 + $0x130] ss:$28 sps:$4 sm:$0xff]   ;;  %v1388_v30 = vmul.f32 %v4542_v42, %v4578_v23  ;;  %v3334_v42 = vld [vmem:[%s5386_s5 + $0x84] ss:$28 sps:$4 sm:$0xff]  }
 0x468   :  { %v4581_v46 = vrot.slane %v1377_v35, %v4030_v40  ;;  %v3326_v31 = vld [vmem:[%s5386_s5 + $0xf4] ss:$28 sps:$4 sm:$0xff]   ;;  %v1389_v35 = vmul.f32 %v4550_v25, %v4578_v23  ;;  %v3341_v25 = vld [vmem:[%s5386_s5 + $0x88] ss:$28 sps:$4 sm:$0xff]  }
 0x46a   :  { %v1402_v58 = vadd.f32 %v4581_v46, %v1382_v45  ;;  %v1403_v4 = vadd.f32 %v4581_v46, %v1383_v10  ;;  %v1404_v38 = vadd.f32 %v4581_v46, %v1384_v7  ;;  %v1405_v16 = vadd.f32 %v4581_v46, %v1385_v51  ;;  %v3340_v7 = vld [vmem:[%s5386_s5 + $0xc0] ss:$28 sps:$4 sm:$0xff]  }
 0x46b   :  { %v1410_v32 = vadd.f32 %v4581_v46, %v1390_v60  ;;  %v1411_v28 = vadd.f32 %v4581_v46, %v1391_v55  ;;  %v1412_v62 = vadd.f32 %v4581_v46, %v1392_v20  ;;  %v1413_v41 = vadd.f32 %v4581_v46, %v1393_v49  ;;  %v3339_v60 = vld [vmem:[%s5386_s5 + $0x4c] ss:$28 sps:$4 sm:$0xff]   ;;  %v3344_v20 = vld [vmem:[%s5386_s5 + $0x14] ss:$28 sps:$4 sm:$0xff]  }
 0x46c   :  { %v1418_v14 = vmax.f32 %v1402_v58, 0.0  ;;  %v1419_v53 = vmax.f32 %v1403_v4, 0.0  ;;  %v1416_v39 = vadd.f32 %v4581_v46, %v1396_v52  ;;  %v1417_v47 = vadd.f32 %v4581_v46, %v1397_v50  ;;  %v3327_v4 = vld [vmem:[%s5386_s5 + $0xb8] ss:$28 sps:$4 sm:$0xff]  }
 0x46d   :  { %v1426_v61 = vmax.f32 %v1410_v32, 0.0  ;;  %v1427_v13 = vmax.f32 %v1411_v28, 0.0  ;;  %v1428_v15 = vmax.f32 %v1412_v62, 0.0  ;;  %v1429_v48 = vmax.f32 %v1413_v41, 0.0  ;;  %v3346_v49 = vld [vmem:[%s5386_s5 + $0x18] ss:$28 sps:$4 sm:$0xff]  }
 0x46e   :  { %v4602_v57 = vpack.c.bf16 %v1419_v53, %v1418_v14  ;;  %v1420_v26 = vmax.f32 %v1404_v38, 0.0  ;;  %v1421_v6 = vmax.f32 %v1405_v16, 0.0  ;;  %v1432_v36 = vmax.f32 %v1416_v39, 0.0  ;;  %v3332_v53 = vld [vmem:[%s5386_s5 + $0x80] ss:$28 sps:$4 sm:$0xff]  }
 0x46f   :  { %v4629_v9 = vpack.c.bf16 %v1427_v13, %v1426_v61  ;;  %v4632_v11 = vpack.c.bf16 %v1429_v48, %v1428_v15  ;;  %v1433_v17 = vmax.f32 %v1417_v47, 0.0  ;;  %v1406_v21 = vadd.f32 %v4581_v46, %v1386_v44  ;;  %v3345_v38 = vld [vmem:[%s5386_s5 + $0x50] ss:$28 sps:$4 sm:$0xff]  }
 0x470   :  { %1864 = vmatmul.mubr.bf16.vlgmr.msra.gmra.mxu1 %v4602_v57  ;;  %1977 = vmatmul.mubr.bf16.vlgmr.msra.gmra.mxu0 %v4602_v57  ;;  %v4640_v22 = vpack.c.bf16 %v1421_v6, %v1420_v26  ;;  %v1407_v2 = vadd.f32 %v4581_v46, %v1387_v18  ;;  %v1408_v10 = vadd.f32 %v4581_v46, %v1388_v30 }
 0x471   :  { %2058 = vmatpush1.bf16.msra.mxu1 %v3315_v19  ;;  %1873 = vmatprep.mubr.bf16.mxu1 %v3806_v1  ;;  %v4638_v12 = vpack.c.bf16 %v1433_v17, %v1432_v36  ;;  %v1422_v5 = vmax.f32 %v1406_v21, 0.0  ;;  %v1409_v58 = vadd.f32 %v4581_v46, %v1389_v35  ;;  %v3337_v19 = vld [vmem:[%s5386_s5 + $0x48] ss:$28 sps:$4 sm:$0xff]   ;;  %v1394_v16 = vmul.f32 %v4578_v23, %v4566_v54 }
 0x472   :  { %1986 = vmatprep.mubr.bf16.mxu0 %v3806_v1  ;;  %2059 = vmatprep.subr.bf16.mxu1 %v3320_v43  ;;  %v1423_v56 = vmax.f32 %v1407_v2, 0.0  ;;  %v1424_v51 = vmax.f32 %v1408_v10, 0.0  ;;  %v3342_v43 = vld [vmem:[%s5386_s5 + $0x10] ss:$28 sps:$4 sm:$0xff]   ;;  %v1395_v32 = vmul.f32 %v4578_v23, %v4570_v59  ;;  %v1518_v54 = vsub.s32 2, %v4018_v29 }
 0x473   :  { %3224 = vmatpush3.bf16.msra.mxu0 %v4527_v63  ;;  %v3321_v63 = vld [vmem:[%s5386_s5 + $0x128] ss:$28 sps:$4 sm:$0xff]   ;;  %v1425_v14 = vmax.f32 %v1409_v58, 0.0  ;;  %v1414_v28 = vadd.f32 %v4581_v46, %v1394_v16  ;;  %v1522_v23 = vsub.s32 3, %v4018_v29 }
 0x474   :  { %3225 = vmatprep.subr.bf16.mxu0 %v3331_v0  ;;  %v4670_v45 = vpack.c.bf16 %v1423_v56, %v1422_v5  ;;  %v1415_v62 = vadd.f32 %v4581_v46, %v1395_v32  ;;  %v1506_v59 = vld [vmem:[%s5387_s7] sm:$0x7f] }
 0x475   :  { %2060 = vmatpush1.bf16.msra.mxu1 %v3318_v37  ;;  %v1437_v55 = vpack.c.bf16 %v1425_v14, %v1424_v51  ;;  %v1430_v41 = vmax.f32 %v1414_v28, 0.0  ;;  %v4757_v46 = vrot.slane %v1506_v59, %v4024_v33  ;;  %v4762_v61 = vrot.slane %v1506_v59, %v4030_v40 }
 0x476   :  { %2061 = vmatprep.subr.bf16.mxu1 %v3323_v8  ;;  %v1431_v52 = vmax.f32 %v1415_v62, 0.0  ;;  %v4764_v13 = vrot.slane %v1506_v59, %v1522_v23 }
 0x477   :  { %3226 = vmatpush3.bf16.msra.mxu0 %v3331_v0 }
 0x478   :  { %1874 = vmatmul.mubr.bf16.gmra.mxu1 %v4640_v22  ;;  %1987 = vmatmul.mubr.bf16.gmra.mxu0 %v4640_v22  ;;  %v1440_v50 = vpack.c.bf16 %v1431_v52, %v1430_v41 }
 0x479   :  { %1883 = vmatprep.mubr.bf16.mxu1 %v3806_v1  ;;  %1996 = vmatprep.mubr.bf16.mxu0 %v3806_v1 }
 0x47a   :  { %2062 = vmatpush1.bf16.msra.mxu1 %v3321_v63  ;;  %3227 = vmatprep.subr.bf16.mxu0 %v3335_v3 }
 0x47b   :  { %2063 = vmatprep.subr.bf16.mxu1 %v3326_v31  ;;  %3228 = vmatpush3.bf16.msra.mxu0 %v3335_v3 }
 0x47c   :  { %3229 = vmatprep.subr.bf16.mxu0 %v3336_v34 }
 0x47e   :  { %2064 = vmatpush1.bf16.msra.mxu1 %v3324_v24 }
 0x47f   :  { %2065 = vmatprep.subr.bf16.mxu1 %v3329_v27  ;;  %3230 = vmatpush3.bf16.msra.mxu0 %v3336_v34 }
 0x480   :  { %1884 = vmatmul.mubr.bf16.gmra.mxu1 %v4670_v45  ;;  %1997 = vmatmul.mubr.bf16.gmra.mxu0 %v4670_v45 }
 0x481   :  { %1893 = vmatprep.mubr.bf16.mxu1 %v3806_v1  ;;  %2006 = vmatprep.mubr.bf16.mxu0 %v3806_v1 }
 0x482   :  { %2066 = vmatpush1.bf16.msra.mxu1 %v3327_v4  ;;  %3231 = vmatprep.subr.bf16.mxu0 %v3340_v7 }
 0x483   :  { %2067 = vmatprep.subr.bf16.mxu1 %v3334_v42  ;;  %3232 = vmatpush3.bf16.msra.mxu0 %v3340_v7 }
 0x484   :  { %3233 = vmatprep.subr.bf16.mxu0 %v3341_v25 }
 0x486   :  { %2068 = vmatpush1.bf16.msra.mxu1 %v3332_v53 }
 0x487   :  { %2069 = vmatprep.subr.bf16.mxu1 %v3339_v60  ;;  %3234 = vmatpush3.bf16.msra.mxu0 %v3341_v25 }
 0x488   :  { %1894 = vmatmul.mubr.bf16.gmra.mxu1 %v1437_v55  ;;  %2007 = vmatmul.mubr.bf16.gmra.mxu0 %v1437_v55 }
 0x489   :  { %1903 = vmatprep.mubr.bf16.mxu1 %v3806_v1  ;;  %2016 = vmatprep.mubr.bf16.mxu0 %v3806_v1 }
 0x48a   :  { %2070 = vmatpush1.bf16.msra.mxu1 %v3337_v19  ;;  %3235 = vmatprep.subr.bf16.mxu0 %v3345_v38 }
 0x48b   :  { %2071 = vmatprep.subr.bf16.mxu1 %v3344_v20  ;;  %3236 = vmatpush3.bf16.msra.mxu0 %v3345_v38 }
 0x48c   :  { %3237 = vmatprep.subr.bf16.mxu0 %v3346_v49 }
 0x48e   :  { %2072 = vmatpush1.bf16.msra.mxu1 %v3342_v43 }
 0x48f   :  { %3238 = vmatpush3.bf16.msra.mxu0 %v3346_v49 }
 0x490   :  { %1904 = vmatmul.mubr.bf16.gmra.mxu1 %v4629_v9  ;;  %2017 = vmatmul.mubr.bf16.gmra.mxu0 %v4629_v9 }
 0x491   :  { %1913 = vmatprep.mubr.bf16.mxu1 %v3806_v1  ;;  %2026 = vmatprep.mubr.bf16.mxu0 %v3806_v1 }
 0x498   :  { %1914 = vmatmul.mubr.bf16.gmra.mxu1 %v4632_v11  ;;  %2027 = vmatmul.mubr.bf16.gmra.mxu0 %v4632_v11 }
 0x499   :  { %1923 = vmatprep.mubr.bf16.mxu1 %v3806_v1  ;;  %2036 = vmatprep.mubr.bf16.mxu0 %v3806_v1 }
 0x4a0   :  { %1924 = vmatmul.mubr.bf16.gmra.mxu1 %v1440_v50  ;;  %2037 = vmatmul.mubr.bf16.gmra.mxu0 %v1440_v50 }
 0x4a1   :  { %1933 = vmatprep.mubr.bf16.mxu1 %v3806_v1  ;;  %2046 = vmatprep.mubr.bf16.mxu0 %v3806_v1 }
 0x4a8   :  { %1934 = vmatmul.mubr.bf16.gmra.mxu1 %v4638_v12  ;;  %2047 = vmatmul.mubr.bf16.gmra.mxu0 %v4638_v12 }
 0x4a9   :  { %3239 = vmatprep.mubr.bf16.mxu0 %v4602_v57  ;;  %2089 = vmatprep.mubr.bf16.mxu1 %v3806_v1 }
 0x4b0   :  { %2090 = vmatmul.mubr.bf16.vlgmr.msra.gmra.mxu1 %v4602_v57  ;;  %3240 = vmatmul.mubr.bf16.vlgmr.msra.gmra.mxu0 %v4640_v22  ;;  %v4759_v57 = vrot.slane %v1506_v59, %v1518_v54 }
 0x4b1   :  { %3243 = vmatprep.mubr.bf16.mxu0 %v4670_v45  ;;  %2099 = vmatprep.mubr.bf16.mxu1 %v3806_v1 }
 0x4b8   :  { %2100 = vmatmul.mubr.bf16.gmra.mxu1 %v4640_v22  ;;  %3244 = vmatmul.mubr.bf16.gmra.mxu0 %v1437_v55 }
 0x4b9   :  { %3247 = vmatprep.mubr.bf16.mxu0 %v4629_v9  ;;  %2109 = vmatprep.mubr.bf16.mxu1 %v3806_v1 }
 0x4c0   :  { %2110 = vmatmul.mubr.bf16.gmra.mxu1 %v4670_v45  ;;  %3248 = vmatmul.mubr.bf16.gmra.mxu0 %v4632_v11 }
 0x4c1   :  { %3251 = vmatprep.mubr.bf16.mxu0 %v1440_v50  ;;  %2119 = vmatprep.mubr.bf16.mxu1 %v3806_v1 }
 0x4c8   :  { %2120 = vmatmul.mubr.bf16.gmra.mxu1 %v1437_v55  ;;  %3252 = vmatmul.mubr.bf16.gmra.mxu0 %v4638_v12 }
 0x4c9   :  { %2129 = vmatprep.mubr.bf16.mxu1 %v3806_v1 }
 0x4d0   :  { %2130 = vmatmul.mubr.bf16.gmra.mxu1 %v4629_v9 }
 0x4d1   :  { %2139 = vmatprep.mubr.bf16.mxu1 %v3806_v1 }
 0x4d8   :  { %2140 = vmatmul.mubr.bf16.gmra.mxu1 %v4632_v11 }
 0x4d9   :  { %2149 = vmatprep.mubr.bf16.mxu1 %v3806_v1 }
 0x4e0   :  { %2150 = vmatmul.mubr.bf16.gmra.mxu1 %v1440_v50 }
 0x4e1   :  { %2159 = vmatprep.mubr.bf16.mxu1 %v3806_v1 }
 0x4e8   :  { %2160 = vmatmul.mubr.bf16.gmra.mxu1 %v4638_v12 }
 0x530   :  { %v1865_v1 = vpop.f32.mrf.mxu1  ;;  %v1978_v0 = vpop.f32.mrf.mxu0 }
 0x531   :  { %v1866_v37 = vadd.f32 %v1865_v1, %v4757_v46  ;;  %v1979_v15 = vadd.f32 %v1978_v0, %v4759_v57 }
 0x532   :  { %v1867_v48 = vpop.f32.mrf.mxu1  ;;  %v1980_v39 = vpop.f32.mrf.mxu0 }
 0x533   :  { %v2267_v47 = vsub.f32 0.0, %v1866_v37  ;;  %v2269_v26 = vsub.f32 0.0, %v1979_v15  ;;  %v1868_v33 = vadd.f32 %v1867_v48, %v4762_v61  ;;  %v1981_v6 = vadd.f32 %v1980_v39, %v4764_v13 }
 0x534   :  { %v1869_v8 = vpop.f32.mrf.mxu1  ;;  %v1982_v9 = vpop.f32.mrf.mxu0 }
 0x535   :  { %v2379_v40 = vmul.f32 1.442695, %v2267_v47  ;;  %v2383_v11 = vmul.f32 1.442695, %v2269_v26  ;;  %v2268_v36 = vsub.f32 0.0, %v1868_v33  ;;  %v2270_v17 = vsub.f32 0.0, %v1981_v6 }
 0x536   :  { %v1870_v44 = vadd.f32 %v1869_v8, %v4757_v46  ;;  %v1983_v18 = vadd.f32 %v1982_v9, %v4759_v57  ;;  %v1871_v12 = vpop.f32.mrf.mxu1  ;;  %v1984_v22 = vpop.f32.mrf.mxu0 }
 0x537   :  { %3355 = vpow2.f32 %v2379_v40  ;;  %v2381_v63 = vmul.f32 1.442695, %v2268_v36  ;;  %v2385_v21 = vmul.f32 1.442695, %v2270_v17  ;;  %v1872_v2 = vadd.f32 %v1871_v12, %v4762_v61 }
 0x538   :  { %3357 = vpow2.f32 %v2383_v11  ;;  %v2274_v3 = vsub.f32 0.0, %v1870_v44  ;;  %v2276_v31 = vsub.f32 0.0, %v1983_v18  ;;  %v1985_v34 = vadd.f32 %v1984_v22, %v4764_v13  ;;  %v1875_v5 = vpop.f32.mrf.mxu1  ;;  %v1988_v56 = vpop.f32.mrf.mxu0 }
 0x539   :  { %3359 = vpow2.f32 %v2381_v63  ;;  %v2275_v24 = vsub.f32 0.0, %v1872_v2  ;;  %v1876_v27 = vadd.f32 %v1875_v5, %v4757_v46  ;;  %v1989_v30 = vadd.f32 %v1988_v56, %v4759_v57 }
 0x53a   :  { %3361 = vpow2.f32 %v2385_v21  ;;  %v2393_v35 = vmul.f32 1.442695, %v2274_v3  ;;  %v2397_v45 = vmul.f32 1.442695, %v2276_v31  ;;  %v2277_v10 = vsub.f32 0.0, %v1985_v34  ;;  %v1877_v58 = vpop.f32.mrf.mxu1  ;;  %v1990_v4 = vpop.f32.mrf.mxu0 }
 0x53b   :  { %v2395_v7 = vmul.f32 1.442695, %v2275_v24  ;;  %v2281_v42 = vsub.f32 0.0, %v1876_v27  ;;  %v2283_v25 = vsub.f32 0.0, %v1989_v30  ;;  %v1878_v51 = vadd.f32 %v1877_v58, %v4762_v61 }
 0x53c   :  { %3363 = vpow2.f32 %v2393_v35  ;;  %v2399_v14 = vmul.f32 1.442695, %v2277_v10  ;;  %v1991_v53 = vadd.f32 %v1990_v4, %v4764_v13  ;;  %v1879_v60 = vpop.f32.mrf.mxu1  ;;  %v1992_v55 = vpop.f32.mrf.mxu0 }
 0x53d   :  { %3365 = vpow2.f32 %v2397_v45  ;;  %v2407_v19 = vmul.f32 1.442695, %v2281_v42  ;;  %v2411_v38 = vmul.f32 1.442695, %v2283_v25  ;;  %v2282_v20 = vsub.f32 0.0, %v1878_v51 }
 0x53e   :  { %3367 = vpow2.f32 %v2395_v7  ;;  %v2284_v49 = vsub.f32 0.0, %v1991_v53  ;;  %v1880_v43 = vadd.f32 %v1879_v60, %v4757_v46  ;;  %v1993_v16 = vadd.f32 %v1992_v55, %v4759_v57  ;;  %v1881_v32 = vpop.f32.mrf.mxu1  ;;  %v1994_v28 = vpop.f32.mrf.mxu0 }
 0x53f   :  { %3369 = vpow2.f32 %v2399_v14  ;;  %v2409_v62 = vmul.f32 1.442695, %v2282_v20  ;;  %v1882_v41 = vadd.f32 %v1881_v32, %v4762_v61  ;;  %v1995_v52 = vadd.f32 %v1994_v28, %v4764_v13 }
 0x540   :  { %3371 = vpow2.f32 %v2407_v19  ;;  %v2413_v50 = vmul.f32 1.442695, %v2284_v49  ;;  %v2288_v54 = vsub.f32 0.0, %v1880_v43  ;;  %v2290_v59 = vsub.f32 0.0, %v1993_v16  ;;  %v1885_v23 = vpop.f32.mrf.mxu1  ;;  %v1998_v1 = vpop.f32.mrf.mxu0 }
 0x541   :  { %3373 = vpow2.f32 %v2411_v38  ;;  %v2289_v0 = vsub.f32 0.0, %v1882_v41  ;;  %v2291_v26 = vsub.f32 0.0, %v1995_v52  ;;  %v1886_v63 = vadd.f32 %v1885_v23, %v4757_v46 }
 0x542   :  { %3375 = vpow2.f32 %v2409_v62  ;;  %v2421_v37 = vmul.f32 1.442695, %v2288_v54  ;;  %v2425_v15 = vmul.f32 1.442695, %v2290_v59  ;;  %v1887_v48 = vpop.f32.mrf.mxu1  ;;  %v2000_v39 = vpop.f32.mrf.mxu0  ;;  %v1999_v3 = vadd.f32 %v1998_v1, %v4759_v57 }
 0x543   :  { %3377 = vpow2.f32 %v2413_v50  ;;  %v2423_v47 = vmul.f32 1.442695, %v2289_v0  ;;  %v2427_v12 = vmul.f32 1.442695, %v2291_v26  ;;  %v2295_v45 = vsub.f32 0.0, %v1886_v63 }
 0x544   :  { %v3356_v33 = vpop.eup %3355  ;;  %3379 = vpow2.f32 %v2421_v37  ;;  %v1889_v6 = vpop.f32.mrf.mxu1  ;;  %v2297_v7 = vsub.f32 0.0, %v1999_v3  ;;  %v1888_v42 = vadd.f32 %v1887_v48, %v4762_v61  ;;  %v2001_v14 = vadd.f32 %v2000_v39, %v4764_v13 }
 0x545   :  { %v3358_v8 = vpop.eup %3357  ;;  %v2603_v9 = vadd.f32 1.0, %v3356_v33  ;;  %3381 = vpow2.f32 %v2425_v15  ;;  %v2002_v36 = vpop.f32.mrf.mxu0  ;;  %v1890_v38 = vadd.f32 %v1889_v6, %v4757_v46  ;;  %v2435_v43 = vmul.f32 1.442695, %v2295_v45 }
 0x546   :  { %v3360_v40 = vpop.eup %3359  ;;  %v2605_v11 = vadd.f32 1.0, %v3358_v8  ;;  %3383 = vpow2.f32 %v2423_v47  ;;  %v1891_v17 = vpop.f32.mrf.mxu1  ;;  %v2003_v16 = vadd.f32 %v2002_v36, %v4759_v57  ;;  %v2439_v41 = vmul.f32 1.442695, %v2297_v7 }
 0x547   :  { %v3362_v44 = vpop.eup %3361  ;;  %3385 = vrcp.f32 %v2603_v9  ;;  %v2604_v18 = vadd.f32 1.0, %v3360_v40  ;;  %v2004_v5 = vpop.f32.mrf.mxu0  ;;  %v2296_v52 = vsub.f32 0.0, %v1888_v42  ;;  %v2298_v59 = vsub.f32 0.0, %v2001_v14 }
 0x548   :  { %3387 = vrcp.f32 %v2605_v11  ;;  %v2606_v22 = vadd.f32 1.0, %v3362_v44  ;;  %v1895_v21 = vpop.f32.mrf.mxu1  ;;  %v1892_v23 = vadd.f32 %v1891_v17, %v4762_v61  ;;  %v2302_v48 = vsub.f32 0.0, %v1890_v38 }
 0x549   :  { %v3364_v2 = vpop.eup %3363  ;;  %3389 = vrcp.f32 %v2604_v18  ;;  %v2008_v53 = vpop.f32.mrf.mxu0  ;;  %v2005_v39 = vadd.f32 %v2004_v5, %v4764_v13  ;;  %v2304_v33 = vsub.f32 0.0, %v2003_v16  ;;  %v1896_v6 = vadd.f32 %v1895_v21, %v4757_v46 }
 0x54a   :  { %v3366_v31 = vpop.eup %3365  ;;  %3391 = vrcp.f32 %v2606_v22  ;;  %v2610_v34 = vadd.f32 1.0, %v3364_v2  ;;  %v4784_v56 = vpop.f32.mrf.mxu1  ;;  %v2437_v40 = vmul.f32 1.442695, %v2296_v52  ;;  %v2009_v11 = vadd.f32 %v2008_v53, %v4759_v57 }
 0x54b   :  { %v3368_v24 = vpop.eup %3367  ;;  %v2612_v27 = vadd.f32 1.0, %v3366_v31  ;;  %3393 = vpow2.f32 %v2427_v12  ;;  %v2010_v1 = vpop.f32.mrf.mxu0  ;;  %v2441_v17 = vmul.f32 1.442695, %v2298_v59  ;;  %v2303_v44 = vsub.f32 0.0, %v1892_v23 }
 0x54c   :  { %v3370_v30 = vpop.eup %3369  ;;  %3395 = vrcp.f32 %v2610_v34  ;;  %v2611_v35 = vadd.f32 1.0, %v3368_v24  ;;  %v4786_v10 = vpop.f32.mrf.mxu1  ;;  %v1898_v18 = vadd.f32 %v4784_v56, %v4762_v61  ;;  %v2449_v21 = vmul.f32 1.442695, %v2302_v48 }
 0x54d   :  { %v3372_v58 = vpop.eup %3371  ;;  %3397 = vrcp.f32 %v2612_v27  ;;  %v2613_v4 = vadd.f32 1.0, %v3370_v30  ;;  %v2012_v12 = vpop.f32.mrf.mxu0  ;;  %v2305_v2 = vsub.f32 0.0, %v2005_v39  ;;  %v2011_v3 = vadd.f32 %v2010_v1, %v4764_v13 }
 0x54e   :  { %v3374_v25 = vpop.eup %3373  ;;  %3399 = vrcp.f32 %v2611_v35  ;;  %v2617_v51 = vadd.f32 1.0, %v3372_v58  ;;  %v4790_v60 = vpop.f32.mrf.mxu1  ;;  %v2453_v34 = vmul.f32 1.442695, %v2304_v33  ;;  %v2309_v5 = vsub.f32 0.0, %v1896_v6 }
 0x54f   :  { %v3376_v55 = vpop.eup %3375  ;;  %3401 = vrcp.f32 %v2613_v4  ;;  %v2619_v19 = vadd.f32 1.0, %v3374_v25  ;;  %v1900_v56 = vadd.f32 %v4786_v10, %v4757_v46  ;;  %v2311_v35 = vsub.f32 0.0, %v2009_v11  ;;  %v2014_v10 = vpop.f32.mrf.mxu0 }
 0x550   :  { %v3378_v20 = vpop.eup %3377  ;;  %3403 = vrcp.f32 %v2617_v51  ;;  %v2618_v49 = vadd.f32 1.0, %v3376_v55  ;;  %v4794_v32 = vpop.f32.mrf.mxu1  ;;  %v2013_v45 = vadd.f32 %v2012_v12, %v4759_v57  ;;  %v2451_v4 = vmul.f32 1.442695, %v2303_v44 }
 0x551   :  { %v3380_v28 = vpop.eup %3379  ;;  %3405 = vrcp.f32 %v2619_v19  ;;  %v2620_v62 = vadd.f32 1.0, %v3378_v20  ;;  %v2310_v7 = vsub.f32 0.0, %v1898_v18  ;;  %v1902_v42 = vadd.f32 %v4790_v60, %v4762_v61 }
 0x552   :  { %v3382_v50 = vpop.eup %3381  ;;  %3407 = vrcp.f32 %v2618_v49  ;;  %v2624_v54 = vadd.f32 1.0, %v3380_v28  ;;  %v4797_v0 = vpop.f32.mrf.mxu1  ;;  %v2455_v14 = vmul.f32 1.442695, %v2305_v2  ;;  %v2312_v53 = vsub.f32 0.0, %v2011_v3 }
 0x553   :  { %v3384_v37 = vpop.eup %3383  ;;  %3409 = vrcp.f32 %v2620_v62  ;;  %v2626_v15 = vadd.f32 1.0, %v3382_v50  ;;  %v2463_v19 = vmul.f32 1.442695, %v2309_v5  ;;  %v2316_v38 = vsub.f32 0.0, %v1900_v56 }
 0x554   :  { %v3386_v47 = vpop.eup %3385  ;;  %3411 = vrcp.f32 %v2624_v54  ;;  %v2625_v26 = vadd.f32 1.0, %v3384_v37  ;;  %v4801_v8 = vpop.f32.mrf.mxu1  ;;  %v2467_v49 = vmul.f32 1.442695, %v2311_v35  ;;  %v2465_v28 = vmul.f32 1.442695, %v2310_v7 }
 0x555   :  { %v3388_v9 = vpop.eup %3387  ;;  %2827 = vst [vmem:[%s5388_s8] sm:$0xff] %v3386_v47  ;;  %3413 = vrcp.f32 %v2626_v15  ;;  %v2317_v62 = vsub.f32 0.0, %v1902_v42  ;;  %v2469_v54 = vmul.f32 1.442695, %v2312_v53  ;;  %v2015_v59 = vadd.f32 %v2014_v10, %v4764_v13 }
 0x556   :  { %v3390_v36 = vpop.eup %3389  ;;  %2829 = vst [vmem:[%s5388_s8 + $0x10] sm:$0xff] %v3388_v9  ;;  %3415 = vrcp.f32 %v2625_v26  ;;  %v4812_v22 = vpop.f32.mrf.mxu1  ;;  %v2477_v1 = vmul.f32 1.442695, %v2316_v38  ;;  %v1908_v53 = vadd.f32 %v4797_v0, %v4762_v61 }
 0x557   :  { %v3392_v63 = vpop.eup %3391  ;;  %2828 = vst [vmem:[%s5388_s8 + $0x8] sm:$0xff] %v3390_v36  ;;  %3417 = vpow2.f32 %v2435_v43  ;;  %v2318_v43 = vsub.f32 0.0, %v2013_v45  ;;  %v2479_v47 = vmul.f32 1.442695, %v2317_v62  ;;  %v2319_v6 = vsub.f32 0.0, %v2015_v59 }
 0x558   :  { %v3394_v31 = vpop.eup %3393  ;;  %2830 = vst [vmem:[%s5388_s8 + $0x18] sm:$0xff] %v3392_v63  ;;  %3419 = vpow2.f32 %v2439_v41  ;;  %v4823_v24 = vpop.f32.mrf.mxu1 }
 0x559   :  { %v3396_v27 = vpop.eup %3395  ;;  %v2627_v30 = vadd.f32 1.0, %v3394_v31  ;;  %3421 = vpow2.f32 %v2437_v40  ;;  %v2018_v41 = vpop.f32.mrf.mxu0  ;;  %v2481_v48 = vmul.f32 1.442695, %v2318_v43 }
 0x55a   :  { %v3398_v58 = vpop.eup %3397  ;;  %2834 = vst [vmem:[%s5388_s8 + $0x38] sm:$0xff] %v3396_v27  ;;  %3423 = vpow2.f32 %v2441_v17  ;;  %v4831_v25 = vpop.f32.mrf.mxu1  ;;  %v2019_v56 = vadd.f32 %v2018_v41, %v4759_v57 }
 0x55b   :  { %v3400_v51 = vpop.eup %3399  ;;  %2836 = vst [vmem:[%s5388_s8 + $0x48] sm:$0xff] %v3398_v58  ;;  %3425 = vrcp.f32 %v2627_v30  ;;  %v2020_v26 = vpop.f32.mrf.mxu0 }
 0x55c   :  { %v3402_v55 = vpop.eup %3401  ;;  %2835 = vst [vmem:[%s5388_s8 + $0x40] sm:$0xff] %v3400_v51  ;;  %3427 = vpow2.f32 %v2449_v21  ;;  %v4839_v60 = vpop.f32.mrf.mxu1  ;;  %v2483_v21 = vmul.f32 1.442695, %v2319_v6  ;;  %v2021_v38 = vadd.f32 %v2020_v26, %v4764_v13 }
 0x55d   :  { %v3404_v20 = vpop.eup %3403  ;;  %2837 = vst [vmem:[%s5388_s8 + $0x50] sm:$0xff] %v3402_v55  ;;  %3429 = vpow2.f32 %v2453_v34  ;;  %v2022_v18 = vpop.f32.mrf.mxu0  ;;  %v1906_v34 = vadd.f32 %v4794_v32, %v4757_v46 }
 0x55e   :  { %v3406_v16 = vpop.eup %3405  ;;  %2841 = vst [vmem:[%s5388_s8 + $0x70] sm:$0xff] %v3404_v20  ;;  %3431 = vpow2.f32 %v2451_v4  ;;  %v4847_v52 = vpop.f32.mrf.mxu1  ;;  %v2023_v0 = vadd.f32 %v2022_v18, %v4759_v57  ;;  %v1916_v18 = vadd.f32 %v4823_v24, %v4757_v46  ;;  %v1918_v24 = vadd.f32 %v4831_v25, %v4762_v61 }
 0x55f   :  { %v3408_v50 = vpop.eup %3407  ;;  %2843 = vst [vmem:[%s5388_s8 + $0x80] sm:$0xff] %v3406_v16  ;;  %3433 = vpow2.f32 %v2455_v14  ;;  %v2024_v35 = vpop.f32.mrf.mxu0  ;;  %v2323_v42 = vsub.f32 0.0, %v1906_v34  ;;  %v2325_v14 = vsub.f32 0.0, %v2019_v56  ;;  %v1910_v16 = vadd.f32 %v4801_v8, %v4757_v46 }
 0x560   :  { %v3410_v23 = vpop.eup %3409  ;;  %2842 = vst [vmem:[%s5388_s8 + $0x78] sm:$0xff] %v3408_v50  ;;  %3435 = vpow2.f32 %v2463_v19  ;;  %v4856_v37 = vpop.f32.mrf.mxu1  ;;  %v1912_v8 = vadd.f32 %v4812_v22, %v4762_v61 }
 0x561   :  { %v3412_v15 = vpop.eup %3411  ;;  %2844 = vst [vmem:[%s5388_s8 + $0x88] sm:$0xff] %v3410_v23  ;;  %3437 = vpow2.f32 %v2467_v49  ;;  %v2028_v20 = vpop.f32.mrf.mxu0  ;;  %v2491_v50 = vmul.f32 1.442695, %v2323_v42  ;;  %v2495_v23 = vmul.f32 1.442695, %v2325_v14  ;;  %v2330_v6 = vsub.f32 0.0, %v1910_v16 }
 0x562   :  { %v3414_v39 = vpop.eup %3413  ;;  %2848 = vst [vmem:[%s5388_s8 + $0xa8] sm:$0xff] %v3412_v15  ;;  %3439 = vpow2.f32 %v2465_v28  ;;  %v4867_v9 = vpop.f32.mrf.mxu1 }
 0x563   :  { %v3416_v33 = vpop.eup %3415  ;;  %2850 = vst [vmem:[%s5388_s8 + $0xb8] sm:$0xff] %v3414_v39  ;;  %3441 = vpow2.f32 %v2469_v54  ;;  %v2326_v39 = vsub.f32 0.0, %v2021_v38  ;;  %v2505_v56 = vmul.f32 1.442695, %v2330_v6 }
 0x564   :  { %v3418_v40 = vpop.eup %3417  ;;  %2849 = vst [vmem:[%s5388_s8 + $0xb0] sm:$0xff] %v3416_v33  ;;  %3443 = vpow2.f32 %v2477_v1  ;;  %v4872_v2 = vpop.f32.mrf.mxu1  ;;  %v2324_v1 = vsub.f32 0.0, %v1908_v53 }
 0x565   :  { %v3420_v11 = vpop.eup %3419  ;;  %v2631_v36 = vadd.f32 1.0, %v3418_v40  ;;  %3445 = vpow2.f32 %v2481_v48  ;;  %v2025_v40 = vadd.f32 %v2024_v35, %v4764_v13 }
 0x566   :  { %v3422_v17 = vpop.eup %3421  ;;  %v2633_v44 = vadd.f32 1.0, %v3420_v11  ;;  %3447 = vpow2.f32 %v2479_v47  ;;  %v4880_v4 = vpop.f32.mrf.mxu1  ;;  %v2493_v22 = vmul.f32 1.442695, %v2324_v1 }
 0x567   :  { %v3424_v12 = vpop.eup %3423  ;;  %3449 = vrcp.f32 %v2631_v36  ;;  %v2632_v63 = vadd.f32 1.0, %v3422_v17  ;;  %v2030_v47 = vpop.f32.mrf.mxu0 }
 0x568   :  { %v3426_v3 = vpop.eup %3425  ;;  %3451 = vrcp.f32 %v2633_v44  ;;  %v2634_v31 = vadd.f32 1.0, %v3424_v12  ;;  %v4887_v28 = vpop.f32.mrf.mxu1  ;;  %v2332_v44 = vsub.f32 0.0, %v2023_v0 }
 0x569   :  { %v3428_v5 = vpop.eup %3427  ;;  %2851 = vst [vmem:[%s5388_s8 + $0xc0] sm:$0xff] %v3426_v3  ;;  %3453 = vrcp.f32 %v2632_v63  ;;  %v2029_v63 = vadd.f32 %v2028_v20, %v4759_v57  ;;  %v2497_v3 = vmul.f32 1.442695, %v2326_v39  ;;  %v2032_v34 = vpop.f32.mrf.mxu0 }
 0x56a   :  { %v3430_v27 = vpop.eup %3429  ;;  %3455 = vrcp.f32 %v2634_v31  ;;  %v2638_v30 = vadd.f32 1.0, %v3428_v5  ;;  %v4893_v11 = vpop.f32.mrf.mxu1  ;;  %v2331_v31 = vsub.f32 0.0, %v1912_v8  ;;  %v2509_v25 = vmul.f32 1.442695, %v2332_v44 }
 0x56b   :  { %v3432_v45 = vpop.eup %3431  ;;  %v2640_v58 = vadd.f32 1.0, %v3430_v27  ;;  %3457 = vpow2.f32 %v2483_v21  ;;  %v2333_v27 = vsub.f32 0.0, %v2025_v40  ;;  %v2034_v38 = vpop.f32.mrf.mxu0 }
 0x56c   :  { %v3434_v7 = vpop.eup %3433  ;;  %3459 = vrcp.f32 %v2638_v30  ;;  %v2639_v32 = vadd.f32 1.0, %v3432_v45  ;;  %v2031_v30 = vadd.f32 %v2030_v47, %v4764_v13  ;;  %v4910_v35 = vpop.f32.mrf.mxu1  ;;  %v2507_v53 = vmul.f32 1.442695, %v2331_v31 }
 0x56d   :  { %v3436_v10 = vpop.eup %3435  ;;  %3461 = vrcp.f32 %v2640_v58  ;;  %v2641_v51 = vadd.f32 1.0, %v3434_v7  ;;  %v2337_v58 = vsub.f32 0.0, %v1916_v18  ;;  %v1920_v7 = vadd.f32 %v4839_v60, %v4757_v46  ;;  %v2038_v1 = vpop.f32.mrf.mxu0 }
 0x56e   :  { %v3438_v55 = vpop.eup %3437  ;;  %3463 = vrcp.f32 %v2639_v32  ;;  %v2645_v19 = vadd.f32 1.0, %v3436_v10  ;;  %v2339_v10 = vsub.f32 0.0, %v2029_v63  ;;  %v2511_v60 = vmul.f32 1.442695, %v2333_v27 }
 0x56f   :  { %v3440_v49 = vpop.eup %3439  ;;  %3465 = vrcp.f32 %v2641_v51  ;;  %v2647_v43 = vadd.f32 1.0, %v3438_v55  ;;  %v2033_v51 = vadd.f32 %v2032_v34, %v4759_v57  ;;  %v2338_v55 = vsub.f32 0.0, %v1918_v24 }
 0x570   :  { %v3442_v62 = vpop.eup %3441  ;;  %3467 = vrcp.f32 %v2645_v19  ;;  %v2646_v41 = vadd.f32 1.0, %v3440_v49  ;;  %v1922_v19 = vadd.f32 %v4847_v52, %v4762_v61  ;;  %v2340_v49 = vsub.f32 0.0, %v2031_v30 }
 0x571   :  { %v3444_v54 = vpop.eup %3443  ;;  %3469 = vrcp.f32 %v2647_v43  ;;  %v2648_v59 = vadd.f32 1.0, %v3442_v62  ;;  %v4926_v43 = vpop.f32.mrf.mxu1  ;;  %v2519_v62 = vmul.f32 1.442695, %v2337_v58  ;;  %v2346_v0 = vsub.f32 0.0, %v2033_v51 }
 0x572   :  { %v3446_v15 = vpop.eup %3445  ;;  %3471 = vrcp.f32 %v2646_v41  ;;  %v2652_v48 = vadd.f32 1.0, %v3444_v54  ;;  %v2344_v41 = vsub.f32 0.0, %v1920_v7  ;;  %v2035_v39 = vadd.f32 %v2034_v38, %v4764_v13 }
 0x573   :  { %v3448_v26 = vpop.eup %3447  ;;  %3473 = vrcp.f32 %v2648_v59  ;;  %v2654_v33 = vadd.f32 1.0, %v3446_v15  ;;  %v2521_v59 = vmul.f32 1.442695, %v2338_v55  ;;  %v4941_v8 = vpop.f32.mrf.mxu1  ;;  %v2537_v6 = vmul.f32 1.442695, %v2346_v0 }
 0x574   :  { %v3450_v36 = vpop.eup %3449  ;;  %3475 = vrcp.f32 %v2652_v48  ;;  %v2653_v17 = vadd.f32 1.0, %v3448_v26  ;;  %v2525_v48 = vmul.f32 1.442695, %v2340_v49  ;;  %v2533_v26 = vmul.f32 1.442695, %v2344_v41 }
 0x575   :  { %v3452_v12 = vpop.eup %3451  ;;  %2855 = vst [vmem:[%s5388_s8 + $0xe0] sm:$0xff] %v3450_v36  ;;  %3477 = vrcp.f32 %v2654_v33  ;;  %v2347_v18 = vsub.f32 0.0, %v2035_v39  ;;  %v1926_v58 = vadd.f32 %v4856_v37, %v4757_v46  ;;  %v2039_v7 = vadd.f32 %v2038_v1, %v4759_v57 }
 0x576   :  { %v3454_v21 = vpop.eup %3453  ;;  %2857 = vst [vmem:[%s5388_s8 + $0xf0] sm:$0xff] %v3452_v12  ;;  %3479 = vrcp.f32 %v2653_v17  ;;  %v2040_v17 = vpop.f32.mrf.mxu0  ;;  %v1928_v38 = vadd.f32 %v4867_v9, %v4762_v61 }
 0x577   :  { %v3456_v5 = vpop.eup %3455  ;;  %2856 = vst [vmem:[%s5388_s8 + $0xe8] sm:$0xff] %v3454_v21  ;;  %3481 = vpow2.f32 %v2491_v50  ;;  %v2523_v50 = vmul.f32 1.442695, %v2339_v10  ;;  %v4955_v12 = vpop.f32.mrf.mxu1  ;;  %v2353_v49 = vsub.f32 0.0, %v2039_v7  ;;  %v2041_v41 = vadd.f32 %v2040_v17, %v4764_v13 }
 0x578   :  { %v3458_v45 = vpop.eup %3457  ;;  %2858 = vst [vmem:[%s5388_s8 + $0xf8] sm:$0xff] %v3456_v5  ;;  %3483 = vpow2.f32 %v2495_v23  ;;  %v2345_v23 = vsub.f32 0.0, %v1922_v19  ;;  %v2042_v24 = vpop.f32.mrf.mxu0  ;;  %v2352_v1 = vsub.f32 0.0, %v1928_v38 }
 0x579   :  { %v3460_v32 = vpop.eup %3459  ;;  %v2655_v42 = vadd.f32 1.0, %v3458_v45  ;;  %3485 = vpow2.f32 %v2493_v22  ;;  %v4960_v27 = vpop.f32.mrf.mxu1 }
 0x57a   :  { %v3462_v14 = vpop.eup %3461  ;;  %2862 = vst [vmem:[%s5388_s8 + $0x118] sm:$0xff] %v3460_v32  ;;  %3487 = vpow2.f32 %v2497_v3  ;;  %v2535_v36 = vmul.f32 1.442695, %v2345_v23  ;;  %v2044_v10 = vpop.f32.mrf.mxu0 }
 0x57b   :  { %v3464_v20 = vpop.eup %3463  ;;  %2864 = vst [vmem:[%s5388_s8 + $0x128] sm:$0xff] %v3462_v14  ;;  %3489 = vrcp.f32 %v2655_v42 }
 0x57c   :  { %v3466_v16 = vpop.eup %3465  ;;  %2863 = vst [vmem:[%s5388_s8 + $0x120] sm:$0xff] %v3464_v20  ;;  %3491 = vpow2.f32 %v2505_v56  ;;  %v2539_v56 = vmul.f32 1.442695, %v2347_v18 }
 0x57d   :  { %v3468_v52 = vpop.eup %3467  ;;  %2865 = vst [vmem:[%s5388_s8 + $0x130] sm:$0xff] %v3466_v16  ;;  %3493 = vpow2.f32 %v2509_v25 }
 0x57e   :  { %v3470_v54 = vpop.eup %3469  ;;  %2869 = vst [vmem:[%s5388_s8 + $0x150] sm:$0xff] %v3468_v52  ;;  %3495 = vpow2.f32 %v2507_v53  ;;  %v4968_v53 = vpop.f32.mrf.mxu1 }
 0x57f   :  { %v3472_v15 = vpop.eup %3471  ;;  %2871 = vst [vmem:[%s5388_s8 + $0x160] sm:$0xff] %v3470_v54  ;;  %3497 = vpow2.f32 %v2511_v60  ;;  %v2351_v60 = vsub.f32 0.0, %v1926_v58  ;;  %v2048_v52 = vpop.f32.mrf.mxu0  ;;  %v1930_v54 = vadd.f32 %v4872_v2, %v4757_v46  ;;  %v1932_v2 = vadd.f32 %v4880_v4, %v4762_v61 }
 0x580   :  { %v3474_v47 = vpop.eup %3473  ;;  %2870 = vst [vmem:[%s5388_s8 + $0x158] sm:$0xff] %v3472_v15  ;;  %3499 = vpow2.f32 %v2519_v62  ;;  %v2043_v15 = vadd.f32 %v2042_v24, %v4759_v57  ;;  %v1936_v24 = vadd.f32 %v4887_v28, %v4757_v46  ;;  %v2549_v4 = vmul.f32 1.442695, %v2352_v1 }
 0x581   :  { %v3476_v33 = vpop.eup %3475  ;;  %2872 = vst [vmem:[%s5388_s8 + $0x168] sm:$0xff] %v3474_v47  ;;  %3501 = vpow2.f32 %v2523_v50  ;;  %v2547_v47 = vmul.f32 1.442695, %v2351_v60  ;;  %v2358_v18 = vsub.f32 0.0, %v1930_v54  ;;  %v1938_v28 = vadd.f32 %v4893_v11, %v4762_v61 }
 0x582   :  { %v3478_v40 = vpop.eup %3477  ;;  %2876 = vst [vmem:[%s5388_s8 + $0x188] sm:$0xff] %v3476_v33  ;;  %3503 = vpow2.f32 %v2521_v59  ;;  %v4975_v59 = vpop.f32.mrf.mxu1 }
 0x583   :  { %v3480_v44 = vpop.eup %3479  ;;  %2878 = vst [vmem:[%s5388_s8 + $0x198] sm:$0xff] %v3478_v40  ;;  %3505 = vpow2.f32 %v2525_v48  ;;  %v2354_v40 = vsub.f32 0.0, %v2041_v41  ;;  %v2561_v7 = vmul.f32 1.442695, %v2358_v18 }
 0x584   :  { %v3482_v22 = vpop.eup %3481  ;;  %2877 = vst [vmem:[%s5388_s8 + $0x190] sm:$0xff] %v3480_v44  ;;  %3507 = vpow2.f32 %v2533_v26  ;;  %v2551_v26 = vmul.f32 1.442695, %v2353_v49 }
 0x585   :  { %v3484_v63 = vpop.eup %3483  ;;  %v2659_v21 = vadd.f32 1.0, %v3482_v22  ;;  %3509 = vpow2.f32 %v2537_v6  ;;  %v2045_v22 = vadd.f32 %v2044_v10, %v4764_v13 }
 0x586   :  { %v3486_v3 = vpop.eup %3485  ;;  %v2661_v31 = vadd.f32 1.0, %v3484_v63  ;;  %3511 = vpow2.f32 %v2535_v36  ;;  %v2050_v36 = vpop.f32.mrf.mxu0 }
 0x587   :  { %v3488_v34 = vpop.eup %3487  ;;  %3513 = vrcp.f32 %v2659_v21  ;;  %v2660_v5 = vadd.f32 1.0, %v3486_v3  ;;  %v4981_v63 = vpop.f32.mrf.mxu1 }
 0x588   :  { %v3490_v30 = vpop.eup %3489  ;;  %3515 = vrcp.f32 %v2661_v31  ;;  %v2662_v45 = vadd.f32 1.0, %v3488_v34  ;;  %v2360_v31 = vsub.f32 0.0, %v2043_v15 }
 0x589   :  { %v3492_v25 = vpop.eup %3491  ;;  %2879 = vst [vmem:[%s5388_s8 + $0x1a0] sm:$0xff] %v3490_v30  ;;  %3517 = vrcp.f32 %v2660_v5  ;;  %v2049_v5 = vadd.f32 %v2048_v52, %v4759_v57  ;;  %v2553_v30 = vmul.f32 1.442695, %v2354_v40  ;;  %v4998_v10 = vpop.f32.mrf.mxu1 }
 0x58a   :  { %v3494_v32 = vpop.eup %3493  ;;  %3519 = vrcp.f32 %v2662_v45  ;;  %v2666_v42 = vadd.f32 1.0, %v3492_v25  ;;  %v2359_v45 = vsub.f32 0.0, %v1932_v2  ;;  %v2052_v25 = vpop.f32.mrf.mxu0  ;;  %v2565_v11 = vmul.f32 1.442695, %v2360_v31 }
 0x58b   :  { %v3496_v51 = vpop.eup %3495  ;;  %v2668_v14 = vadd.f32 1.0, %v3494_v32  ;;  %3521 = vpow2.f32 %v2539_v56  ;;  %v2361_v32 = vsub.f32 0.0, %v2045_v22  ;;  %v1530_v31 = vsub.s32 5, %v4018_v29 }
 0x58c   :  { %v3498_v55 = vpop.eup %3497  ;;  %3523 = vrcp.f32 %v2666_v42  ;;  %v2667_v19 = vadd.f32 1.0, %v3496_v51  ;;  %v2051_v42 = vadd.f32 %v2050_v36, %v4764_v13  ;;  %v2563_v49 = vmul.f32 1.442695, %v2359_v45  ;;  %v2054_v41 = vpop.f32.mrf.mxu0 }
 0x58d   :  { %v3500_v20 = vpop.eup %3499  ;;  %3525 = vrcp.f32 %v2668_v14  ;;  %v2669_v37 = vadd.f32 1.0, %v3498_v55  ;;  %v2365_v14 = vsub.f32 0.0, %v1936_v24  ;;  %v1940_v55 = vadd.f32 %v4910_v35, %v4757_v46  ;;  %v5014_v35 = vpop.f32.mrf.mxu1 }
 0x58e   :  { %v3502_v16 = vpop.eup %3501  ;;  %3527 = vrcp.f32 %v2667_v19  ;;  %v2673_v62 = vadd.f32 1.0, %v3500_v20  ;;  %v2367_v20 = vsub.f32 0.0, %v2049_v5  ;;  %v2567_v46 = vmul.f32 1.442695, %v2361_v32 }
 0x58f   :  { %v3504_v50 = vpop.eup %3503  ;;  %3529 = vrcp.f32 %v2669_v37  ;;  %v2675_v0 = vadd.f32 1.0, %v3502_v16  ;;  %v2053_v37 = vadd.f32 %v2052_v25, %v4759_v57  ;;  %v2366_v16 = vsub.f32 0.0, %v1938_v28 }
 0x590   :  { %v3506_v9 = vpop.eup %3505  ;;  %3531 = vrcp.f32 %v2673_v62  ;;  %v2674_v23 = vadd.f32 1.0, %v3504_v50  ;;  %v1942_v62 = vadd.f32 %v4926_v43, %v4762_v61  ;;  %v2368_v57 = vsub.f32 0.0, %v2051_v42 }
 0x591   :  { %v3508_v48 = vpop.eup %3507  ;;  %3533 = vrcp.f32 %v2675_v0  ;;  %v2676_v39 = vadd.f32 1.0, %v3506_v9  ;;  %v2575_v0 = vmul.f32 1.442695, %v2365_v14  ;;  %v2372_v54 = vsub.f32 0.0, %v1940_v55 }
 0x592   :  { %v3510_v33 = vpop.eup %3509  ;;  %3535 = vrcp.f32 %v2674_v23  ;;  %v2680_v6 = vadd.f32 1.0, %v3508_v48  ;;  %v2579_v43 = vmul.f32 1.442695, %v2367_v20  ;;  %v2374_v9 = vsub.f32 0.0, %v2053_v37  ;;  %v3241_v48 = vpop.f32.mrf.mxu0 }
 0x593   :  { %v3512_v17 = vpop.eup %3511  ;;  %3537 = vrcp.f32 %v2676_v39  ;;  %v2682_v44 = vadd.f32 1.0, %v3510_v33  ;;  %v2577_v1 = vmul.f32 1.442695, %v2366_v16  ;;  %v2373_v15 = vsub.f32 0.0, %v1942_v62  ;;  %v5029_v33 = vpop.f32.mrf.mxu1 }
 0x594   :  { %v3514_v21 = vpop.eup %3513  ;;  %3539 = vrcp.f32 %v2680_v6  ;;  %v2681_v3 = vadd.f32 1.0, %v3512_v17  ;;  %v2589_v40 = vmul.f32 1.442695, %v2372_v54  ;;  %v2593_v36 = vmul.f32 1.442695, %v2374_v9  ;;  %v2204_v22 = vpop.f32.mrf.mxu0 }
 0x595   :  { %v3516_v34 = vpop.eup %3515  ;;  %2883 = vst [vmem:[%s5388_s8 + $0x1c0] sm:$0xff] %v3514_v21  ;;  %3541 = vrcp.f32 %v2682_v44  ;;  %v1526_v17 = vsub.s32 4, %v4018_v29  ;;  %v2591_v18 = vmul.f32 1.442695, %v2373_v15  ;;  %v5046_v24 = vpop.f32.mrf.mxu1 }
 0x596   :  { %v3518_v56 = vpop.eup %3517  ;;  %2885 = vst [vmem:[%s5388_s8 + $0x1d0] sm:$0xff] %v3516_v34  ;;  %3543 = vrcp.f32 %v2681_v3  ;;  %v3242_v25 = vpop.f32.mrf.mxu0 }
 0x597   :  { %v3520_v58 = vpop.eup %3519  ;;  %2884 = vst [vmem:[%s5388_s8 + $0x1c8] sm:$0xff] %v3518_v56  ;;  %3545 = vpow2.f32 %v2547_v47  ;;  %v2581_v47 = vmul.f32 1.442695, %v2368_v57  ;;  %v3803_v56 = vld [vmem:[%s5387_s7] sm:$0x7f] }
 0x598   :  { %v3522_v51 = vpop.eup %3521  ;;  %2886 = vst [vmem:[%s5388_s8 + $0x1d8] sm:$0xff] %v3520_v58  ;;  %3547 = vpow2.f32 %v2551_v26  ;;  %v2055_v26 = vadd.f32 %v2054_v41, %v4764_v13  ;;  %v1534_v13 = vsub.s32 6, %v4018_v29  ;;  %v5058_v42 = vrot.slane %v3803_v56, %v1530_v31 }
 0x599   :  { %v3524_v19 = vpop.eup %3523  ;;  %v2683_v38 = vadd.f32 1.0, %v3522_v51  ;;  %3549 = vpow2.f32 %v2549_v4  ;;  %v5060_v51 = vpop.f32.mrf.mxu1 }
 0x59a   :  { %v3526_v60 = vpop.eup %3525  ;;  %2890 = vst [vmem:[%s5388_s8 + $0x1f8] sm:$0xff] %v3524_v19  ;;  %3551 = vpow2.f32 %v2553_v30  ;;  %v2375_v3 = vsub.f32 0.0, %v2055_v26  ;;  %v5054_v30 = vrot.slane %v3803_v56, %v1526_v17  ;;  %v5056_v45 = vrot.slane %v3803_v56, %v1534_v13 }
 0x59b   :  { %v3528_v52 = vpop.eup %3527  ;;  %2892 = vst [vmem:[%s5388_s8 + $0x208] sm:$0xff] %v3526_v60  ;;  %3553 = vrcp.f32 %v2683_v38  ;;  %v2207_v60 = vpop.f32.mrf.mxu0  ;;  %v2094_v62 = vadd.f32 %v4955_v12, %v5058_v42 }
 0x59c   :  { %v3530_v50 = vpop.eup %3529  ;;  %2891 = vst [vmem:[%s5388_s8 + $0x200] sm:$0xff] %v3528_v52  ;;  %3555 = vpow2.f32 %v2561_v7  ;;  %v2595_v32 = vmul.f32 1.442695, %v2375_v3  ;;  %v2092_v19 = vadd.f32 %v4941_v8, %v5054_v30  ;;  %v2213_v38 = vadd.f32 %v3241_v48, %v5056_v45  ;;  %v5070_v41 = vpop.f32.mrf.mxu1 }
 0x59d   :  { %v3532_v61 = vpop.eup %3531  ;;  %2893 = vst [vmem:[%s5388_s8 + $0x210] sm:$0xff] %v3530_v50  ;;  %3557 = vpow2.f32 %v2565_v11  ;;  %v3245_v9 = vpop.f32.mrf.mxu0  ;;  %v2272_v12 = vsub.f32 0.0, %v2094_v62  ;;  %v2216_v26 = vadd.f32 %v3242_v25, %v5056_v45  ;;  %v2102_v31 = vadd.f32 %v4975_v59, %v5054_v30 }
 0x59e   :  { %v3534_v23 = vpop.eup %3533  ;;  %2897 = vst [vmem:[%s5388_s8 + $0x230] sm:$0xff] %v3532_v61  ;;  %3559 = vpow2.f32 %v2563_v49  ;;  %v2271_v50 = vsub.f32 0.0, %v2092_v19  ;;  %v5073_v15 = vpop.f32.mrf.mxu1  ;;  %v2229_v25 = vadd.f32 %v3245_v9, %v5056_v45 }
 0x59f   :  { %v3536_v39 = vpop.eup %3535  ;;  %2899 = vst [vmem:[%s5388_s8 + $0x240] sm:$0xff] %v3534_v23  ;;  %3561 = vpow2.f32 %v2567_v46  ;;  %v2285_v19 = vsub.f32 0.0, %v2102_v31 }
 0x5a0   :  { %v3538_v6 = vpop.eup %3537  ;;  %2898 = vst [vmem:[%s5388_s8 + $0x238] sm:$0xff] %v3536_v39  ;;  %3563 = vpow2.f32 %v2575_v0  ;;  %v2287_v0 = vsub.f32 0.0, %v2213_v38 }
 0x5a1   :  { %v3540_v2 = vpop.eup %3539  ;;  %2900 = vst [vmem:[%s5388_s8 + $0x248] sm:$0xff] %v3538_v6  ;;  %3565 = vpow2.f32 %v2579_v43  ;;  %v2205_v43 = vadd.f32 %v2204_v22, %v5056_v45  ;;  %v2220_v22 = vpop.f32.mrf.mxu0 }
 0x5a2   :  { %v3542_v44 = vpop.eup %3541  ;;  %2904 = vst [vmem:[%s5388_s8 + $0x268] sm:$0xff] %v3540_v2  ;;  %3567 = vpow2.f32 %v2577_v1  ;;  %v2387_v2 = vmul.f32 1.442695, %v2271_v50  ;;  %v2221_v38 = vadd.f32 %v2220_v22, %v5056_v45 }
 0x5a3   :  { %v3544_v21 = vpop.eup %3543  ;;  %2906 = vst [vmem:[%s5388_s8 + $0x278] sm:$0xff] %v3542_v44  ;;  %3569 = vpow2.f32 %v2581_v47  ;;  %v2096_v47 = vadd.f32 %v4960_v27, %v5054_v30  ;;  %v2273_v44 = vsub.f32 0.0, %v2205_v43  ;;  %v2208_v27 = vadd.f32 %v2207_v60, %v5056_v45 }
 0x5a4   :  { %v3546_v34 = vpop.eup %3545  ;;  %2905 = vst [vmem:[%s5388_s8 + $0x270] sm:$0xff] %v3544_v21  ;;  %3571 = vpow2.f32 %v2589_v40  ;;  %v2301_v43 = vsub.f32 0.0, %v2221_v38  ;;  %v2112_v38 = vadd.f32 %v5029_v33, %v5054_v30 }
 0x5a5   :  { %v3548_v4 = vpop.eup %3547  ;;  %v2687_v5 = vadd.f32 1.0, %v3546_v34  ;;  %3573 = vpow2.f32 %v2593_v36  ;;  %v2419_v36 = vmul.f32 1.442695, %v2287_v0  ;;  %v5083_v34 = vpop.f32.mrf.mxu1  ;;  %v2278_v56 = vsub.f32 0.0, %v2096_v47 }
 0x5a6   :  { %v3550_v29 = vpop.eup %3549  ;;  %v2689_v28 = vadd.f32 1.0, %v3548_v4  ;;  %3575 = vpow2.f32 %v2591_v18  ;;  %v2098_v18 = vadd.f32 %v4968_v53, %v5058_v42  ;;  %v2389_v53 = vmul.f32 1.442695, %v2272_v12 }
 0x5a7   :  { %v3552_v58 = vpop.eup %3551  ;;  %3577 = vrcp.f32 %v2687_v5  ;;  %v2688_v7 = vadd.f32 1.0, %v3550_v29  ;;  %v2294_v29 = vsub.f32 0.0, %v2216_v26  ;;  %v2391_v59 = vmul.f32 1.442695, %v2273_v44 }
 0x5a8   :  { %v3554_v11 = vpop.eup %3553  ;;  %3579 = vrcp.f32 %v2689_v28  ;;  %v2690_v14 = vadd.f32 1.0, %v3552_v58  ;;  %v2108_v0 = vadd.f32 %v5014_v35, %v5058_v42 }
 0x5a9   :  { %v3556_v55 = vpop.eup %3555  ;;  %2907 = vst [vmem:[%s5388_s8 + $0x280] sm:$0xff] %v3554_v11  ;;  %3581 = vrcp.f32 %v2688_v7  ;;  %v2279_v7 = vsub.f32 0.0, %v2098_v18  ;;  %v3246_v11 = vpop.f32.mrf.mxu0  ;;  %v2433_v60 = vmul.f32 1.442695, %v2294_v29 }
 0x5aa   :  { %v3558_v20 = vpop.eup %3557  ;;  %3583 = vrcp.f32 %v2690_v14  ;;  %v2694_v37 = vadd.f32 1.0, %v3556_v55  ;;  %v2280_v55 = vsub.f32 0.0, %v2208_v27 }
 0x5ab   :  { %v3560_v49 = vpop.eup %3559  ;;  %v2696_v16 = vadd.f32 1.0, %v3558_v20  ;;  %3585 = vpow2.f32 %v2595_v32  ;;  %v2104_v32 = vadd.f32 %v4981_v63, %v5058_v42  ;;  %v5098_v20 = vpop.f32.mrf.mxu1  ;;  %v2401_v63 = vmul.f32 1.442695, %v2278_v56 }
 0x5ac   :  { %v3562_v52 = vpop.eup %3561  ;;  %3587 = vrcp.f32 %v2694_v37  ;;  %v2695_v46 = vadd.f32 1.0, %v3560_v49  ;;  %v2106_v49 = vadd.f32 %v4998_v10, %v5054_v30  ;;  %v2405_v10 = vmul.f32 1.442695, %v2280_v55 }
 0x5ad   :  { %v3564_v57 = vpop.eup %3563  ;;  %3589 = vrcp.f32 %v2696_v16  ;;  %v2697_v8 = vadd.f32 1.0, %v3562_v52  ;;  %v2315_v52 = vsub.f32 0.0, %v2229_v25  ;;  %v2286_v50 = vsub.f32 0.0, %v2104_v32  ;;  %v5114_v9 = vpop.f32.mrf.mxu1 }
 0x5ae   :  { %v3566_v54 = vpop.eup %3565  ;;  %3591 = vrcp.f32 %v2695_v46  ;;  %v2701_v61 = vadd.f32 1.0, %v3564_v57  ;;  %v2232_v46 = vadd.f32 %v3246_v11, %v5056_v45  ;;  %v2292_v12 = vsub.f32 0.0, %v2106_v49 }
 0x5af   :  { %v3568_v23 = vpop.eup %3567  ;;  %3593 = vrcp.f32 %v2697_v8  ;;  %v2703_v1 = vadd.f32 1.0, %v3566_v54  ;;  %v2403_v8 = vmul.f32 1.442695, %v2279_v7  ;;  %v2223_v54 = vpop.f32.mrf.mxu0  ;;  %v2417_v26 = vmul.f32 1.442695, %v2286_v50 }
 0x5b0   :  { %v3570_v48 = vpop.eup %3569  ;;  %3595 = vrcp.f32 %v2701_v61  ;;  %v2702_v39 = vadd.f32 1.0, %v3568_v23  ;;  %v2429_v18 = vmul.f32 1.442695, %v2292_v12 }
 0x5b1   :  { %v3572_v6 = vpop.eup %3571  ;;  %3597 = vrcp.f32 %v2703_v1  ;;  %v2704_v40 = vadd.f32 1.0, %v3570_v48  ;;  %v2415_v1 = vmul.f32 1.442695, %v2285_v19  ;;  %v2475_v48 = vmul.f32 1.442695, %v2315_v52 }
 0x5b2   :  { %v3574_v17 = vpop.eup %3573  ;;  %3599 = vrcp.f32 %v2702_v39  ;;  %v2708_v13 = vadd.f32 1.0, %v3572_v6  ;;  %v2322_v39 = vsub.f32 0.0, %v2232_v46  ;;  %v2293_v6 = vsub.f32 0.0, %v2108_v0 }
 0x5b3   :  { %v3576_v21 = vpop.eup %3575  ;;  %3601 = vrcp.f32 %v2704_v40  ;;  %v2710_v3 = vadd.f32 1.0, %v3574_v17  ;;  %v3249_v40 = vpop.f32.mrf.mxu0  ;;  %v2224_v17 = vadd.f32 %v2223_v54, %v5056_v45 }
 0x5b4   :  { %v3578_v4 = vpop.eup %3577  ;;  %3603 = vrcp.f32 %v2708_v13  ;;  %v2709_v5 = vadd.f32 1.0, %v3576_v21  ;;  %v5129_v13 = vpop.f32.mrf.mxu1  ;;  %v2489_v21 = vmul.f32 1.442695, %v2322_v39  ;;  %v2431_v27 = vmul.f32 1.442695, %v2293_v6 }
 0x5b5   :  { %v3580_v28 = vpop.eup %3579  ;;  %2911 = vst [vmem:[%s5388_s8 + $0x2a0] sm:$0xff] %v3578_v4  ;;  %3605 = vrcp.f32 %v2710_v3  ;;  %v2236_v31 = vpop.f32.mrf.mxu0 }
 0x5b6   :  { %v3582_v58 = vpop.eup %3581  ;;  %2913 = vst [vmem:[%s5388_s8 + $0x2b0] sm:$0xff] %v3580_v28  ;;  %3607 = vrcp.f32 %v2709_v5  ;;  %v2308_v5 = vsub.f32 0.0, %v2224_v17  ;;  %v5143_v56 = vpop.f32.mrf.mxu1 }
 0x5b7   :  { %v3584_v14 = vpop.eup %3583  ;;  %2912 = vst [vmem:[%s5388_s8 + $0x2a8] sm:$0xff] %v3582_v58  ;;  %3609 = vpow2.f32 %v2387_v2 }
 0x5b8   :  { %v3586_v37 = vpop.eup %3585  ;;  %2914 = vst [vmem:[%s5388_s8 + $0x2b8] sm:$0xff] %v3584_v14  ;;  %3611 = vpow2.f32 %v2419_v36  ;;  %v2447_v36 = vmul.f32 1.442695, %v2301_v43  ;;  %v2461_v11 = vmul.f32 1.442695, %v2308_v5  ;;  %v5148_v14 = vpop.f32.mrf.mxu1 }
 0x5b9   :  { %v3588_v16 = vpop.eup %3587  ;;  %v2711_v62 = vadd.f32 1.0, %v3586_v37  ;;  %3613 = vpow2.f32 %v2389_v53 }
 0x5ba   :  { %v3590_v57 = vpop.eup %3589  ;;  %2918 = vst [vmem:[%s5388_s8 + $0x2d8] sm:$0xff] %v3588_v16  ;;  %3615 = vpow2.f32 %v2391_v59  ;;  %v3250_v59 = vpop.f32.mrf.mxu0 }
 0x5bb   :  { %v3592_v61 = vpop.eup %3591  ;;  %2920 = vst [vmem:[%s5388_s8 + $0x2e8] sm:$0xff] %v3590_v57  ;;  %3617 = vrcp.f32 %v2711_v62  ;;  %v5156_v46 = vpop.f32.mrf.mxu1 }
 0x5bc   :  { %v3594_v23 = vpop.eup %3593  ;;  %2919 = vst [vmem:[%s5388_s8 + $0x2e0] sm:$0xff] %v3592_v61  ;;  %3619 = vpow2.f32 %v2401_v63  ;;  %v2245_v63 = vadd.f32 %v3249_v40, %v5056_v45  ;;  %v2239_v16 = vpop.f32.mrf.mxu0  ;;  %v2114_v61 = vadd.f32 %v5046_v24, %v5058_v42  ;;  %v2248_v24 = vadd.f32 %v3250_v59, %v5056_v45 }
 0x5bd   :  { %v3596_v35 = vpop.eup %3595  ;;  %2921 = vst [vmem:[%s5388_s8 + $0x2f0] sm:$0xff] %v3594_v23  ;;  %3621 = vpow2.f32 %v2433_v60  ;;  %v2237_v23 = vadd.f32 %v2236_v31, %v5056_v45  ;;  %v5163_v39 = vpop.f32.mrf.mxu1 }
 0x5be   :  { %v3598_v47 = vpop.eup %3597  ;;  %2925 = vst [vmem:[%s5388_s8 + $0x310] sm:$0xff] %v3596_v35  ;;  %3623 = vpow2.f32 %v2403_v8  ;;  %v2299_v8 = vsub.f32 0.0, %v2112_v38  ;;  %v2343_v54 = vsub.f32 0.0, %v2245_v63  ;;  %v2300_v17 = vsub.f32 0.0, %v2114_v61 }
 0x5bf   :  { %v3600_v2 = vpop.eup %3599  ;;  %2927 = vst [vmem:[%s5388_s8 + $0x320] sm:$0xff] %v3598_v47  ;;  %3625 = vpow2.f32 %v2405_v10  ;;  %v5169_v5 = vpop.f32.mrf.mxu1  ;;  %v2128_v61 = vadd.f32 %v5114_v9, %v5058_v42 }
 0x5c0   :  { %v3602_v44 = vpop.eup %3601  ;;  %2926 = vst [vmem:[%s5388_s8 + $0x318] sm:$0xff] %v3600_v2  ;;  %3627 = vpow2.f32 %v2415_v1  ;;  %v3253_v1 = vpop.f32.mrf.mxu0  ;;  %v2443_v6 = vmul.f32 1.442695, %v2299_v8 }
 0x5c1   :  { %v3604_v22 = vpop.eup %3603  ;;  %2928 = vst [vmem:[%s5388_s8 + $0x328] sm:$0xff] %v3602_v44  ;;  %3629 = vpow2.f32 %v2475_v48  ;;  %v2116_v48 = vadd.f32 %v5060_v51, %v5054_v30  ;;  %v2118_v51 = vadd.f32 %v5070_v41, %v5058_v42  ;;  %v2445_v41 = vmul.f32 1.442695, %v2300_v17 }
 0x5c2   :  { %v3606_v3 = vpop.eup %3605  ;;  %2932 = vst [vmem:[%s5388_s8 + $0x348] sm:$0xff] %v3604_v22  ;;  %3631 = vpow2.f32 %v2417_v26  ;;  %v2329_v22 = vsub.f32 0.0, %v2237_v23  ;;  %v2261_v59 = vadd.f32 %v3253_v1, %v5056_v45 }
 0x5c3   :  { %v3608_v4 = vpop.eup %3607  ;;  %2934 = vst [vmem:[%s5388_s8 + $0x358] sm:$0xff] %v3606_v3  ;;  %3633 = vpow2.f32 %v2447_v36  ;;  %v2531_v36 = vmul.f32 1.442695, %v2343_v54  ;;  %v2306_v31 = vsub.f32 0.0, %v2116_v48 }
 0x5c4   :  { %v3610_v29 = vpop.eup %3609  ;;  %2933 = vst [vmem:[%s5388_s8 + $0x350] sm:$0xff] %v3608_v4  ;;  %3635 = vpow2.f32 %v2429_v18  ;;  %v2240_v4 = vadd.f32 %v2239_v16, %v5056_v45 }
 0x5c5   :  { %v3612_v28 = vpop.eup %3611  ;;  %v2607_v53 = vadd.f32 1.0, %v3610_v29  ;;  %3637 = vpow2.f32 %v2489_v21  ;;  %v2252_v21 = vpop.f32.mrf.mxu0  ;;  %v2457_v38 = vmul.f32 1.442695, %v2306_v31 }
 0x5c6   :  { %v3614_v25 = vpop.eup %3613  ;;  %v2623_v58 = vadd.f32 1.0, %v3612_v28  ;;  %3639 = vpow2.f32 %v2431_v27  ;;  %v2253_v63 = vadd.f32 %v2252_v21, %v5056_v45 }
 0x5c7   :  { %v3616_v7 = vpop.eup %3615  ;;  %3641 = vrcp.f32 %v2607_v53  ;;  %v2608_v32 = vadd.f32 1.0, %v3614_v25  ;;  %v2350_v53 = vsub.f32 0.0, %v2248_v24  ;;  %v2122_v25 = vadd.f32 %v5073_v15, %v5054_v30 }
 0x5c8   :  { %v3618_v55 = vpop.eup %3617  ;;  %3643 = vrcp.f32 %v2623_v58  ;;  %v2609_v19 = vadd.f32 1.0, %v3616_v7  ;;  %v2124_v15 = vadd.f32 %v5083_v34, %v5058_v42 }
 0x5c9   :  { %v3620_v37 = vpop.eup %3619  ;;  %2935 = vst [vmem:[%s5388_s8 + $0x360] sm:$0xff] %v3618_v55  ;;  %3645 = vrcp.f32 %v2608_v32  ;;  %v2503_v32 = vmul.f32 1.442695, %v2329_v22  ;;  %v3254_v55 = vpop.f32.mrf.mxu0  ;;  %v2545_v34 = vmul.f32 1.442695, %v2350_v53  ;;  %v2313_v16 = vsub.f32 0.0, %v2122_v25 }
 0x5ca   :  { %v3622_v60 = vpop.eup %3621  ;;  %3647 = vrcp.f32 %v2609_v19  ;;  %v2614_v49 = vadd.f32 1.0, %v3620_v37  ;;  %v2336_v37 = vsub.f32 0.0, %v2240_v4  ;;  %v2264_v8 = vadd.f32 %v3254_v55, %v5056_v45 }
 0x5cb   :  { %v3624_v62 = vpop.eup %3623  ;;  %v2630_v52 = vadd.f32 1.0, %v3622_v60  ;;  %3649 = vpow2.f32 %v2461_v11  ;;  %v2307_v11 = vsub.f32 0.0, %v2118_v51  ;;  %v5187_v60 = vpop.f32.mrf.mxu1  ;;  %v2314_v54 = vsub.f32 0.0, %v2124_v15 }
 0x5cc   :  { %v3626_v57 = vpop.eup %3625  ;;  %3651 = vrcp.f32 %v2614_v49  ;;  %v2615_v33 = vadd.f32 1.0, %v3624_v62  ;;  %v2126_v62 = vadd.f32 %v5098_v20, %v5054_v30  ;;  %v2517_v20 = vmul.f32 1.442695, %v2336_v37  ;;  %v2255_v9 = vpop.f32.mrf.mxu0 }
 0x5cd   :  { %v3628_v50 = vpop.eup %3627  ;;  %3653 = vrcp.f32 %v2630_v52  ;;  %v2616_v0 = vadd.f32 1.0, %v3626_v57  ;;  %v5205_v23 = vpop.f32.mrf.mxu1  ;;  %v2473_v24 = vmul.f32 1.442695, %v2314_v54  ;;  %v2256_v17 = vadd.f32 %v2255_v9, %v5056_v45 }
 0x5ce   :  { %v3630_v10 = vpop.eup %3629  ;;  %3655 = vrcp.f32 %v2615_v33  ;;  %v2621_v43 = vadd.f32 1.0, %v3628_v50  ;;  %v2371_v33 = vsub.f32 0.0, %v2261_v59  ;;  %v2138_v54 = vadd.f32 %v5156_v46, %v5058_v42 }
 0x5cf   :  { %v3632_v12 = vpop.eup %3631  ;;  %3657 = vrcp.f32 %v2616_v0  ;;  %v2651_v35 = vadd.f32 1.0, %v3630_v10  ;;  %v2459_v0 = vmul.f32 1.442695, %v2307_v11  ;;  %v2364_v31 = vsub.f32 0.0, %v2256_v17 }
 0x5d0   :  { %v3634_v47 = vpop.eup %3633  ;;  %3659 = vrcp.f32 %v2621_v43  ;;  %v2622_v26 = vadd.f32 1.0, %v3632_v12  ;;  %v2357_v43 = vsub.f32 0.0, %v2253_v63  ;;  %v2471_v12 = vmul.f32 1.442695, %v2313_v16 }
 0x5d1   :  { %v3636_v40 = vpop.eup %3635  ;;  %3661 = vrcp.f32 %v2651_v35  ;;  %v2637_v2 = vadd.f32 1.0, %v3634_v47  ;;  %v2320_v35 = vsub.f32 0.0, %v2126_v62  ;;  %v2587_v47 = vmul.f32 1.442695, %v2371_v33 }
 0x5d2   :  { %v3638_v44 = vpop.eup %3637  ;;  %3663 = vrcp.f32 %v2622_v26  ;;  %v2628_v18 = vadd.f32 1.0, %v3636_v40  ;;  %v2378_v26 = vsub.f32 0.0, %v2264_v8  ;;  %v2321_v40 = vsub.f32 0.0, %v2128_v61 }
 0x5d3   :  { %v3640_v3 = vpop.eup %3639  ;;  %3665 = vrcp.f32 %v2637_v2  ;;  %v2658_v27 = vadd.f32 1.0, %v3638_v44  ;;  %v5222_v44 = vpop.f32.mrf.mxu1  ;;  %v2485_v22 = vmul.f32 1.442695, %v2320_v35  ;;  %v2144_v35 = vadd.f32 %v5169_v5, %v5058_v42 }
 0x5d4   :  { %v3642_v29 = vpop.eup %3641  ;;  %3667 = vrcp.f32 %v2628_v18  ;;  %v2629_v28 = vadd.f32 1.0, %v3640_v3  ;;  %v2601_v21 = vmul.f32 1.442695, %v2378_v26  ;;  %v2487_v45 = vmul.f32 1.442695, %v2321_v40 }
 0x5d5   :  { %v3644_v58 = vpop.eup %3643  ;;  %2831 = vst [vmem:[%s5388_s8 + $0x20] sm:$0xff] %v3642_v29  ;;  %3669 = vrcp.f32 %v2658_v27  ;;  %v5238_v4 = vpop.f32.mrf.mxu1  ;;  %v2148_v17 = vadd.f32 %v5205_v23, %v5058_v42 }
 0x5d6   :  { %v3646_v7 = vpop.eup %3645  ;;  %2847 = vst.msk [vmem:[%s5388_s8 + $0xa0] sm:$0xff] %vm286_vm3, %v3644_v58  ;;  %3671 = vrcp.f32 %v2629_v28 }
 0x5d7   :  { %v3648_v19 = vpop.eup %3647  ;;  %2832 = vst [vmem:[%s5388_s8 + $0x28] sm:$0xff] %v3646_v7  ;;  %3673 = vpow2.f32 %v2443_v6  ;;  %v2573_v7 = vmul.f32 1.442695, %v2364_v31 }
 0x5d8   :  { %v3650_v49 = vpop.eup %3649  ;;  %2833 = vst.msk [vmem:[%s5388_s8 + $0x30] sm:$0xff] %vm286_vm3, %v3648_v19  ;;  %3675 = vpow2.f32 %v2531_v36  ;;  %v2559_v36 = vmul.f32 1.442695, %v2357_v43  ;;  %v2132_v19 = vadd.f32 %v5129_v13, %v5054_v30 }
 0x5d9   :  { %v3652_v52 = vpop.eup %3651  ;;  %v2644_v57 = vadd.f32 1.0, %v3650_v49  ;;  %3677 = vpow2.f32 %v2445_v41 }
 0x5da   :  { %v3654_v50 = vpop.eup %3653  ;;  %2838 = vst [vmem:[%s5388_s8 + $0x58] sm:$0xff] %v3652_v52  ;;  %3679 = vpow2.f32 %v2503_v32  ;;  %v5243_v32 = vpop.f32.mrf.mxu1  ;;  %v2327_v13 = vsub.f32 0.0, %v2132_v19 }
 0x5db   :  { %v3656_v10 = vpop.eup %3655  ;;  %2854 = vst.msk [vmem:[%s5388_s8 + $0xd8] sm:$0xff] %vm286_vm3, %v3654_v50  ;;  %3681 = vrcp.f32 %v2644_v57  ;;  %v2136_v57 = vadd.f32 %v5148_v14, %v5054_v30 }
 0x5dc   :  { %v3658_v1 = vpop.eup %3657  ;;  %2839 = vst [vmem:[%s5388_s8 + $0x60] sm:$0xff] %v3656_v10  ;;  %3683 = vpow2.f32 %v2457_v38  ;;  %v2134_v38 = vadd.f32 %v5143_v56, %v5058_v42  ;;  %v2157_v16 = vpop.f32.mrf.mxu1 }
 0x5dd   :  { %v3660_v48 = vpop.eup %3659  ;;  %2840 = vst.msk [vmem:[%s5388_s8 + $0x68] sm:$0xff] %vm286_vm3, %v3658_v1  ;;  %3685 = vpow2.f32 %v2545_v34 }
 0x5de   :  { %v3662_v6 = vpop.eup %3661  ;;  %2845 = vst [vmem:[%s5388_s8 + $0x90] sm:$0xff] %v3660_v48  ;;  %3687 = vpow2.f32 %v2459_v0  ;;  %v2328_v50 = vsub.f32 0.0, %v2134_v38  ;;  %v2161_v43 = vpop.f32.mrf.mxu1 }
 0x5df   :  { %v3664_v2 = vpop.eup %3663  ;;  %2875 = vst.msk [vmem:[%s5388_s8 + $0x180] sm:$0xff] %vm286_vm3, %v3662_v6  ;;  %3689 = vpow2.f32 %v2517_v20  ;;  %v2142_v20 = vadd.f32 %v5163_v39, %v5054_v30  ;;  %v2146_v39 = vadd.f32 %v5187_v60, %v5054_v30 }
 0x5e0   :  { %v3666_v18 = vpop.eup %3665  ;;  %2846 = vst [vmem:[%s5388_s8 + $0x98] sm:$0xff] %v3664_v2  ;;  %3691 = vpow2.f32 %v2471_v12  ;;  %v2334_v12 = vsub.f32 0.0, %v2136_v57  ;;  %v2501_v26 = vmul.f32 1.442695, %v2328_v50  ;;  %v2163_v5 = vpop.f32.mrf.mxu1 }
 0x5e1   :  { %v3668_v51 = vpop.eup %3667  ;;  %2861 = vst.msk [vmem:[%s5388_s8 + $0x110] sm:$0xff] %vm286_vm3, %v3666_v18  ;;  %3693 = vpow2.f32 %v2587_v47  ;;  %v2499_v47 = vmul.f32 1.442695, %v2327_v13  ;;  %v2348_v31 = vsub.f32 0.0, %v2146_v39 }
 0x5e2   :  { %v3670_v3 = vpop.eup %3669  ;;  %2852 = vst [vmem:[%s5388_s8 + $0xc8] sm:$0xff] %v3668_v51  ;;  %3695 = vpow2.f32 %v2473_v24  ;;  %v2335_v24 = vsub.f32 0.0, %v2138_v54  ;;  %v2342_v51 = vsub.f32 0.0, %v2144_v35  ;;  %v2513_v60 = vmul.f32 1.442695, %v2334_v12 }
 0x5e3   :  { %v3672_v27 = vpop.eup %3671  ;;  %2882 = vst.msk [vmem:[%s5388_s8 + $0x1b8] sm:$0xff] %vm286_vm3, %v3670_v3  ;;  %3697 = vpow2.f32 %v2559_v36  ;;  %v2341_v36 = vsub.f32 0.0, %v2142_v20  ;;  %v2541_v38 = vmul.f32 1.442695, %v2348_v31 }
 0x5e4   :  { %v3674_v29 = vpop.eup %3673  ;;  %2853 = vst [vmem:[%s5388_s8 + $0xd0] sm:$0xff] %v3672_v27  ;;  %3699 = vpow2.f32 %v2485_v22  ;;  %v2515_v23 = vmul.f32 1.442695, %v2335_v24 }
 0x5e5   :  { %v3676_v28 = vpop.eup %3675  ;;  %v2635_v53 = vadd.f32 1.0, %v3674_v29  ;;  %3701 = vpow2.f32 %v2601_v21  ;;  %v2152_v21 = vadd.f32 %v5222_v44, %v5054_v30  ;;  %v2156_v44 = vadd.f32 %v5243_v32, %v5054_v30 }
 0x5e6   :  { %v3678_v25 = vpop.eup %3677  ;;  %v2679_v58 = vadd.f32 1.0, %v3676_v28  ;;  %3703 = vpow2.f32 %v2487_v45  ;;  %v2154_v45 = vadd.f32 %v5238_v4, %v5058_v42  ;;  %v2527_v28 = vmul.f32 1.442695, %v2341_v36 }
 0x5e7   :  { %v3680_v41 = vpop.eup %3679  ;;  %3705 = vrcp.f32 %v2635_v53  ;;  %v2636_v59 = vadd.f32 1.0, %v3678_v25  ;;  %v2349_v4 = vsub.f32 0.0, %v2148_v17  ;;  %v2158_v53 = vadd.f32 %v2157_v16, %v5058_v42  ;;  %v2165_v25 = vpop.f32.mrf.mxu1 }
 0x5e8   :  { %v3682_v11 = vpop.eup %3681  ;;  %3707 = vrcp.f32 %v2679_v58  ;;  %v2665_v15 = vadd.f32 1.0, %v3680_v41  ;;  %v2529_v41 = vmul.f32 1.442695, %v2342_v51 }
 0x5e9   :  { %v3684_v55 = vpop.eup %3683  ;;  %2868 = vst.msk [vmem:[%s5388_s8 + $0x148] sm:$0xff] %vm286_vm3, %v3682_v11  ;;  %3709 = vrcp.f32 %v2636_v59  ;;  %v2355_v59 = vsub.f32 0.0, %v2152_v21  ;;  %v2363_v16 = vsub.f32 0.0, %v2158_v53 }
 0x5ea   :  { %v3686_v37 = vpop.eup %3685  ;;  %3711 = vrcp.f32 %v2665_v15  ;;  %v2642_v63 = vadd.f32 1.0, %v3684_v55  ;;  %v2356_v15 = vsub.f32 0.0, %v2154_v45  ;;  %v2164_v55 = vadd.f32 %v2163_v5, %v5058_v42 }
 0x5eb   :  { %v3688_v49 = vpop.eup %3687  ;;  %v2686_v34 = vadd.f32 1.0, %v3686_v37  ;;  %3713 = vpow2.f32 %v2573_v7  ;;  %v2162_v7 = vadd.f32 %v2161_v43, %v5054_v30  ;;  %v2362_v37 = vsub.f32 0.0, %v2156_v44 }
 0x5ec   :  { %v3690_v62 = vpop.eup %3689  ;;  %3715 = vrcp.f32 %v2642_v63  ;;  %v2643_v52 = vadd.f32 1.0, %v3688_v49  ;;  %v2166_v63 = vadd.f32 %v2165_v25, %v5054_v30  ;;  %v2557_v30 = vmul.f32 1.442695, %v2356_v15 }
 0x5ed   :  { %v3692_v33 = vpop.eup %3691  ;;  %3717 = vrcp.f32 %v2686_v34  ;;  %v2672_v8 = vadd.f32 1.0, %v3690_v62  ;;  %v2543_v34 = vmul.f32 1.442695, %v2349_v4  ;;  %v2369_v57 = vsub.f32 0.0, %v2162_v7 }
 0x5ee   :  { %v3694_v0 = vpop.eup %3693  ;;  %3719 = vrcp.f32 %v2643_v52  ;;  %v2649_v56 = vadd.f32 1.0, %v3692_v33  ;;  %v2555_v52 = vmul.f32 1.442695, %v2355_v59  ;;  %v2167_v33 = vpop.f32.mrf.mxu1  ;;  %v2370_v13 = vsub.f32 0.0, %v2164_v55 }
 0x5ef   :  { %v3696_v61 = vpop.eup %3695  ;;  %3721 = vrcp.f32 %v2672_v8  ;;  %v2707_v10 = vadd.f32 1.0, %v3694_v0  ;;  %v2569_v0 = vmul.f32 1.442695, %v2362_v37  ;;  %v2583_v43 = vmul.f32 1.442695, %v2369_v57 }
 0x5f0   :  { %v3698_v1 = vpop.eup %3697  ;;  %3723 = vrcp.f32 %v2649_v56  ;;  %v2650_v14 = vadd.f32 1.0, %v3696_v61  ;;  %v2376_v56 = vsub.f32 0.0, %v2166_v63  ;;  %v2571_v61 = vmul.f32 1.442695, %v2363_v16 }
 0x5f1   :  { %v3700_v9 = vpop.eup %3699  ;;  %3725 = vrcp.f32 %v2707_v10  ;;  %v2693_v48 = vadd.f32 1.0, %v3698_v1  ;;  %v2168_v10 = vadd.f32 %v2167_v33, %v5058_v42 }
 0x5f2   :  { %v3702_v46 = vpop.eup %3701  ;;  %3727 = vrcp.f32 %v2650_v14  ;;  %v2656_v6 = vadd.f32 1.0, %v3700_v9  ;;  %v2585_v14 = vmul.f32 1.442695, %v2370_v13  ;;  %v2597_v42 = vmul.f32 1.442695, %v2376_v56 }
 0x5f3   :  { %v3704_v40 = vpop.eup %3703  ;;  %3729 = vrcp.f32 %v2693_v48  ;;  %v2714_v2 = vadd.f32 1.0, %v3702_v46  ;;  %v2377_v9 = vsub.f32 0.0, %v2168_v10 }
 0x5f4   :  { %v3706_v18 = vpop.eup %3705  ;;  %3731 = vrcp.f32 %v2656_v6  ;;  %v2657_v22 = vadd.f32 1.0, %v3704_v40 }
 0x5f5   :  { %v3708_v3 = vpop.eup %3707  ;;  %2859 = vst [vmem:[%s5388_s8 + $0x100] sm:$0xff] %v3706_v18  ;;  %3733 = vrcp.f32 %v2714_v2  ;;  %v2599_v40 = vmul.f32 1.442695, %v2377_v9 }
 0x5f6   :  { %v3710_v27 = vpop.eup %3709  ;;  %2903 = vst.msk [vmem:[%s5388_s8 + $0x260] sm:$0xff] %vm286_vm3, %v3708_v3  ;;  %3735 = vrcp.f32 %v2657_v22 }
 0x5f7   :  { %v3712_v29 = vpop.eup %3711  ;;  %2860 = vst [vmem:[%s5388_s8 + $0x108] sm:$0xff] %v3710_v27  ;;  %3737 = vpow2.f32 %v2499_v47 }
 0x5f8   :  { %v3714_v58 = vpop.eup %3713  ;;  %2889 = vst.msk [vmem:[%s5388_s8 + $0x1f0] sm:$0xff] %vm286_vm3, %v3712_v29  ;;  %3739 = vpow2.f32 %v2501_v26 }
 0x5f9   :  { %v3716_v32 = vpop.eup %3715  ;;  %v2700_v11 = vadd.f32 1.0, %v3714_v58  ;;  %3741 = vpow2.f32 %v2513_v60 }
 0x5fa   :  { %v3718_v19 = vpop.eup %3717  ;;  %2866 = vst [vmem:[%s5388_s8 + $0x138] sm:$0xff] %v3716_v32  ;;  %3743 = vpow2.f32 %v2515_v23 }
 0x5fb   :  { %v3720_v49 = vpop.eup %3719  ;;  %2910 = vst.msk [vmem:[%s5388_s8 + $0x298] sm:$0xff] %vm286_vm3, %v3718_v19  ;;  %3745 = vrcp.f32 %v2700_v11 }
 0x5fc   :  { %v3722_v62 = vpop.eup %3721  ;;  %2867 = vst [vmem:[%s5388_s8 + $0x140] sm:$0xff] %v3720_v49  ;;  %3747 = vpow2.f32 %v2527_v28 }
 0x5fd   :  { %v3724_v8 = vpop.eup %3723  ;;  %2896 = vst.msk [vmem:[%s5388_s8 + $0x228] sm:$0xff] %vm286_vm3, %v3722_v62  ;;  %3749 = vpow2.f32 %v2529_v41 }
 0x5fe   :  { %v3726_v50 = vpop.eup %3725  ;;  %2873 = vst [vmem:[%s5388_s8 + $0x170] sm:$0xff] %v3724_v8  ;;  %3751 = vpow2.f32 %v2541_v38 }
 0x5ff   :  { %v3728_v54 = vpop.eup %3727  ;;  %2931 = vst.msk [vmem:[%s5388_s8 + $0x340] sm:$0xff] %vm286_vm3, %v3726_v50  ;;  %3753 = vpow2.f32 %v2543_v34 }
 0x600   :  { %v3730_v20 = vpop.eup %3729  ;;  %2874 = vst [vmem:[%s5388_s8 + $0x178] sm:$0xff] %v3728_v54  ;;  %3755 = vpow2.f32 %v2555_v52 }
 0x601   :  { %v3732_v1 = vpop.eup %3731  ;;  %2917 = vst.msk [vmem:[%s5388_s8 + $0x2d0] sm:$0xff] %vm286_vm3, %v3730_v20  ;;  %3757 = vpow2.f32 %v2557_v30 }
 0x602   :  { %v3734_v12 = vpop.eup %3733  ;;  %2880 = vst [vmem:[%s5388_s8 + $0x1a8] sm:$0xff] %v3732_v1  ;;  %3759 = vpow2.f32 %v2569_v0 }
 0x603   :  { %v3736_v35 = vpop.eup %3735  ;;  %2938 = vst.msk [vmem:[%s5388_s8 + $0x378] sm:$0xff] %vm286_vm3, %v3734_v12  ;;  %3761 = vpow2.f32 %v2571_v61 }
 0x604   :  { %v3738_v48 = vpop.eup %3737  ;;  %2881 = vst [vmem:[%s5388_s8 + $0x1b0] sm:$0xff] %v3736_v35  ;;  %3763 = vpow2.f32 %v2583_v43 }
 0x605   :  { %v3740_v47 = vpop.eup %3739  ;;  %v2663_v26 = vadd.f32 1.0, %v3738_v48  ;;  %3765 = vpow2.f32 %v2585_v14 }
 0x606   :  { %v3742_v46 = vpop.eup %3741  ;;  %v2664_v6 = vadd.f32 1.0, %v3740_v47  ;;  %3767 = vpow2.f32 %v2597_v42 }
 0x607   :  { %v3744_v24 = vpop.eup %3743  ;;  %3769 = vrcp.f32 %v2663_v26  ;;  %v2670_v39 = vadd.f32 1.0, %v3742_v46 }
 0x608   :  { %v3746_v2 = vpop.eup %3745  ;;  %3771 = vrcp.f32 %v2664_v6  ;;  %v2671_v36 = vadd.f32 1.0, %v3744_v24 }
 0x609   :  { %v3748_v17 = vpop.eup %3747  ;;  %2924 = vst.msk [vmem:[%s5388_s8 + $0x308] sm:$0xff] %vm286_vm3, %v3746_v2  ;;  %3773 = vrcp.f32 %v2670_v39 }
 0x60a   :  { %v3750_v5 = vpop.eup %3749  ;;  %3775 = vrcp.f32 %v2671_v36  ;;  %v2677_v18 = vadd.f32 1.0, %v3748_v17 }
 0x60b   :  { %v3752_v22 = vpop.eup %3751  ;;  %v2678_v51 = vadd.f32 1.0, %v3750_v5  ;;  %3777 = vpow2.f32 %v2599_v40 }
 0x60c   :  { %v3754_v21 = vpop.eup %3753  ;;  %3779 = vrcp.f32 %v2677_v18  ;;  %v2684_v3 = vadd.f32 1.0, %v3752_v22 }
 0x60d   :  { %v3756_v60 = vpop.eup %3755  ;;  %3781 = vrcp.f32 %v2678_v51  ;;  %v2685_v45 = vadd.f32 1.0, %v3754_v21 }
 0x60e   :  { %v3758_v27 = vpop.eup %3757  ;;  %3783 = vrcp.f32 %v2684_v3  ;;  %v2691_v23 = vadd.f32 1.0, %v3756_v60 }
 0x60f   :  { %v3760_v31 = vpop.eup %3759  ;;  %3785 = vrcp.f32 %v2685_v45  ;;  %v2692_v44 = vadd.f32 1.0, %v3758_v27 }
 0x610   :  { %v3762_v29 = vpop.eup %3761  ;;  %3787 = vrcp.f32 %v2691_v23  ;;  %v2698_v28 = vadd.f32 1.0, %v3760_v31 }
 0x611   :  { %v3764_v4 = vpop.eup %3763  ;;  %3789 = vrcp.f32 %v2692_v44  ;;  %v2699_v53 = vadd.f32 1.0, %v3762_v29 }
 0x612   :  { %v3766_v25 = vpop.eup %3765  ;;  %3791 = vrcp.f32 %v2698_v28  ;;  %v2705_v58 = vadd.f32 1.0, %v3764_v4 }
 0x613   :  { %v3768_v41 = vpop.eup %3767  ;;  %3793 = vrcp.f32 %v2699_v53  ;;  %v2706_v59 = vadd.f32 1.0, %v3766_v25 }
 0x614   :  { %v3770_v7 = vpop.eup %3769  ;;  %3795 = vrcp.f32 %v2705_v58  ;;  %v2712_v32 = vadd.f32 1.0, %v3768_v41 }
 0x615   :  { %v3772_v11 = vpop.eup %3771  ;;  %2887 = vst [vmem:[%s5388_s8 + $0x1e0] sm:$0xff] %v3770_v7  ;;  %3797 = vrcp.f32 %v2706_v59 }
 0x616   :  { %v3774_v15 = vpop.eup %3773  ;;  %2888 = vst [vmem:[%s5388_s8 + $0x1e8] sm:$0xff] %v3772_v11  ;;  %3799 = vrcp.f32 %v2712_v32 }
 0x617   :  { %v3776_v55 = vpop.eup %3775  ;;  %2894 = vst [vmem:[%s5388_s8 + $0x218] sm:$0xff] %v3774_v15 }
 0x618   :  { %v3778_v19 = vpop.eup %3777  ;;  %2895 = vst [vmem:[%s5388_s8 + $0x220] sm:$0xff] %v3776_v55 }
 0x619   :  { %v3780_v38 = vpop.eup %3779  ;;  %v2713_v37 = vadd.f32 1.0, %v3778_v19 }
 0x61a   :  { %v3782_v63 = vpop.eup %3781  ;;  %2901 = vst [vmem:[%s5388_s8 + $0x250] sm:$0xff] %v3780_v38 }
 0x61b   :  { %v3784_v49 = vpop.eup %3783  ;;  %2902 = vst [vmem:[%s5388_s8 + $0x258] sm:$0xff] %v3782_v63  ;;  %3801 = vrcp.f32 %v2713_v37 }
 0x61c   :  { %v3786_v34 = vpop.eup %3785  ;;  %2908 = vst [vmem:[%s5388_s8 + $0x288] sm:$0xff] %v3784_v49 }
 0x61d   :  { %v3788_v16 = vpop.eup %3787  ;;  %2909 = vst [vmem:[%s5388_s8 + $0x290] sm:$0xff] %v3786_v34 }
 0x61e   :  { %v3790_v62 = vpop.eup %3789  ;;  %2915 = vst [vmem:[%s5388_s8 + $0x2c0] sm:$0xff] %v3788_v16 }
 0x61f   :  { %v3792_v52 = vpop.eup %3791  ;;  %2916 = vst [vmem:[%s5388_s8 + $0x2c8] sm:$0xff] %v3790_v62 }
 0x620   :  { %v3794_v57 = vpop.eup %3793  ;;  %2922 = vst [vmem:[%s5388_s8 + $0x2f8] sm:$0xff] %v3792_v52 }
 0x621   :  { %v3796_v33 = vpop.eup %3795  ;;  %2923 = vst [vmem:[%s5388_s8 + $0x300] sm:$0xff] %v3794_v57 }
 0x622   :  { %v3798_v8 = vpop.eup %3797  ;;  %2929 = vst [vmem:[%s5388_s8 + $0x330] sm:$0xff] %v3796_v33 }
 0x623   :  { %v3800_v30 = vpop.eup %3799  ;;  %2930 = vst [vmem:[%s5388_s8 + $0x338] sm:$0xff] %v3798_v8 }
 0x624   :  { %2936 = vst [vmem:[%s5388_s8 + $0x368] sm:$0xff] %v3800_v30 }
 0x628   :  { %v3802_v13 = vpop.eup %3801 }
 0x629   :  { %2937 = vst [vmem:[%s5388_s8 + $0x370] sm:$0xff] %v3802_v13 }

</bundles_post_ra>
